<compile_context>
chip_gen: v7x
topology: tpu7x:2x2x1
jax: 0.10.0
libtpu: 0.0.40
codegen_flags: <defaults>
</compile_context>

<pallas_src>
import math
from functools import partial

import jax
import jax.numpy as jnp
from jax import lax
from jax.experimental import pallas as pl
from jax.experimental.pallas import tpu as pltpu


# ----------------------------------------------------------------------------
# Fused Pallas kernel: the whole InvertedResidual block
# ----------------------------------------------------------------------------
def _inverted_residual_kernel(x_ref, w1_ref, b1_ref, wdw_ref, bdw_ref,
                              w3_ref, b3_ref, o_ref, pad_scr,
                              *, use_res_connect):
    """
    x_ref   : (B, H, W, Cin)       input activations (NHWC)
    w1_ref  : (Cin, Chid)          1x1 expand conv weights (BN1 scale folded in)
    b1_ref  : (1, Chid)            folded BN1 shift
    wdw_ref : (9, Chid)            depthwise 3x3 weights, taps flattened row-major,
                                   BN2 scale folded in
    bdw_ref : (1, Chid)            folded BN2 shift
    w3_ref  : (Chid, Cout)         1x1 project conv weights (BN3 scale folded in)
    b3_ref  : (1, Cout)            folded BN3 shift
    o_ref   : (B, H, W, Cout)      output
    pad_scr : (B, H+2, W+2, Chid)  VMEM scratch, zero-padded depthwise input
    """
    B, H, W, Cin = x_ref.shape
    Chid = w1_ref.shape[1]
    Cout = w3_ref.shape[1]

    x = x_ref[...]                                            # (B, H, W, Cin)

    # ---- 1x1 expand conv + folded BN + ReLU6 (single MXU matmul) -----------
    h1 = jnp.dot(x.reshape(B * H * W, Cin), w1_ref[...],
                 preferred_element_type=jnp.float32) + b1_ref[...]
    h1 = jnp.clip(h1, 0.0, 6.0).reshape(B, H, W, Chid)

    # ---- depthwise 3x3 conv, stride=1, pad=1 + folded BN + ReLU6 ------------
    pad_scr[...] = jnp.zeros_like(pad_scr)
    pad_scr[:, 1:H + 1, 1:W + 1, :] = h1

    acc = jnp.zeros((B, H, W, Chid), jnp.float32)
    for k in range(9):                                        # fully unrolled 3x3 taps
        dy, dx = k // 3, k % 3
        wk = wdw_ref[k:k + 1, :].reshape(1, 1, 1, Chid)       # per-channel tap weight
        acc = acc + pad_scr[:, dy:dy + H, dx:dx + W, :] * wk
    h2 = jnp.clip(acc + bdw_ref[...].reshape(1, 1, 1, Chid), 0.0, 6.0)

    # ---- 1x1 project conv + folded BN (linear, no activation) --------------
    out = jnp.dot(h2.reshape(B * H * W, Chid), w3_ref[...],
                  preferred_element_type=jnp.float32) + b3_ref[...]
    out = out.reshape(B, H, W, Cout)

    if use_res_connect:                                       # static Python bool
        out = out + x
    o_ref[...] = out


# ----------------------------------------------------------------------------
# Wrapper (takes / returns PyTorch-style NCHW)
# ----------------------------------------------------------------------------
def inverted_residual_forward(x_nchw, params, *, stride, use_res_connect):
    # TODO(synk): stride=2 depthwise path not implemented; this config uses stride=1.
    assert stride == 1, "only the stride=1 configuration is implemented"

    x_nhwc = jnp.transpose(x_nchw, (0, 2, 3, 1)).astype(jnp.float32)
    B, H, W, Cin = x_nhwc.shape
    Chid = params["w1"].shape[1]
    Cout = params["w3"].shape[1]

    kern = partial(_inverted_residual_kernel, use_res_connect=use_res_connect)
    out_nhwc = pl.pallas_call(
        kern,
        out_shape=jax.ShapeDtypeStruct((B, H, W, Cout), jnp.float32),
        grid_spec=pltpu.PrefetchScalarGridSpec(
            num_scalar_prefetch=0,
            grid=(1,),
            in_specs=[
                pl.BlockSpec((B, H, W, Cin), lambda i: (0, 0, 0, 0)),
                pl.BlockSpec((Cin, Chid), lambda i: (0, 0)),
                pl.BlockSpec((1, Chid), lambda i: (0, 0)),
                pl.BlockSpec((9, Chid), lambda i: (0, 0)),
                pl.BlockSpec((1, Chid), lambda i: (0, 0)),
                pl.BlockSpec((Chid, Cout), lambda i: (0, 0)),
                pl.BlockSpec((1, Cout), lambda i: (0, 0)),
            ],
            out_specs=pl.BlockSpec((B, H, W, Cout), lambda i: (0, 0, 0, 0)),
            scratch_shapes=[
                pltpu.VMEM((B, H + 2, W + 2, Chid), jnp.float32),
            ],
        ),
        compiler_params=pltpu.CompilerParams(
            dimension_semantics=("arbitrary",),
        ),
    )(x_nhwc, params["w1"], params["b1"], params["wdw"], params["bdw"],
      params["w3"], params["b3"])

    return jnp.transpose(out_nhwc, (0, 3, 1, 2))              # back to NCHW


# ----------------------------------------------------------------------------
# Pure-JAX reference (independent code path via lax.conv) for correctness check
# ----------------------------------------------------------------------------
def _ref_forward(x_nchw, params, *, use_res_connect):
    dn = ("NHWC", "HWIO", "NHWC")
    x = jnp.transpose(x_nchw, (0, 2, 3, 1)).astype(jnp.float32)
    Cin, Chid = params["w1"].shape
    Cout = params["w3"].shape[1]

    w1 = params["w1"].reshape(1, 1, Cin, Chid)
    h1 = lax.conv_general_dilated(x, w1, (1, 1), "VALID", dimension_numbers=dn)
    h1 = jnp.clip(h1 + params["b1"].reshape(1, 1, 1, Chid), 0.0, 6.0)

    wdw = params["wdw"].reshape(3, 3, 1, Chid)                # HWIO, depthwise
    h2 = lax.conv_general_dilated(h1, wdw, (1, 1), ((1, 1), (1, 1)),
                                  dimension_numbers=dn, feature_group_count=Chid)
    h2 = jnp.clip(h2 + params["bdw"].reshape(1, 1, 1, Chid), 0.0, 6.0)

    w3 = params["w3"].reshape(1, 1, Chid, Cout)
    out = lax.conv_general_dilated(h2, w3, (1, 1), "VALID", dimension_numbers=dn)
    out = out + params["b3"].reshape(1, 1, 1, Cout)
    if use_res_connect:
        out = out + x
    return jnp.transpose(out, (0, 3, 1, 2))


# ----------------------------------------------------------------------------
# Deterministic parameter init with eval-mode BatchNorm folding
# ----------------------------------------------------------------------------
def init_params(key, inp, oup, expand_ratio, eps=1e-5):
    hidden = int(round(inp * expand_ratio))
    ks = list(jax.random.split(key, 15))
    k_iter = iter(ks)

    def u(shape, bound):
        return jax.random.uniform(next(k_iter), shape, jnp.float32, -bound, bound)

    # Raw conv weights (already transposed to matmul-friendly layouts).
    w1 = u((inp, hidden), 1.0 / math.sqrt(inp))       # 1x1 expand: (Cin, Chid)
    wdw = u((9, hidden), 1.0 / 3.0)                   # 3x3 depthwise taps: (9, Chid)
    w3 = u((hidden, oup), 1.0 / math.sqrt(hidden))    # 1x1 project: (Chid, Cout)

    def bn_fold(c):
        gamma = jax.random.uniform(next(k_iter), (c,), jnp.float32, 0.5, 1.5)
        beta = u((c,), 0.5)
        mean = u((c,), 0.5)
        var = jax.random.uniform(next(k_iter), (c,), jnp.float32, 0.5, 1.5)
        scale = gamma / jnp.sqrt(var + eps)
        shift = beta - mean * scale
        return scale, shift

    s1, t1 = bn_fold(hidden)
    s2, t2 = bn_fold(hidden)
    s3, t3 = bn_fold(oup)

    return {
        "w1": w1 * s1[None, :],
        "b1": t1.reshape(1, hidden),
        "wdw": wdw * s2[None, :],
        "bdw": t2.reshape(1, hidden),
        "w3": w3 * s3[None, :],
        "b3": t3.reshape(1, oup),
    }


# ----------------------------------------------------------------------------
if __name__ == "__main__":
    INP = 32
    OUP = 32
    EXPAND_RATIO = 4          # hidden_dim = 128 (lane-dense)
    STRIDE = 1
    B, H, W = 2, 16, 16
    use_res = (STRIDE == 1 and INP == OUP)

    key = jax.random.PRNGKey(0)
    k_params, k_x = jax.random.split(key)
    params = init_params(k_params, INP, OUP, EXPAND_RATIO)
    x = jax.random.normal(k_x, (B, INP, H, W), jnp.float32)   # NCHW, like PyTorch

    out = inverted_residual_forward(x, params, stride=STRIDE, use_res_connect=use_res)
    out = jax.block_until_ready(out)
    assert out.shape == (B, OUP, H, W), out.shape

    ref = jax.block_until_ready(_ref_forward(x, params, use_res_connect=use_res))
    err = float(jnp.max(jnp.abs(out - ref)))
    assert jnp.allclose(out, ref, rtol=1e-4, atol=1e-4), f"mismatch vs. reference: {err}"

    print("KERNEL_OK")
</pallas_src>

<mosaic_0001>
module attributes {stable_mosaic.version = 11 : i64} {
  func.func @_inverted_residual_kernel(%arg0: i32, %arg1: memref<2x16x16x32xf32, #tpu.memory_space<vmem>>, %arg2: memref<32x128xf32, #tpu.memory_space<vmem>>, %arg3: memref<1x128xf32, #tpu.memory_space<vmem>>, %arg4: memref<9x128xf32, #tpu.memory_space<vmem>>, %arg5: memref<1x128xf32, #tpu.memory_space<vmem>>, %arg6: memref<128x32xf32, #tpu.memory_space<vmem>>, %arg7: memref<1x32xf32, #tpu.memory_space<vmem>>, %arg8: memref<2x16x16x32xf32, #tpu.memory_space<vmem>>, %arg9: memref<2x18x18x128xf32, #tpu.memory_space<vmem>>) attributes {dimension_semantics = [#tpu.dimension_semantics<arbitrary>], iteration_bounds = array<i64: 1>, scalar_prefetch = 0 : i64, scratch_operands = 1 : i64, tpu.core_type = #tpu.core_type<tc>, window_params = [{pipeline_mode = #tpu.pipeline_mode<synchronous>, transform_indices = @transform_0, window_bounds = array<i64: 2, 16, 16, 32>}, {pipeline_mode = #tpu.pipeline_mode<synchronous>, transform_indices = @transform_1, window_bounds = array<i64: 32, 128>}, {pipeline_mode = #tpu.pipeline_mode<synchronous>, transform_indices = @transform_2, window_bounds = array<i64: 1, 128>}, {pipeline_mode = #tpu.pipeline_mode<synchronous>, transform_indices = @transform_3, window_bounds = array<i64: 9, 128>}, {pipeline_mode = #tpu.pipeline_mode<synchronous>, transform_indices = @transform_4, window_bounds = array<i64: 1, 128>}, {pipeline_mode = #tpu.pipeline_mode<synchronous>, transform_indices = @transform_5, window_bounds = array<i64: 128, 32>}, {pipeline_mode = #tpu.pipeline_mode<synchronous>, transform_indices = @transform_6, window_bounds = array<i64: 1, 32>}, {pipeline_mode = #tpu.pipeline_mode<synchronous>, transform_indices = @transform_7, window_bounds = array<i64: 2, 16, 16, 32>}]} {
    %c0 = arith.constant 0 : index
    %c0_0 = arith.constant 0 : index
    %c0_1 = arith.constant 0 : index
    %c0_2 = arith.constant 0 : index
    %0 = vector.load %arg1[%c0, %c0_0, %c0_1, %c0_2] : memref<2x16x16x32xf32, #tpu.memory_space<vmem>>, vector<2x16x16x32xf32>
    %1 = vector.shape_cast %0 : vector<2x16x16x32xf32> to vector<512x32xf32>
    %c0_3 = arith.constant 0 : index
    %c0_4 = arith.constant 0 : index
    %2 = vector.load %arg2[%c0_3, %c0_4] : memref<32x128xf32, #tpu.memory_space<vmem>>, vector<32x128xf32>
    %cst = arith.constant dense<0.000000e+00> : vector<512x128xf32>
    %3 = tpu.matmul %1, %2, %cst {dimension_numbers = #tpu.dot_dimension_numbers<[1], [0], [0], [1], [0, 0, 1, 1], [], []>} : vector<512x32xf32>, vector<32x128xf32>, vector<512x128xf32> -> vector<512x128xf32>
    %c0_5 = arith.constant 0 : index
    %c0_6 = arith.constant 0 : index
    %4 = vector.load %arg3[%c0_5, %c0_6] : memref<1x128xf32, #tpu.memory_space<vmem>>, vector<1x128xf32>
    %5 = vector.broadcast %4 : vector<1x128xf32> to vector<512x128xf32>
    %6 = arith.addf %3, %5 : vector<512x128xf32>
    %cst_7 = arith.constant 0.000000e+00 : f32
    %cst_8 = arith.constant 6.000000e+00 : f32
    %7 = vector.broadcast %cst_7 : f32 to vector<512x128xf32>
    %8 = arith.maximumf %7, %6 : vector<512x128xf32>
    %9 = vector.broadcast %cst_8 : f32 to vector<512x128xf32>
    %10 = arith.minimumf %9, %8 : vector<512x128xf32>
    %11 = vector.shape_cast %10 : vector<512x128xf32> to vector<2x16x16x128xf32>
    %cst_9 = arith.constant 0.000000e+00 : f32
    %12 = vector.broadcast %cst_9 : f32 to vector<2x18x18x128xf32>
    %c0_10 = arith.constant 0 : index
    %c0_11 = arith.constant 0 : index
    %c0_12 = arith.constant 0 : index
    %c0_13 = arith.constant 0 : index
    %13 = vector.load %arg9[%c0_10, %c0_11, %c0_12, %c0_13] : memref<2x18x18x128xf32, #tpu.memory_space<vmem>>, vector<2x18x18x128xf32>
    tpu.vector_store %arg9[%c0_10, %c0_11, %c0_12, %c0_13], %12 {strides = array<i32>} : memref<2x18x18x128xf32, #tpu.memory_space<vmem>>, vector<2x18x18x128xf32>,
    %c0_14 = arith.constant 0 : index
    %c1 = arith.constant 1 : index
    %c1_15 = arith.constant 1 : index
    %c0_16 = arith.constant 0 : index
    %14 = vector.load %arg9[%c0_14, %c1, %c1_15, %c0_16] : memref<2x18x18x128xf32, #tpu.memory_space<vmem>>, vector<2x16x16x128xf32>
    tpu.vector_store %arg9[%c0_14, %c1, %c1_15, %c0_16], %11 {strides = array<i32>} : memref<2x18x18x128xf32, #tpu.memory_space<vmem>>, vector<2x16x16x128xf32>,
    %cst_17 = arith.constant 0.000000e+00 : f32
    %15 = vector.broadcast %cst_17 : f32 to vector<2x16x16x128xf32>
    %c0_18 = arith.constant 0 : index
    %c0_19 = arith.constant 0 : index
    %16 = vector.load %arg4[%c0_18, %c0_19] : memref<9x128xf32, #tpu.memory_space<vmem>>, vector<1x128xf32>
    %17 = vector.shape_cast %16 : vector<1x128xf32> to vector<1x1x1x128xf32>
    %c0_20 = arith.constant 0 : index
    %c0_21 = arith.constant 0 : index
    %c0_22 = arith.constant 0 : index
    %c0_23 = arith.constant 0 : index
    %18 = vector.load %arg9[%c0_20, %c0_21, %c0_22, %c0_23] : memref<2x18x18x128xf32, #tpu.memory_space<vmem>>, vector<2x16x16x128xf32>
    %19 = vector.broadcast %17 : vector<1x1x1x128xf32> to vector<2x16x16x128xf32>
    %20 = arith.mulf %18, %19 : vector<2x16x16x128xf32>
    %21 = arith.addf %15, %20 : vector<2x16x16x128xf32>
    %c1_24 = arith.constant 1 : index
    %c0_25 = arith.constant 0 : index
    %22 = vector.load %arg4[%c1_24, %c0_25] : memref<9x128xf32, #tpu.memory_space<vmem>>, vector<1x128xf32>
    %23 = vector.shape_cast %22 : vector<1x128xf32> to vector<1x1x1x128xf32>
    %c0_26 = arith.constant 0 : index
    %c0_27 = arith.constant 0 : index
    %c1_28 = arith.constant 1 : index
    %c0_29 = arith.constant 0 : index
    %24 = vector.load %arg9[%c0_26, %c0_27, %c1_28, %c0_29] : memref<2x18x18x128xf32, #tpu.memory_space<vmem>>, vector<2x16x16x128xf32>
    %25 = vector.broadcast %23 : vector<1x1x1x128xf32> to vector<2x16x16x128xf32>
    %26 = arith.mulf %24, %25 : vector<2x16x16x128xf32>
    %27 = arith.addf %21, %26 : vector<2x16x16x128xf32>
    %c2 = arith.constant 2 : index
    %c0_30 = arith.constant 0 : index
    %28 = vector.load %arg4[%c2, %c0_30] : memref<9x128xf32, #tpu.memory_space<vmem>>, vector<1x128xf32>
    %29 = vector.shape_cast %28 : vector<1x128xf32> to vector<1x1x1x128xf32>
    %c0_31 = arith.constant 0 : index
    %c0_32 = arith.constant 0 : index
    %c2_33 = arith.constant 2 : index
    %c0_34 = arith.constant 0 : index
    %30 = vector.load %arg9[%c0_31, %c0_32, %c2_33, %c0_34] : memref<2x18x18x128xf32, #tpu.memory_space<vmem>>, vector<2x16x16x128xf32>
    %31 = vector.broadcast %29 : vector<1x1x1x128xf32> to vector<2x16x16x128xf32>
    %32 = arith.mulf %30, %31 : vector<2x16x16x128xf32>
    %33 = arith.addf %27, %32 : vector<2x16x16x128xf32>
    %c3 = arith.constant 3 : index
    %c0_35 = arith.constant 0 : index
    %34 = vector.load %arg4[%c3, %c0_35] : memref<9x128xf32, #tpu.memory_space<vmem>>, vector<1x128xf32>
    %35 = vector.shape_cast %34 : vector<1x128xf32> to vector<1x1x1x128xf32>
    %c0_36 = arith.constant 0 : index
    %c1_37 = arith.constant 1 : index
    %c0_38 = arith.constant 0 : index
    %c0_39 = arith.constant 0 : index
    %36 = vector.load %arg9[%c0_36, %c1_37, %c0_38, %c0_39] : memref<2x18x18x128xf32, #tpu.memory_space<vmem>>, vector<2x16x16x128xf32>
    %37 = vector.broadcast %35 : vector<1x1x1x128xf32> to vector<2x16x16x128xf32>
    %38 = arith.mulf %36, %37 : vector<2x16x16x128xf32>
    %39 = arith.addf %33, %38 : vector<2x16x16x128xf32>
    %c4 = arith.constant 4 : index
    %c0_40 = arith.constant 0 : index
    %40 = vector.load %arg4[%c4, %c0_40] : memref<9x128xf32, #tpu.memory_space<vmem>>, vector<1x128xf32>
    %41 = vector.shape_cast %40 : vector<1x128xf32> to vector<1x1x1x128xf32>
    %c0_41 = arith.constant 0 : index
    %c1_42 = arith.constant 1 : index
    %c1_43 = arith.constant 1 : index
    %c0_44 = arith.constant 0 : index
    %42 = vector.load %arg9[%c0_41, %c1_42, %c1_43, %c0_44] : memref<2x18x18x128xf32, #tpu.memory_space<vmem>>, vector<2x16x16x128xf32>
    %43 = vector.broadcast %41 : vector<1x1x1x128xf32> to vector<2x16x16x128xf32>
    %44 = arith.mulf %42, %43 : vector<2x16x16x128xf32>
    %45 = arith.addf %39, %44 : vector<2x16x16x128xf32>
    %c5 = arith.constant 5 : index
    %c0_45 = arith.constant 0 : index
    %46 = vector.load %arg4[%c5, %c0_45] : memref<9x128xf32, #tpu.memory_space<vmem>>, vector<1x128xf32>
    %47 = vector.shape_cast %46 : vector<1x128xf32> to vector<1x1x1x128xf32>
    %c0_46 = arith.constant 0 : index
    %c1_47 = arith.constant 1 : index
    %c2_48 = arith.constant 2 : index
    %c0_49 = arith.constant 0 : index
    %48 = vector.load %arg9[%c0_46, %c1_47, %c2_48, %c0_49] : memref<2x18x18x128xf32, #tpu.memory_space<vmem>>, vector<2x16x16x128xf32>
    %49 = vector.broadcast %47 : vector<1x1x1x128xf32> to vector<2x16x16x128xf32>
    %50 = arith.mulf %48, %49 : vector<2x16x16x128xf32>
    %51 = arith.addf %45, %50 : vector<2x16x16x128xf32>
    %c6 = arith.constant 6 : index
    %c0_50 = arith.constant 0 : index
    %52 = vector.load %arg4[%c6, %c0_50] : memref<9x128xf32, #tpu.memory_space<vmem>>, vector<1x128xf32>
    %53 = vector.shape_cast %52 : vector<1x128xf32> to vector<1x1x1x128xf32>
    %c0_51 = arith.constant 0 : index
    %c2_52 = arith.constant 2 : index
    %c0_53 = arith.constant 0 : index
    %c0_54 = arith.constant 0 : index
    %54 = vector.load %arg9[%c0_51, %c2_52, %c0_53, %c0_54] : memref<2x18x18x128xf32, #tpu.memory_space<vmem>>, vector<2x16x16x128xf32>
    %55 = vector.broadcast %53 : vector<1x1x1x128xf32> to vector<2x16x16x128xf32>
    %56 = arith.mulf %54, %55 : vector<2x16x16x128xf32>
    %57 = arith.addf %51, %56 : vector<2x16x16x128xf32>
    %c7 = arith.constant 7 : index
    %c0_55 = arith.constant 0 : index
    %58 = vector.load %arg4[%c7, %c0_55] : memref<9x128xf32, #tpu.memory_space<vmem>>, vector<1x128xf32>
    %59 = vector.shape_cast %58 : vector<1x128xf32> to vector<1x1x1x128xf32>
    %c0_56 = arith.constant 0 : index
    %c2_57 = arith.constant 2 : index
    %c1_58 = arith.constant 1 : index
    %c0_59 = arith.constant 0 : index
    %60 = vector.load %arg9[%c0_56, %c2_57, %c1_58, %c0_59] : memref<2x18x18x128xf32, #tpu.memory_space<vmem>>, vector<2x16x16x128xf32>
    %61 = vector.broadcast %59 : vector<1x1x1x128xf32> to vector<2x16x16x128xf32>
    %62 = arith.mulf %60, %61 : vector<2x16x16x128xf32>
    %63 = arith.addf %57, %62 : vector<2x16x16x128xf32>
    %c8 = arith.constant 8 : index
    %c0_60 = arith.constant 0 : index
    %64 = vector.load %arg4[%c8, %c0_60] : memref<9x128xf32, #tpu.memory_space<vmem>>, vector<1x128xf32>
    %65 = vector.shape_cast %64 : vector<1x128xf32> to vector<1x1x1x128xf32>
    %c0_61 = arith.constant 0 : index
    %c2_62 = arith.constant 2 : index
    %c2_63 = arith.constant 2 : index
    %c0_64 = arith.constant 0 : index
    %66 = vector.load %arg9[%c0_61, %c2_62, %c2_63, %c0_64] : memref<2x18x18x128xf32, #tpu.memory_space<vmem>>, vector<2x16x16x128xf32>
    %67 = vector.broadcast %65 : vector<1x1x1x128xf32> to vector<2x16x16x128xf32>
    %68 = arith.mulf %66, %67 : vector<2x16x16x128xf32>
    %69 = arith.addf %63, %68 : vector<2x16x16x128xf32>
    %c0_65 = arith.constant 0 : index
    %c0_66 = arith.constant 0 : index
    %70 = vector.load %arg5[%c0_65, %c0_66] : memref<1x128xf32, #tpu.memory_space<vmem>>, vector<1x128xf32>
    %71 = vector.shape_cast %70 : vector<1x128xf32> to vector<1x1x1x128xf32>
    %72 = vector.broadcast %71 : vector<1x1x1x128xf32> to vector<2x16x16x128xf32>
    %73 = arith.addf %69, %72 : vector<2x16x16x128xf32>
    %cst_67 = arith.constant 0.000000e+00 : f32
    %cst_68 = arith.constant 6.000000e+00 : f32
    %74 = vector.broadcast %cst_67 : f32 to vector<2x16x16x128xf32>
    %75 = arith.maximumf %74, %73 : vector<2x16x16x128xf32>
    %76 = vector.broadcast %cst_68 : f32 to vector<2x16x16x128xf32>
    %77 = arith.minimumf %76, %75 : vector<2x16x16x128xf32>
    %78 = vector.shape_cast %77 : vector<2x16x16x128xf32> to vector<512x128xf32>
    %c0_69 = arith.constant 0 : index
    %c0_70 = arith.constant 0 : index
    %79 = vector.load %arg6[%c0_69, %c0_70] : memref<128x32xf32, #tpu.memory_space<vmem>>, vector<128x32xf32>
    %cst_71 = arith.constant dense<0.000000e+00> : vector<512x32xf32>
    %80 = tpu.matmul %78, %79, %cst_71 {dimension_numbers = #tpu.dot_dimension_numbers<[1], [0], [0], [1], [0, 0, 1, 1], [], []>} : vector<512x128xf32>, vector<128x32xf32>, vector<512x32xf32> -> vector<512x32xf32>
    %c0_72 = arith.constant 0 : index
    %c0_73 = arith.constant 0 : index
    %81 = vector.load %arg7[%c0_72, %c0_73] : memref<1x32xf32, #tpu.memory_space<vmem>>, vector<1x32xf32>
    %82 = vector.broadcast %81 : vector<1x32xf32> to vector<512x32xf32>
    %83 = arith.addf %80, %82 : vector<512x32xf32>
    %84 = vector.shape_cast %83 : vector<512x32xf32> to vector<2x16x16x32xf32>
    %85 = arith.addf %84, %0 : vector<2x16x16x32xf32>
    %c0_74 = arith.constant 0 : index
    %c0_75 = arith.constant 0 : index
    %c0_76 = arith.constant 0 : index
    %c0_77 = arith.constant 0 : index
    %86 = vector.load %arg8[%c0_74, %c0_75, %c0_76, %c0_77] : memref<2x16x16x32xf32, #tpu.memory_space<vmem>>, vector<2x16x16x32xf32>
    tpu.vector_store %arg8[%c0_74, %c0_75, %c0_76, %c0_77], %85 {strides = array<i32>} : memref<2x16x16x32xf32, #tpu.memory_space<vmem>>, vector<2x16x16x32xf32>,
    return
  }
  func.func @transform_0(%arg0: i32) -> (i32, i32, i32, i32) {
    %c0_i32 = arith.constant 0 : i32
    %c0_i32_0 = arith.constant 0 : i32
    %c0_i32_1 = arith.constant 0 : i32
    %c0_i32_2 = arith.constant 0 : i32
    %c0_i32_3 = arith.constant 0 : i32
    return %c0_i32, %c0_i32_0, %c0_i32_1, %c0_i32_2 : i32, i32, i32, i32
  }
  func.func @transform_1(%arg0: i32) -> (i32, i32) {
    %c0_i32 = arith.constant 0 : i32
    %c0_i32_0 = arith.constant 0 : i32
    %c0_i32_1 = arith.constant 0 : i32
    return %c0_i32, %c0_i32_0 : i32, i32
  }
  func.func @transform_2(%arg0: i32) -> (i32, i32) {
    %c0_i32 = arith.constant 0 : i32
    %c0_i32_0 = arith.constant 0 : i32
    %c0_i32_1 = arith.constant 0 : i32
    return %c0_i32, %c0_i32_0 : i32, i32
  }
  func.func @transform_3(%arg0: i32) -> (i32, i32) {
    %c0_i32 = arith.constant 0 : i32
    %c0_i32_0 = arith.constant 0 : i32
    %c0_i32_1 = arith.constant 0 : i32
    return %c0_i32, %c0_i32_0 : i32, i32
  }
  func.func @transform_4(%arg0: i32) -> (i32, i32) {
    %c0_i32 = arith.constant 0 : i32
    %c0_i32_0 = arith.constant 0 : i32
    %c0_i32_1 = arith.constant 0 : i32
    return %c0_i32, %c0_i32_0 : i32, i32
  }
  func.func @transform_5(%arg0: i32) -> (i32, i32) {
    %c0_i32 = arith.constant 0 : i32
    %c0_i32_0 = arith.constant 0 : i32
    %c0_i32_1 = arith.constant 0 : i32
    return %c0_i32, %c0_i32_0 : i32, i32
  }
  func.func @transform_6(%arg0: i32) -> (i32, i32) {
    %c0_i32 = arith.constant 0 : i32
    %c0_i32_0 = arith.constant 0 : i32
    %c0_i32_1 = arith.constant 0 : i32
    return %c0_i32, %c0_i32_0 : i32, i32
  }
  func.func @transform_7(%arg0: i32) -> (i32, i32, i32, i32) {
    %c0_i32 = arith.constant 0 : i32
    %c0_i32_0 = arith.constant 0 : i32
    %c0_i32_1 = arith.constant 0 : i32
    %c0_i32_2 = arith.constant 0 : i32
    %c0_i32_3 = arith.constant 0 : i32
    return %c0_i32, %c0_i32_0, %c0_i32_1, %c0_i32_2 : i32, i32, i32, i32
  }
}

</mosaic_0001>

<bundles_post_ra>
// kernel: tpu_custom_call.1
= control target key start
LH: loop header
LB: loop body
LE: loop exit
PB: predicated region body
PF: predicated region fallthrough
CT: control target
= control target key end

     0   :  { %12 = vsyncpa [#allocation4], 0  ;;  %s6668_s0 = inlined_call_operand.hbm [shape: f32[2,16,16,32], index: 0, kind: input, shape index: {}]   ;;  %s6669_s1 = inlined_call_operand.vmem [shape: f32[32,128], index: 1, kind: input, shape index: {}]   ;;  %s6670_s2 = inlined_call_operand.vmem [shape: f32[1,128], index: 2, kind: input, shape index: {}]   ;;  %s6671_s3 = inlined_call_operand.vmem [shape: f32[9,128], index: 3, kind: input, shape index: {}]   ;;  %s6672_s4 = inlined_call_operand.vmem [shape: f32[1,128], index: 4, kind: input, shape index: {}]   ;;  %s6673_s5 = inlined_call_operand.vmem [shape: f32[128,32], index: 5, kind: input, shape index: {}]   ;;  %s6674_s6 = inlined_call_operand.vmem [shape: f32[1,32], index: 6, kind: input, shape index: {}]   ;;  %s6675_s7 = inlined_call_operand.hbm [shape: f32[2,16,16,32], index: 7, kind: output, shape index: {}]  }
   0x1   :  { %13 = vsyncpa [#allocation5], 0  ;;  %s4184_s24 = smov [#allocation3]   ;;  %s4136_s28 = scalar_lea.hbm %s6668_s0, 8192 }
   0x2   :  { %s19_s25 = sshll.u32 %s4184_s24, 4  ;;  %p4137_p0 = scmp.ne.s32.totalorder %s6668_s0, %s4136_s28  ;;  %s20_s25 = int_to_ptr.vmem [resolvable:$true] %s19_s25 }
   0x3   :  { %p4140_p1 = scmp.lt.u32.totalorder %s4136_s28, %s6668_s0 }
   0x5   :  { %p4142_p2 = pnand %p4140_p1, %p4137_p0 }
   0x7   :  { %4145 = shalt.err (!%p4142_p2)
}
   0x8   :  { %s4146_s10 = scalar_lea.vmem %s20_s25, 8192  ;;  %p4151_p4 = scmp.lt.s32.totalorder %s20_s25, %s20_s25 }
   0x9   :  { %p4147_p3 = scmp.ne.s32.totalorder %s20_s25, %s4146_s10  ;;  %p4152_p5 = scmp.lt.s32.totalorder %s4146_s10, %s4146_s10 }
   0xb   :  { %p4153_p6 = por %p4152_p5, %p4151_p4 }
   0xd   :  { %p4154_p7 = pnand %p4153_p6, %p4147_p3 }
   0xf   :  { %4157 = shalt.err (!%p4154_p7)
}
  0x10   :  { %s4185_s11 = smov 128   ;;  %s4186_s12 = smov 8  }
  0x11   :  { %25 = dma.hbm_to_vmem [thread:$0]  %s6668_s0, 8192, %s20_s25, [#allocation4], %s4185_s11, %s4185_s11, %s4186_s12  }
  0x12   :  { %4180 = dma.done.wait [#allocation4], 8192  }
  0x13   :  { %4181 = vsyncadd [#allocation4], 4294959104  ;;  %vm116_vm0 = vcmask 261120   ;;  %v105_v0 = vld [vmem:[%s6669_s1] sm:$0xff]  ;;  %v106_v1 = vld [vmem:[%s6669_s1 + $0x8] sm:$0xff]  ;;  %v4187_v56 = vmov 0.0  }
  0x14   :  { %v107_v2 = vld [vmem:[%s6669_s1 + $0x10] sm:$0xff]  ;;  %v3977_v3 = vpack.c.bf16 %v106_v1, %v105_v0  ;;  %v108_v4 = vld [vmem:[%s6669_s1 + $0x18] sm:$0xff]  ;;  %v41_v5 = vld [vmem:[#allocation3] sm:$0xff]  ;;  %826 = vst [vmem:[#allocation2 + $0x20] sm:$0xff] %v4187_v56 }
  0x15   :  { %v3981_v6 = vpack.c.bf16 %v108_v4, %v107_v2  ;;  %3753 = vmatprep.mubr.msk.f32.mxu0 %vm116_vm0, %v41_v5  ;;  %v42_v7 = vld [vmem:[#allocation3 + $0x8] sm:$0xff]  ;;  %v43_v8 = vld [vmem:[#allocation3 + $0x10] sm:$0xff]  ;;  %v44_v9 = vld [vmem:[#allocation3 + $0x18] sm:$0xff]  ;;  %827 = vst [vmem:[#allocation2 + $0x28] sm:$0x3] %v4187_v56 }
  0x16   :  { %3978 = vmatprep.subr.bf16.mxu0 %v3977_v3  ;;  %v45_v10 = vld [vmem:[#allocation3 + $0x20] sm:$0xff]  ;;  %v46_v11 = vld [vmem:[#allocation3 + $0x28] sm:$0xff]  ;;  %v47_v12 = vld [vmem:[#allocation3 + $0x30] sm:$0xff]  ;;  %822 = vst [vmem:[#allocation2] sm:$0xff] %v4187_v56 }
  0x17   :  { %3980 = vmatpush3.bf16.msra.mxu0 %v3977_v3  ;;  %v48_v13 = vld [vmem:[#allocation3 + $0x38] sm:$0xff]  ;;  %v49_v14 = vld [vmem:[#allocation3 + $0x40] sm:$0xff]  ;;  %v50_v15 = vld [vmem:[#allocation3 + $0x48] sm:$0xff]  ;;  %823 = vst [vmem:[#allocation2 + $0x8] sm:$0xff] %v4187_v56 }
  0x18   :  { %3982 = vmatprep.subr.bf16.mxu0 %v3981_v6  ;;  %v51_v16 = vld [vmem:[#allocation3 + $0x50] sm:$0xff]  ;;  %v52_v17 = vld [vmem:[#allocation3 + $0x58] sm:$0xff]  ;;  %v53_v18 = vld [vmem:[#allocation3 + $0x60] sm:$0xff]  ;;  %824 = vst [vmem:[#allocation2 + $0x10] sm:$0x3] %v4187_v56 }
  0x19   :  { %v54_v19 = vld [vmem:[#allocation3 + $0x68] sm:$0xff]  ;;  %v55_v20 = vld [vmem:[#allocation3 + $0x70] sm:$0xff]  ;;  %v56_v21 = vld [vmem:[#allocation3 + $0x78] sm:$0xff]  ;;  %825 = vst [vmem:[#allocation2 + $0x18] sm:$0xff] %v4187_v56 }
  0x1a   :  { %v57_v22 = vld [vmem:[#allocation3 + $0x80] sm:$0xff]  ;;  %v58_v23 = vld [vmem:[#allocation3 + $0x88] sm:$0xff]  ;;  %v59_v24 = vld [vmem:[#allocation3 + $0x90] sm:$0xff]  ;;  %828 = vst [vmem:[#allocation2 + $0x30] sm:$0xff] %v4187_v56 }
  0x1b   :  { %3984 = vmatpush3.bf16.msra.mxu0 %v3981_v6  ;;  %v60_v25 = vld [vmem:[#allocation3 + $0x98] sm:$0xff]  ;;  %v61_v26 = vld [vmem:[#allocation3 + $0xa0] sm:$0xff]  ;;  %v62_v27 = vld [vmem:[#allocation3 + $0xa8] sm:$0xff]  ;;  %829 = vst [vmem:[#allocation2 + $0x38] sm:$0xff] %v4187_v56 }
  0x1c   :  { %v63_v28 = vld [vmem:[#allocation3 + $0xb0] sm:$0xff]  ;;  %v64_v29 = vld [vmem:[#allocation3 + $0xb8] sm:$0xff]  ;;  %v65_v30 = vld [vmem:[#allocation3 + $0xc0] sm:$0xff]  ;;  %830 = vst [vmem:[#allocation2 + $0x40] sm:$0x3] %v4187_v56 }
  0x1d   :  { %v66_v31 = vld [vmem:[#allocation3 + $0xc8] sm:$0xff]  ;;  %v67_v32 = vld [vmem:[#allocation3 + $0xd0] sm:$0xff]  ;;  %v68_v33 = vld [vmem:[#allocation3 + $0xd8] sm:$0xff]  ;;  %831 = vst [vmem:[#allocation2 + $0x48] sm:$0xff] %v4187_v56 }
  0x1e   :  { %3754 = vmatmul.mubr.msk.f32.vlgmr.msra.gmra.mrb[0].mxu0 %vm116_vm0, %v42_v7  ;;  %v69_v34 = vld [vmem:[#allocation3 + $0xe0] sm:$0xff]  ;;  %v70_v35 = vld [vmem:[#allocation3 + $0xe8] sm:$0xff]  ;;  %v71_v36 = vld [vmem:[#allocation3 + $0xf0] sm:$0xff]  ;;  %832 = vst [vmem:[#allocation2 + $0x50] sm:$0xff] %v4187_v56 }
  0x1f   :  { %3756 = vmatprep.mubr.msk.f32.mxu0 %vm116_vm0, %v43_v8  ;;  %v72_v37 = vld [vmem:[#allocation3 + $0xf8] sm:$0xff]  ;;  %v73_v38 = vld [vmem:[#allocation3 + $0x100] sm:$0xff]  ;;  %v74_v39 = vld [vmem:[#allocation3 + $0x108] sm:$0xff]  ;;  %833 = vst [vmem:[#allocation2 + $0x58] sm:$0x3] %v4187_v56 }
  0x20   :  { %v75_v40 = vld [vmem:[#allocation3 + $0x110] sm:$0xff]  ;;  %v76_v41 = vld [vmem:[#allocation3 + $0x118] sm:$0xff]  ;;  %v77_v42 = vld [vmem:[#allocation3 + $0x120] sm:$0xff]  ;;  %834 = vst [vmem:[#allocation2 + $0x60] sm:$0xff] %v4187_v56 }
  0x21   :  { %v78_v43 = vld [vmem:[#allocation3 + $0x128] sm:$0xff]  ;;  %v79_v44 = vld [vmem:[#allocation3 + $0x130] sm:$0xff]  ;;  %v80_v45 = vld [vmem:[#allocation3 + $0x138] sm:$0xff]  ;;  %835 = vst [vmem:[#allocation2 + $0x68] sm:$0xff] %v4187_v56 }
  0x22   :  { %3757 = vmatmul.mubr.msk.f32.gmra.mrb[2].mxu0 %vm116_vm0, %v44_v9  ;;  %v81_v46 = vld [vmem:[#allocation3 + $0x140] sm:$0xff]  ;;  %v82_v47 = vld [vmem:[#allocation3 + $0x148] sm:$0xff]  ;;  %v83_v48 = vld [vmem:[#allocation3 + $0x150] sm:$0xff]  ;;  %836 = vst [vmem:[#allocation2 + $0x70] sm:$0x3] %v4187_v56 }
  0x23   :  { %3759 = vmatprep.mubr.msk.f32.mxu0 %vm116_vm0, %v45_v10  ;;  %v84_v49 = vld [vmem:[#allocation3 + $0x158] sm:$0xff]  ;;  %v85_v50 = vld [vmem:[#allocation3 + $0x160] sm:$0xff]  ;;  %v4301_v51 = vld [vmem:[#allocation3 + $0x168] sm:$0xff]  ;;  %837 = vst [vmem:[#allocation2 + $0x78] sm:$0xff] %v4187_v56 }
  0x24   :  { %v2968_v52 = vld [vmem:[%s6673_s5] sm:$0xff]  ;;  %v2969_v53 = vld [vmem:[%s6673_s5 + $0x8] sm:$0xff]  ;;  %v4309_v54 = vld [vmem:[#allocation3 + $0x170] sm:$0xff]  ;;  %838 = vst [vmem:[#allocation2 + $0x80] sm:$0xff] %v4187_v56 }
  0x25   :  { %v4311_v55 = vpack.c.bf16 %v2969_v53, %v2968_v52  ;;  %839 = vst [vmem:[#allocation2 + $0x88] sm:$0x3] %v4187_v56  ;;  %840 = vst [vmem:[#allocation2 + $0x90] sm:$0xff] %v4187_v56  ;;  %v88_v57 = vld [vmem:[#allocation3 + $0x178] sm:$0xff]  ;;  %v2970_v58 = vld [vmem:[%s6673_s5 + $0x10] sm:$0xff] }
  0x26   :  { %3760 = vmatmul.mubr.msk.f32.gmra.mrb[4].mxu0 %vm116_vm0, %v46_v11  ;;  %841 = vst [vmem:[#allocation2 + $0x98] sm:$0xff] %v4187_v56  ;;  %842 = vst [vmem:[#allocation2 + $0xa0] sm:$0x3] %v4187_v56  ;;  %v2971_v59 = vld [vmem:[%s6673_s5 + $0x18] sm:$0xff]  ;;  %v89_v60 = vld [vmem:[#allocation3 + $0x180] sm:$0xff] }
  0x27   :  { %3762 = vmatprep.mubr.msk.f32.mxu0 %vm116_vm0, %v47_v12  ;;  %843 = vst [vmem:[#allocation2 + $0xa8] sm:$0xff] %v4187_v56  ;;  %844 = vst [vmem:[#allocation2 + $0xb0] sm:$0xff] %v4187_v56  ;;  %3986 = vmatprep.subr.bf16.mxu0 %v4311_v55  ;;  %v3989_v61 = vpack.c.bf16 %v2971_v59, %v2970_v58  ;;  %v90_v62 = vld [vmem:[#allocation3 + $0x188] sm:$0xff]  ;;  %v2972_v63 = vld [vmem:[%s6673_s5 + $0x20] sm:$0xff] }
  0x28   :  { %845 = vst [vmem:[#allocation2 + $0xb8] sm:$0x3] %v4187_v56  ;;  %846 = vst [vmem:[#allocation2 + $0xc0] sm:$0xff] %v4187_v56  ;;  %3988 = vmatpush3.bf16.msra.mxu0 %v4311_v55  ;;  %4017 = vmatprep.subr.bf16.mxu1 %v4311_v55  ;;  %v2973_v0 = vld [vmem:[%s6673_s5 + $0x28] sm:$0xff]  ;;  %v91_v1 = vld [vmem:[#allocation3 + $0x190] sm:$0xff] }
  0x29   :  { %847 = vst [vmem:[#allocation2 + $0xc8] sm:$0xff] %v4187_v56  ;;  %848 = vst [vmem:[#allocation2 + $0xd0] sm:$0x3] %v4187_v56  ;;  %4025 = vmatpush3.bf16.msra.mxu1 %v4311_v55  ;;  %3990 = vmatprep.subr.bf16.mxu0 %v3989_v61  ;;  %v3993_v2 = vpack.c.bf16 %v2973_v0, %v2972_v63  ;;  %v92_v3 = vld [vmem:[#allocation3 + $0x198] sm:$0xff]  ;;  %v2974_v4 = vld [vmem:[%s6673_s5 + $0x30] sm:$0xff] }
  0x2a   :  { %3763 = vmatmul.mubr.msk.f32.gmra.mrb[6].mxu0 %vm116_vm0, %v48_v13  ;;  %849 = vst [vmem:[#allocation2 + $0xd8] sm:$0xff] %v4187_v56  ;;  %850 = vst [vmem:[#allocation2 + $0xe0] sm:$0xff] %v4187_v56  ;;  %4018 = vmatprep.subr.bf16.mxu1 %v3989_v61  ;;  %v2975_v5 = vld [vmem:[%s6673_s5 + $0x38] sm:$0xff]  ;;  %v93_v6 = vld [vmem:[#allocation3 + $0x1a0] sm:$0xff] }
  0x2b   :  { %3765 = vmatprep.mubr.msk.f32.mxu0 %vm116_vm0, %v49_v14  ;;  %851 = vst [vmem:[#allocation2 + $0xe8] sm:$0x3] %v4187_v56  ;;  %852 = vst [vmem:[#allocation2 + $0xf0] sm:$0xff] %v4187_v56  ;;  %v3997_v7 = vpack.c.bf16 %v2975_v5, %v2974_v4  ;;  %v94_v8 = vld [vmem:[#allocation3 + $0x1a8] sm:$0xff]  ;;  %v2976_v9 = vld [vmem:[%s6673_s5 + $0x40] sm:$0xff] }
  0x2c   :  { %853 = vst [vmem:[#allocation2 + $0xf8] sm:$0xff] %v4187_v56  ;;  %854 = vst [vmem:[#allocation2 + $0x100] sm:$0x3] %v4187_v56  ;;  %3992 = vmatpush3.bf16.msra.mxu0 %v3989_v61  ;;  %v2977_v10 = vld [vmem:[%s6673_s5 + $0x48] sm:$0xff]  ;;  %v95_v11 = vld [vmem:[#allocation3 + $0x1b0] sm:$0xff] }
  0x2d   :  { %855 = vst [vmem:[#allocation2 + $0x108] sm:$0xff] %v4187_v56  ;;  %856 = vst [vmem:[#allocation2 + $0x110] sm:$0xff] %v4187_v56  ;;  %4026 = vmatpush3.bf16.msra.mxu1 %v3989_v61  ;;  %3994 = vmatprep.subr.bf16.mxu0 %v3993_v2  ;;  %v4001_v12 = vpack.c.bf16 %v2977_v10, %v2976_v9  ;;  %v96_v13 = vld [vmem:[#allocation3 + $0x1b8] sm:$0xff]  ;;  %v2978_v14 = vld [vmem:[%s6673_s5 + $0x50] sm:$0xff] }
  0x2e   :  { %3766 = vmatmul.mubr.msk.f32.gmra.mrb[8].mxu0 %vm116_vm0, %v50_v15  ;;  %857 = vst [vmem:[#allocation2 + $0x118] sm:$0x3] %v4187_v56  ;;  %858 = vst [vmem:[#allocation2 + $0x120] sm:$0xff] %v4187_v56  ;;  %4019 = vmatprep.subr.bf16.mxu1 %v3993_v2  ;;  %v2979_v15 = vld [vmem:[%s6673_s5 + $0x58] sm:$0xff]  ;;  %v4520_v61 = vld [vmem:[%s6671_s3 + $0x4] ss:$0 sm:$0xff] }
  0x2f   :  { %3768 = vmatprep.mubr.msk.f32.mxu0 %vm116_vm0, %v51_v16  ;;  %859 = vst [vmem:[#allocation2 + $0x128] sm:$0xff] %v4187_v56  ;;  %860 = vst [vmem:[#allocation2 + $0x130] sm:$0x3] %v4187_v56  ;;  %v97_v16 = vld [vmem:[#allocation3 + $0x1c0] sm:$0xff] }
  0x30   :  { %861 = vst [vmem:[#allocation2 + $0x138] sm:$0xff] %v4187_v56  ;;  %862 = vst [vmem:[#allocation2 + $0x140] sm:$0xff] %v4187_v56  ;;  %3996 = vmatpush3.bf16.msra.mxu0 %v3993_v2 }
  0x31   :  { %863 = vst [vmem:[#allocation2 + $0x148] sm:$0x3] %v4187_v56  ;;  %864 = vst [vmem:[#allocation2 + $0x150] sm:$0xff] %v4187_v56  ;;  %4027 = vmatpush3.bf16.msra.mxu1 %v3993_v2  ;;  %3998 = vmatprep.subr.bf16.mxu0 %v3997_v7 }
  0x32   :  { %3769 = vmatmul.mubr.msk.f32.gmra.mrb[10].mxu0 %vm116_vm0, %v52_v17  ;;  %865 = vst [vmem:[#allocation2 + $0x158] sm:$0xff] %v4187_v56  ;;  %866 = vst [vmem:[#allocation2 + $0x160] sm:$0x3] %v4187_v56  ;;  %4020 = vmatprep.subr.bf16.mxu1 %v3997_v7  ;;  %v4005_v17 = vpack.c.bf16 %v2979_v15, %v2978_v14 }
  0x33   :  { %3771 = vmatprep.mubr.msk.f32.mxu0 %vm116_vm0, %v53_v18  ;;  %867 = vst [vmem:[#allocation2 + $0x168] sm:$0xff] %v4187_v56  ;;  %868 = vst [vmem:[#allocation2 + $0x170] sm:$0xff] %v4187_v56  ;;  %v98_v18 = vld [vmem:[#allocation3 + $0x1c8] sm:$0xff] }
  0x34   :  { %869 = vst [vmem:[#allocation2 + $0x178] sm:$0x3] %v4187_v56  ;;  %870 = vst [vmem:[#allocation2 + $0x180] sm:$0xff] %v4187_v56  ;;  %4000 = vmatpush3.bf16.msra.mxu0 %v3997_v7 }
  0x35   :  { %871 = vst [vmem:[#allocation2 + $0x188] sm:$0xff] %v4187_v56  ;;  %872 = vst [vmem:[#allocation2 + $0x190] sm:$0x3] %v4187_v56  ;;  %4028 = vmatpush3.bf16.msra.mxu1 %v3997_v7  ;;  %4002 = vmatprep.subr.bf16.mxu0 %v4001_v12 }
  0x36   :  { %3772 = vmatmul.mubr.msk.f32.gmra.mrb[12].mxu0 %vm116_vm0, %v54_v19  ;;  %873 = vst [vmem:[#allocation2 + $0x198] sm:$0xff] %v4187_v56  ;;  %874 = vst [vmem:[#allocation2 + $0x1a0] sm:$0xff] %v4187_v56  ;;  %4021 = vmatprep.subr.bf16.mxu1 %v4001_v12  ;;  %v2980_v19 = vld [vmem:[%s6673_s5 + $0x60] sm:$0xff] }
  0x37   :  { %3774 = vmatprep.mubr.msk.f32.mxu0 %vm116_vm0, %v55_v20  ;;  %875 = vst [vmem:[#allocation2 + $0x1a8] sm:$0x3] %v4187_v56  ;;  %876 = vst [vmem:[#allocation2 + $0x1b0] sm:$0xff] %v4187_v56  ;;  %v2981_v20 = vld [vmem:[%s6673_s5 + $0x68] sm:$0xff] }
  0x38   :  { %877 = vst [vmem:[#allocation2 + $0x1b8] sm:$0xff] %v4187_v56  ;;  %878 = vst [vmem:[#allocation2 + $0x1c0] sm:$0x3] %v4187_v56  ;;  %4004 = vmatpush3.bf16.msra.mxu0 %v4001_v12 }
  0x39   :  { %879 = vst [vmem:[#allocation2 + $0x1c8] sm:$0xff] %v4187_v56  ;;  %880 = vst [vmem:[#allocation2 + $0x1d0] sm:$0xff] %v4187_v56  ;;  %4029 = vmatpush3.bf16.msra.mxu1 %v4001_v12  ;;  %4006 = vmatprep.subr.bf16.mxu0 %v4005_v17  ;;  %v4539_v12 = vld [vmem:[%s6671_s3 + $0x5] ss:$0 sm:$0xff] }
  0x3a   :  { %3775 = vmatmul.mubr.msk.f32.gmra.mrb[14].mxu0 %vm116_vm0, %v56_v21  ;;  %881 = vst [vmem:[#allocation2 + $0x1d8] sm:$0x3] %v4187_v56  ;;  %882 = vst [vmem:[#allocation2 + $0x1e0] sm:$0xff] %v4187_v56  ;;  %v99_v21 = vld [vmem:[#allocation3 + $0x1d0] sm:$0xff]  ;;  %4022 = vmatprep.subr.bf16.mxu1 %v4005_v17 }
  0x3b   :  { %3777 = vmatprep.mubr.msk.f32.mxu0 %vm116_vm0, %v57_v22  ;;  %883 = vst [vmem:[#allocation2 + $0x1e8] sm:$0xff] %v4187_v56  ;;  %884 = vst [vmem:[#allocation2 + $0x1f0] sm:$0x3] %v4187_v56  ;;  %v4009_v22 = vpack.c.bf16 %v2981_v20, %v2980_v19  ;;  %v4554_v19 = vld [vmem:[%s6671_s3 + $0x3] ss:$0 sm:$0xff] }
  0x3c   :  { %885 = vst [vmem:[#allocation2 + $0x1f8] sm:$0xff] %v4187_v56  ;;  %886 = vst [vmem:[#allocation2 + $0x200] sm:$0xff] %v4187_v56  ;;  %4008 = vmatpush3.bf16.msra.mxu0 %v4005_v17 }
  0x3d   :  { %887 = vst [vmem:[#allocation2 + $0x208] sm:$0x3] %v4187_v56  ;;  %888 = vst [vmem:[#allocation2 + $0x210] sm:$0xff] %v4187_v56  ;;  %4030 = vmatpush3.bf16.msra.mxu1 %v4005_v17  ;;  %4010 = vmatprep.subr.bf16.mxu0 %v4009_v22 }
  0x3e   :  { %3778 = vmatmul.mubr.msk.f32.gmra.mrb[16].mxu0 %vm116_vm0, %v58_v23  ;;  %889 = vst [vmem:[#allocation2 + $0x218] sm:$0xff] %v4187_v56  ;;  %890 = vst [vmem:[#allocation2 + $0x220] sm:$0x3] %v4187_v56  ;;  %v100_v23 = vld [vmem:[#allocation3 + $0x1d8] sm:$0xff]  ;;  %4023 = vmatprep.subr.bf16.mxu1 %v4009_v22 }
  0x3f   :  { %3780 = vmatprep.mubr.msk.f32.mxu0 %vm116_vm0, %v59_v24  ;;  %891 = vst [vmem:[#allocation2 + $0x228] sm:$0xff] %v4187_v56  ;;  %892 = vst [vmem:[#allocation2 + $0x230] sm:$0xff] %v4187_v56  ;;  %v2982_v24 = vld [vmem:[%s6673_s5 + $0x70] sm:$0xff] }
  0x40   :  { %893 = vst [vmem:[#allocation2 + $0x238] sm:$0x3] %v4187_v56  ;;  %894 = vst [vmem:[#allocation2 + $0x240] sm:$0xff] %v4187_v56  ;;  %4012 = vmatpush3.bf16.msra.mxu0 %v4009_v22 }
  0x41   :  { %895 = vst [vmem:[#allocation2 + $0x248] sm:$0xff] %v4187_v56  ;;  %896 = vst [vmem:[#allocation2 + $0x250] sm:$0x3] %v4187_v56  ;;  %4031 = vmatpush3.bf16.msra.mxu1 %v4009_v22 }
  0x42   :  { %3781 = vmatmul.mubr.msk.f32.gmra.mrb[18].mxu0 %vm116_vm0, %v60_v25  ;;  %897 = vst [vmem:[#allocation2 + $0x258] sm:$0xff] %v4187_v56  ;;  %898 = vst [vmem:[#allocation2 + $0x260] sm:$0xff] %v4187_v56  ;;  %v2983_v25 = vld [vmem:[%s6673_s5 + $0x78] sm:$0xff] }
  0x43   :  { %3783 = vmatprep.mubr.msk.f32.mxu0 %vm116_vm0, %v61_v26  ;;  %899 = vst [vmem:[#allocation2 + $0x268] sm:$0x3] %v4187_v56  ;;  %900 = vst [vmem:[#allocation2 + $0x270] sm:$0xff] %v4187_v56  ;;  %v101_v26 = vld [vmem:[#allocation3 + $0x1e0] sm:$0xff] }
  0x44   :  { %901 = vst [vmem:[#allocation2 + $0x278] sm:$0xff] %v4187_v56  ;;  %902 = vst [vmem:[#allocation2 + $0x280] sm:$0x3] %v4187_v56 }
  0x45   :  { %903 = vst [vmem:[#allocation2 + $0x288] sm:$0xff] %v4187_v56  ;;  %904 = vst [vmem:[#allocation2 + $0x290] sm:$0xff] %v4187_v56 }
  0x46   :  { %3784 = vmatmul.mubr.msk.f32.gmra.mrb[20].mxu0 %vm116_vm0, %v62_v27  ;;  %905 = vst [vmem:[#allocation2 + $0x298] sm:$0x3] %v4187_v56  ;;  %906 = vst [vmem:[#allocation2 + $0x2a0] sm:$0xff] %v4187_v56  ;;  %v4013_v27 = vpack.c.bf16 %v2983_v25, %v2982_v24 }
  0x47   :  { %3786 = vmatprep.mubr.msk.f32.mxu0 %vm116_vm0, %v63_v28  ;;  %907 = vst [vmem:[#allocation2 + $0x2a8] sm:$0xff] %v4187_v56  ;;  %908 = vst [vmem:[#allocation2 + $0x2b0] sm:$0x3] %v4187_v56  ;;  %v102_v28 = vld [vmem:[#allocation3 + $0x1e8] sm:$0xff] }
  0x48   :  { %909 = vst [vmem:[#allocation2 + $0x2b8] sm:$0xff] %v4187_v56  ;;  %910 = vst [vmem:[#allocation2 + $0x2c0] sm:$0xff] %v4187_v56  ;;  %4014 = vmatprep.subr.bf16.mxu0 %v4013_v27  ;;  %4024 = vmatprep.subr.bf16.mxu1 %v4013_v27 }
  0x49   :  { %911 = vst [vmem:[#allocation2 + $0x2c8] sm:$0x3] %v4187_v56  ;;  %912 = vst [vmem:[#allocation2 + $0x2d0] sm:$0xff] %v4187_v56  ;;  %4016 = vmatpush3.bf16.msra.mxu0 %v4013_v27  ;;  %4032 = vmatpush3.bf16.msra.mxu1 %v4013_v27 }
  0x4a   :  { %3787 = vmatmul.mubr.msk.f32.gmra.mrb[22].mxu0 %vm116_vm0, %v64_v29  ;;  %913 = vst [vmem:[#allocation2 + $0x2d8] sm:$0xff] %v4187_v56  ;;  %914 = vst [vmem:[#allocation2 + $0x2e0] sm:$0x3] %v4187_v56  ;;  %v103_v29 = vld [vmem:[#allocation3 + $0x1f0] sm:$0xff] }
  0x4b   :  { %3789 = vmatprep.mubr.msk.f32.mxu0 %vm116_vm0, %v65_v30  ;;  %915 = vst [vmem:[#allocation2 + $0x2e8] sm:$0xff] %v4187_v56  ;;  %916 = vst [vmem:[#allocation2 + $0x2f0] sm:$0xff] %v4187_v56  ;;  %v104_v30 = vld [vmem:[#allocation3 + $0x1f8] sm:$0xff] }
  0x4c   :  { %917 = vst [vmem:[#allocation2 + $0x2f8] sm:$0x3] %v4187_v56  ;;  %918 = vst [vmem:[#allocation2 + $0x300] sm:$0xff] %v4187_v56 }
  0x4d   :  { %919 = vst [vmem:[#allocation2 + $0x308] sm:$0xff] %v4187_v56  ;;  %920 = vst [vmem:[#allocation2 + $0x310] sm:$0x3] %v4187_v56 }
  0x4e   :  { %3790 = vmatmul.mubr.msk.f32.gmra.mrb[24].mxu0 %vm116_vm0, %v66_v31  ;;  %921 = vst [vmem:[#allocation2 + $0x318] sm:$0xff] %v4187_v56  ;;  %922 = vst [vmem:[#allocation2 + $0x320] sm:$0xff] %v4187_v56  ;;  %v4491_v31 = vld [vmem:[%s6670_s2] ss:$0 sm:$0xff] }
  0x4f   :  { %3792 = vmatprep.mubr.msk.f32.mxu0 %vm116_vm0, %v67_v32  ;;  %923 = vst [vmem:[#allocation2 + $0x328] sm:$0x3] %v4187_v56  ;;  %924 = vst [vmem:[#allocation2 + $0x330] sm:$0xff] %v4187_v56  ;;  %v4496_v32 = vld [vmem:[%s6671_s3] ss:$0 sm:$0xff] }
  0x50   :  { %925 = vst [vmem:[#allocation2 + $0x338] sm:$0xff] %v4187_v56  ;;  %926 = vst [vmem:[#allocation2 + $0x340] sm:$0x3] %v4187_v56 }
  0x51   :  { %927 = vst [vmem:[#allocation2 + $0x348] sm:$0xff] %v4187_v56  ;;  %928 = vst [vmem:[#allocation2 + $0x350] sm:$0xff] %v4187_v56 }
  0x52   :  { %3793 = vmatmul.mubr.msk.f32.gmra.mrb[26].mxu0 %vm116_vm0, %v68_v33  ;;  %929 = vst [vmem:[#allocation2 + $0x358] sm:$0x3] %v4187_v56  ;;  %v1193_v33 = vld [vmem:[#allocation2 + $0x1] sm:$0xff] }
  0x53   :  { %3795 = vmatprep.mubr.msk.f32.mxu0 %vm116_vm0, %v69_v34  ;;  %v1194_v34 = vld [vmem:[#allocation2 + $0x9] sm:$0xff] }
  0x56   :  { %3796 = vmatmul.mubr.msk.f32.gmra.mrb[28].mxu0 %vm116_vm0, %v70_v35 }
  0x57   :  { %3798 = vmatprep.mubr.msk.f32.mxu0 %vm116_vm0, %v71_v36  ;;  %v4501_v36 = vld [vmem:[%s6671_s3 + $0x1] ss:$0 sm:$0xff] }
  0x5a   :  { %3799 = vmatmul.mubr.msk.f32.gmra.mrb[30].mxu0 %vm116_vm0, %v72_v37 }
  0x5b   :  { %3801 = vmatprep.mubr.msk.f32.mxu0 %vm116_vm0, %v73_v38 }
  0x5e   :  { %3802 = vmatmul.mubr.msk.f32.gmra.mrb[32].mxu0 %vm116_vm0, %v74_v39  ;;  %v1064_v39 = vmul.f32 0.0, %v4496_v32 }
  0x5f   :  { %3804 = vmatprep.mubr.msk.f32.mxu0 %vm116_vm0, %v75_v40  ;;  %v1261_v40 = vmul.f32 %v4501_v36, %v1193_v33 }
  0x61   :  { %v1325_v52 = vadd.f32 %v1261_v40, %v1064_v39 }
  0x62   :  { %3805 = vmatmul.mubr.msk.f32.gmra.mrb[34].mxu0 %vm116_vm0, %v76_v41 }
  0x63   :  { %3807 = vmatprep.mubr.msk.f32.mxu0 %vm116_vm0, %v77_v42  ;;  %v4510_v42 = vld [vmem:[%s6671_s3 + $0x2] ss:$0 sm:$0xff] }
  0x66   :  { %3808 = vmatmul.mubr.msk.f32.gmra.mrb[36].mxu0 %vm116_vm0, %v78_v43  ;;  %v1390_v43 = vld [vmem:[#allocation2 + $0x2] sm:$0xff] }
  0x67   :  { %3810 = vmatprep.mubr.msk.f32.mxu0 %vm116_vm0, %v79_v44  ;;  %v1262_v44 = vmul.f32 %v4501_v36, %v1194_v34  ;;  %v1458_v53 = vmul.f32 %v4510_v42, %v1390_v43 }
  0x69   :  { %v1326_v56 = vadd.f32 %v1262_v44, %v1064_v39  ;;  %v1522_v4 = vadd.f32 %v1458_v53, %v1325_v52 }
  0x6a   :  { %3811 = vmatmul.mubr.msk.f32.gmra.mrb[38].mxu0 %vm116_vm0, %v80_v45 }
  0x6b   :  { %3813 = vmatprep.mubr.msk.f32.mxu0 %vm116_vm0, %v81_v46  ;;  %v1391_v46 = vld [vmem:[#allocation2 + $0xa] sm:$0xff] }
  0x6e   :  { %3814 = vmatmul.mubr.msk.f32.gmra.mrb[40].mxu0 %vm116_vm0, %v82_v47 }
  0x6f   :  { %3816 = vmatprep.mubr.msk.f32.mxu0 %vm116_vm0, %v83_v48 }
  0x72   :  { %3817 = vmatmul.mubr.msk.f32.gmra.mrb[42].mxu0 %vm116_vm0, %v84_v49 }
  0x73   :  { %3819 = vmatprep.mubr.msk.f32.mxu0 %vm116_vm0, %v85_v50 }
  0x76   :  { %3820 = vmatmul.mubr.msk.f32.gmra.mrb[44].mxu0 %vm116_vm0, %v4301_v51 }
  0x77   :  { %3822 = vmatprep.mubr.msk.f32.mxu0 %vm116_vm0, %v4309_v54 }
  0x7a   :  { %3823 = vmatmul.mubr.msk.f32.gmra.mrb[46].mxu0 %vm116_vm0, %v88_v57  ;;  %v1459_v57 = vmul.f32 %v4510_v42, %v1391_v46 }
  0x7b   :  { %3825 = vmatprep.mubr.msk.f32.mxu0 %vm116_vm0, %v89_v60 }
  0x7c   :  { %v1523_v5 = vadd.f32 %v1459_v57, %v1326_v56 }
  0x7e   :  { %3826 = vmatmul.mubr.msk.f32.gmra.mrb[48].mxu0 %vm116_vm0, %v90_v62 }
  0x7f   :  { %3828 = vmatprep.mubr.msk.f32.mxu0 %vm116_vm0, %v91_v1  ;;  %v4526_v1 = vld [vmem:[%s6671_s3 + $0x7] ss:$0 sm:$0xff] }
  0x82   :  { %3829 = vmatmul.mubr.msk.f32.gmra.mrb[50].mxu0 %vm116_vm0, %v92_v3 }
  0x83   :  { %3831 = vmatprep.mubr.msk.f32.mxu0 %vm116_vm0, %v93_v6 }
  0x86   :  { %3832 = vmatmul.mubr.msk.f32.gmra.mrb[52].mxu0 %vm116_vm0, %v94_v8 }
  0x87   :  { %3834 = vmatprep.mubr.msk.f32.mxu0 %vm116_vm0, %v95_v11 }
  0x8a   :  { %3835 = vmatmul.mubr.msk.f32.gmra.mrb[54].mxu0 %vm116_vm0, %v96_v13 }
  0x8b   :  { %3837 = vmatprep.mubr.msk.f32.mxu0 %vm116_vm0, %v97_v16 }
  0x8e   :  { %3838 = vmatmul.mubr.msk.f32.gmra.mrb[56].mxu0 %vm116_vm0, %v98_v18 }
  0x8f   :  { %3840 = vmatprep.mubr.msk.f32.mxu0 %vm116_vm0, %v99_v21 }
  0x92   :  { %3841 = vmatmul.mubr.msk.f32.gmra.mrb[58].mxu0 %vm116_vm0, %v100_v23 }
  0x93   :  { %3843 = vmatprep.mubr.msk.f32.mxu0 %vm116_vm0, %v101_v26 }
  0x96   :  { %3844 = vmatmul.mubr.msk.f32.gmra.mrb[60].mxu0 %vm116_vm0, %v102_v28 }
  0x97   :  { %3846 = vmatprep.mubr.msk.f32.mxu0 %vm116_vm0, %v103_v29 }
  0x9a   :  { %3847 = vmatmul.mubr.msk.f32.gmra.mrb[62].mxu0 %vm116_vm0, %v104_v30 }
  0xf1   :  { %v3755_v35 = vpop.f32.mrb[0].mxu0 }
  0xf2   :  { %v381_v37 = vadd.f32 %v3755_v35, %v4491_v31  ;;  %v375_v38 = vpop.f32.mrb[1].mxu0 }
  0xf3   :  { %v376_v41 = vadd.f32 %v4491_v31, %v375_v38 }
  0xf4   :  { %v695_v45 = vmax.f32 %v381_v37, 0.0 }
  0xf5   :  { %v694_v47 = vmax.f32 %v376_v41, 0.0  ;;  %v3758_v48 = vpop.f32.mrb[2].mxu0  ;;  %v4588_v41 = vld [vmem:[%s6671_s3 + $0x8] ss:$0 sm:$0xff] }
  0xf6   :  { %v759_v49 = vmin.f32 %v695_v45, 6.0  ;;  %v391_v50 = vadd.f32 %v3758_v48, %v4491_v31  ;;  %v385_v51 = vpop.f32.mrb[3].mxu0 }
  0xf7   :  { %v758_v54 = vmin.f32 %v694_v47, 6.0  ;;  %v386_v55 = vadd.f32 %v4491_v31, %v385_v51  ;;  %v4598_v47 = vld [vmem:[%s6671_s3 + $0x6] ss:$0 sm:$0xff] }
  0xf8   :  { %932 = vst [vmem:[#allocation2 + $0x21] sm:$0xff] %v759_v49  ;;  %v697_v58 = vmax.f32 %v391_v50, 0.0  ;;  %v4531_v8 = vmul.f32 %v4520_v61, %v759_v49  ;;  %v4534_v9 = vmul.f32 %v4501_v36, %v759_v49 }
  0xf9   :  { %931 = vst [vmem:[#allocation2 + $0x19] sm:$0xff] %v758_v54  ;;  %v696_v59 = vmax.f32 %v386_v55, 0.0  ;;  %v3761_v60 = vpop.f32.mrb[4].mxu0  ;;  %v1852_v7 = vmul.f32 %v4520_v61, %v758_v54  ;;  %v1263_v14 = vmul.f32 %v4501_v36, %v758_v54 }
  0xfa   :  { %v761_v62 = vmin.f32 %v697_v58, 6.0  ;;  %v401_v63 = vadd.f32 %v3761_v60, %v4491_v31  ;;  %v395_v0 = vpop.f32.mrb[5].mxu0 }
  0xfb   :  { %v760_v2 = vmin.f32 %v696_v59, 6.0  ;;  %v396_v3 = vadd.f32 %v4491_v31, %v395_v0 }
  0xfc   :  { %934 = vst [vmem:[#allocation2 + $0x39] sm:$0xff] %v761_v62  ;;  %v699_v6 = vmax.f32 %v401_v63, 0.0  ;;  %v4542_v13 = vmul.f32 %v4526_v1, %v761_v62  ;;  %v4546_v15 = vmul.f32 %v4520_v61, %v761_v62  ;;  %v4560_v21 = vmul.f32 %v4501_v36, %v761_v62 }
  0xfd   :  { %933 = vst [vmem:[#allocation2 + $0x31] sm:$0xff] %v760_v2  ;;  %v698_v10 = vmax.f32 %v396_v3, 0.0  ;;  %v3764_v11 = vpop.f32.mrb[6].mxu0  ;;  %v4557_v20 = vmul.f32 %v4526_v1, %v760_v2  ;;  %v4566_v25 = vmul.f32 %v4520_v61, %v760_v2  ;;  %v4569_v26 = vmul.f32 %v4501_v36, %v760_v2 }
  0xfe   :  { %v4548_v16 = vmin.f32 %v699_v6, 6.0  ;;  %v411_v17 = vadd.f32 %v3764_v11, %v4491_v31  ;;  %v405_v18 = vpop.f32.mrb[7].mxu0 }
  0xff   :  { %v4562_v22 = vmin.f32 %v698_v10, 6.0  ;;  %v406_v23 = vadd.f32 %v4491_v31, %v405_v18  ;;  %v1982_v24 = vld [vmem:[#allocation2 + $0x22] sm:$0xff] }
 0x100   :  { %936 = vst [vmem:[#allocation2 + $0x51] sm:$0xff] %v4548_v16  ;;  %v701_v27 = vmax.f32 %v411_v17, 0.0  ;;  %v1587_v28 = vld [vmem:[#allocation2 + $0x18] sm:$0xff]  ;;  %v4572_v30 = vld [vmem:[#allocation2 + $0x20] sm:$0xff]  ;;  %v2050_v33 = vmul.f32 %v4539_v12, %v1982_v24  ;;  %v4576_v34 = vmul.f32 %v4510_v42, %v1982_v24  ;;  %v4580_v35 = vmul.f32 %v4526_v1, %v4548_v16 }
 0x101   :  { %v1981_v29 = vld [vmem:[#allocation2 + $0x1a] sm:$0xff]  ;;  %935 = vst [vmem:[#allocation2 + $0x49] sm:$0xff] %v4562_v22  ;;  %v700_v37 = vmax.f32 %v406_v23, 0.0  ;;  %v3767_v38 = vpop.f32.mrb[8].mxu0  ;;  %v1655_v39 = vmul.f32 %v4554_v19, %v1587_v28  ;;  %v1656_v43 = vmul.f32 %v4554_v19, %v4572_v30  ;;  %v1066_v48 = vmul.f32 %v4496_v32, %v1587_v28 }
 0x102   :  { %v2049_v40 = vmul.f32 %v4539_v12, %v1981_v29  ;;  %v4592_v44 = vmin.f32 %v701_v27, 6.0  ;;  %v421_v45 = vadd.f32 %v3767_v38, %v4491_v31  ;;  %v415_v46 = vpop.f32.mrb[9].mxu0  ;;  %v1460_v49 = vmul.f32 %v4510_v42, %v1981_v29 }
 0x103   :  { %v4602_v50 = vmin.f32 %v700_v37, 6.0  ;;  %v416_v51 = vadd.f32 %v4491_v31, %v415_v46  ;;  %v1719_v52 = vadd.f32 %v1655_v39, %v1522_v4  ;;  %v1720_v53 = vadd.f32 %v1656_v43, %v1523_v5  ;;  %v4605_v54 = vld [vmem:[#allocation2 + $0x3a] sm:$0xff] }
 0x104   :  { %938 = vst [vmem:[#allocation2 + $0x69] sm:$0xff] %v4592_v44  ;;  %v703_v55 = vmax.f32 %v421_v45, 0.0  ;;  %v4608_v56 = vld [vmem:[#allocation2 + $0x30] sm:$0xff]  ;;  %v4612_v58 = vld [vmem:[#allocation2 + $0x38] sm:$0xff]  ;;  %v2642_v59 = vmul.f32 %v4588_v41, %v4605_v54  ;;  %v1327_v60 = vadd.f32 %v1263_v14, %v1066_v48  ;;  %v4618_v62 = vmul.f32 %v4526_v1, %v4562_v22 }
 0x105   :  { %v4610_v57 = vld [vmem:[#allocation2 + $0x32] sm:$0xff]  ;;  %937 = vst [vmem:[#allocation2 + $0x61] sm:$0xff] %v4602_v50  ;;  %v702_v63 = vmax.f32 %v416_v51, 0.0  ;;  %v3770_v0 = vpop.f32.mrb[10].mxu0  ;;  %v1916_v2 = vadd.f32 %v1852_v7, %v1719_v52  ;;  %v2247_v3 = vmul.f32 %v4598_v47, %v4608_v56  ;;  %v1917_v11 = vadd.f32 %v4531_v8, %v1720_v53 }
 0x106   :  { %v2641_v4 = vmul.f32 %v4588_v41, %v4610_v57  ;;  %v4625_v5 = vmin.f32 %v703_v55, 6.0  ;;  %v431_v6 = vadd.f32 %v3770_v0, %v4491_v31  ;;  %v425_v10 = vpop.f32.mrb[11].mxu0  ;;  %v2248_v14 = vmul.f32 %v4598_v47, %v4612_v58  ;;  %v4661_v0 = vld [vmem:[%s6672_s4] ss:$0 sm:$0xff] }
 0x107   :  { %v4631_v17 = vmin.f32 %v702_v63, 6.0  ;;  %v426_v7 = vadd.f32 %v4491_v31, %v425_v10  ;;  %v2113_v18 = vadd.f32 %v2049_v40, %v1916_v2  ;;  %v1524_v23 = vadd.f32 %v1460_v49, %v1327_v60 }
 0x108   :  { %940 = vst [vmem:[#allocation2 + $0x81] sm:$0xff] %v4625_v5  ;;  %v705_v24 = vmax.f32 %v431_v6, 0.0  ;;  %v2114_v27 = vadd.f32 %v2050_v33, %v1917_v11  ;;  %v1657_v28 = vmul.f32 %v4554_v19, %v4608_v56  ;;  %v2051_v29 = vmul.f32 %v4539_v12, %v4610_v57  ;;  %v4639_v8 = vld [vmem:[#allocation2 + $0x48] sm:$0xff] }
 0x109   :  { %v4641_v37 = vld [vmem:[#allocation2 + $0x4a] sm:$0xff]  ;;  %939 = vst [vmem:[#allocation2 + $0x79] sm:$0xff] %v4631_v17  ;;  %v704_v38 = vmax.f32 %v426_v7, 0.0  ;;  %v3773_v39 = vpop.f32.mrb[12].mxu0  ;;  %v2311_v40 = vadd.f32 %v2247_v3, %v2113_v18  ;;  %v2249_v43 = vmul.f32 %v4598_v47, %v4639_v8  ;;  %v1067_v60 = vmul.f32 %v4496_v32, %v4572_v30 }
 0x10a   :  { %v2643_v33 = vmul.f32 %v4588_v41, %v4641_v37  ;;  %v4648_v45 = vmin.f32 %v705_v24, 6.0  ;;  %v441_v46 = vadd.f32 %v3773_v39, %v4491_v31  ;;  %v435_v48 = vpop.f32.mrb[13].mxu0  ;;  %v2312_v49 = vadd.f32 %v2248_v14, %v2114_v27  ;;  %v4671_v7 = vld [vmem:[#allocation2 + $0x50] sm:$0xff] }
 0x10b   :  { %v1721_v51 = vadd.f32 %v1657_v28, %v1524_v23  ;;  %v4651_v52 = vmin.f32 %v704_v38, 6.0  ;;  %v436_v53 = vadd.f32 %v4491_v31, %v435_v48  ;;  %v2508_v55 = vadd.f32 %v4557_v20, %v2311_v40  ;;  %v4676_v27 = vld [vmem:[#allocation2 + $0x52] sm:$0xff] }
 0x10c   :  { %942 = vst [vmem:[#allocation2 + $0x99] sm:$0xff] %v4648_v45  ;;  %v707_v63 = vmax.f32 %v441_v46, 0.0  ;;  %v2509_v2 = vadd.f32 %v4542_v13, %v2312_v49  ;;  %v1658_v6 = vmul.f32 %v4554_v19, %v4612_v58  ;;  %v1328_v11 = vadd.f32 %v4534_v9, %v1067_v60 }
 0x10d   :  { %v1918_v3 = vadd.f32 %v4566_v25, %v1721_v51  ;;  %941 = vst [vmem:[#allocation2 + $0x91] sm:$0xff] %v4651_v52  ;;  %v706_v20 = vmax.f32 %v436_v53, 0.0  ;;  %v3776_v10 = vpop.f32.mrb[14].mxu0  ;;  %v2705_v30 = vadd.f32 %v2641_v4, %v2508_v55  ;;  %v2052_v14 = vmul.f32 %v4539_v12, %v4605_v54 }
 0x10e   :  { %v4673_v18 = vmin.f32 %v707_v63, 6.0  ;;  %v451_v13 = vadd.f32 %v3776_v10, %v4491_v31  ;;  %v445_v25 = vpop.f32.mrb[15].mxu0  ;;  %v2706_v23 = vadd.f32 %v2642_v59, %v2509_v2  ;;  %v1525_v38 = vadd.f32 %v4576_v34, %v1328_v11 }
 0x10f   :  { %v2115_v24 = vadd.f32 %v2051_v29, %v1918_v3  ;;  %v4678_v28 = vmin.f32 %v706_v20, 6.0  ;;  %v446_v4 = vadd.f32 %v4491_v31, %v445_v25  ;;  %v2776_v9 = vadd.f32 %v4661_v0, %v2705_v30 }
 0x110   :  { %944 = vst [vmem:[#allocation2 + $0xb1] sm:$0xff] %v4673_v18  ;;  %v709_v39 = vmax.f32 %v451_v13, 0.0  ;;  %v2777_v40 = vadd.f32 %v4661_v0, %v2706_v23  ;;  %v2250_v59 = vmul.f32 %v4598_v47, %v4671_v7  ;;  %v1722_v51 = vadd.f32 %v1658_v6, %v1525_v38 }
 0x111   :  { %v2313_v46 = vadd.f32 %v2249_v43, %v2115_v24  ;;  %943 = vst [vmem:[#allocation2 + $0xa9] sm:$0xff] %v4678_v28  ;;  %v708_v29 = vmax.f32 %v446_v4, 0.0  ;;  %v3779_v48 = vpop.f32.mrb[16].mxu0  ;;  %v2840_v49 = vmax.f32 %v2776_v9, 0.0  ;;  %v2644_v53 = vmul.f32 %v4588_v41, %v4676_v27 }
 0x112   :  { %v773_v55 = vmin.f32 %v709_v39, 6.0  ;;  %v461_v34 = vadd.f32 %v3779_v48, %v4491_v31  ;;  %v455_v60 = vpop.f32.mrb[17].mxu0  ;;  %v2841_v63 = vmax.f32 %v2777_v40, 0.0  ;;  %v1919_v10 = vadd.f32 %v4546_v15, %v1722_v51  ;;  %v4706_v39 = vld [vmem:[#allocation2 + $0x60] sm:$0xff] }
 0x113   :  { %v2510_v2 = vadd.f32 %v4618_v62, %v2313_v46  ;;  %v4692_v43 = vmin.f32 %v708_v29, 6.0  ;;  %v456_v3 = vadd.f32 %v4491_v31, %v455_v60  ;;  %v2904_v20 = vmin.f32 %v2840_v49, 6.0 }
 0x114   :  { %946 = vst [vmem:[#allocation2 + $0xc9] sm:$0xff] %v773_v55  ;;  %v711_v30 = vmax.f32 %v461_v34, 0.0  ;;  %v2905_v6 = vmin.f32 %v2841_v63, 6.0  ;;  %v1068_v13 = vmul.f32 %v4496_v32, %v4608_v56  ;;  %v2116_v62 = vadd.f32 %v2052_v14, %v1919_v10  ;;  %v4713_v55 = vld [vmem:[#allocation2 + $0x62] sm:$0xff] }
 0x115   :  { %v2707_v11 = vadd.f32 %v2643_v33, %v2510_v2  ;;  %945 = vst [vmem:[#allocation2 + $0xc1] sm:$0xff] %v4692_v43  ;;  %v710_v25 = vmax.f32 %v456_v3, 0.0  ;;  %v3782_v23 = vpop.f32.mrb[18].mxu0  ;;  %3881 = vmatprep.mubr.f32.mxu0 %v2904_v20  ;;  %v1462_v24 = vmul.f32 %v4510_v42, %v4610_v57  ;;  %v1659_v4 = vmul.f32 %v4554_v19, %v4639_v8 }
 0x116   :  { %v775_v15 = vmin.f32 %v711_v30, 6.0  ;;  %v471_v9 = vadd.f32 %v3782_v23, %v4491_v31  ;;  %v465_v38 = vpop.f32.mrb[19].mxu0  ;;  %3882 = vmatmul.mubr.f32.vlgmr.msra.gmra.mrb[64].mxu0 %v2905_v6  ;;  %v1329_v56 = vadd.f32 %v4569_v26, %v1068_v13  ;;  %v2314_v46 = vadd.f32 %v2250_v59, %v2116_v62 }
 0x117   :  { %v2778_v33 = vadd.f32 %v4661_v0, %v2707_v11  ;;  %v774_v40 = vmin.f32 %v710_v25, 6.0  ;;  %v466_v14 = vadd.f32 %v4491_v31, %v465_v38  ;;  %v1856_v57 = vmul.f32 %v4520_v61, %v4562_v22 }
 0x118   :  { %948 = vst [vmem:[#allocation2 + $0xe1] sm:$0xff] %v775_v15  ;;  %v713_v29 = vmax.f32 %v471_v9, 0.0  ;;  %v1526_v49 = vadd.f32 %v1462_v24, %v1329_v56  ;;  %v2053_v51 = vmul.f32 %v4539_v12, %v4641_v37  ;;  %v2511_v60 = vadd.f32 %v4580_v35, %v2314_v46  ;;  %v4737_v46 = vld [vmem:[#allocation2 + $0x6a] sm:$0xff] }
 0x119   :  { %v2842_v48 = vmax.f32 %v2778_v33, 0.0  ;;  %947 = vst [vmem:[#allocation2 + $0xd9] sm:$0xff] %v774_v40  ;;  %v712_v26 = vmax.f32 %v466_v14, 0.0  ;;  %v3785_v34 = vpop.f32.mrb[20].mxu0  ;;  %v2251_v59 = vmul.f32 %v4598_v47, %v4706_v39  ;;  %v2448_v63 = vmul.f32 %v4526_v1, %v4602_v50  ;;  %v4733_v33 = vld [vmem:[#allocation2 + $0x68] sm:$0xff] }
 0x11a   :  { %v777_v2 = vmin.f32 %v713_v29, 6.0  ;;  %v481_v3 = vadd.f32 %v3785_v34, %v4491_v31  ;;  %v475_v10 = vpop.f32.mrb[21].mxu0  ;;  %v1723_v30 = vadd.f32 %v1659_v4, %v1526_v49  ;;  %v2708_v13 = vadd.f32 %v2644_v53, %v2511_v60 }
 0x11b   :  { %v2906_v20 = vmin.f32 %v2842_v48, 6.0  ;;  %v776_v6 = vmin.f32 %v712_v26, 6.0  ;;  %v476_v11 = vadd.f32 %v4491_v31, %v475_v10  ;;  %v2645_v25 = vmul.f32 %v4588_v41, %v4713_v55 }
 0x11c   :  { %950 = vst [vmem:[#allocation2 + $0xf9] sm:$0xff] %v777_v2  ;;  %v715_v35 = vmax.f32 %v481_v3, 0.0  ;;  %v1920_v23 = vadd.f32 %v1856_v57, %v1723_v30  ;;  %v1069_v62 = vmul.f32 %v4496_v32, %v4612_v58  ;;  %v1463_v24 = vmul.f32 %v4510_v42, %v4605_v54 }
 0x11d   :  { %3884 = vmatprep.mubr.f32.mxu0 %v2906_v20  ;;  %949 = vst [vmem:[#allocation2 + $0xf1] sm:$0xff] %v776_v6  ;;  %v714_v15 = vmax.f32 %v476_v11, 0.0  ;;  %v2779_v4 = vadd.f32 %v4661_v0, %v2708_v13  ;;  %v3788_v9 = vpop.f32.mrb[22].mxu0  ;;  %v1660_v53 = vmul.f32 %v4554_v19, %v4671_v7  ;;  %v1857_v38 = vmul.f32 %v4520_v61, %v4548_v16 }
 0x11e   :  { %v779_v56 = vmin.f32 %v715_v35, 6.0  ;;  %v491_v40 = vadd.f32 %v3788_v9, %v4491_v31  ;;  %v2117_v58 = vadd.f32 %v2053_v51, %v1920_v23  ;;  %v485_v14 = vpop.f32.mrb[23].mxu0  ;;  %v1330_v54 = vadd.f32 %v4560_v21, %v1069_v62 }
 0x11f   :  { %v778_v57 = vmin.f32 %v714_v15, 6.0  ;;  %v2843_v29 = vmax.f32 %v2779_v4, 0.0  ;;  %v486_v48 = vadd.f32 %v4491_v31, %v485_v14  ;;  %v2054_v49 = vmul.f32 %v4539_v12, %v4676_v27 }
 0x120   :  { %952 = vst [vmem:[#allocation2 + $0x111] sm:$0xff] %v779_v56  ;;  %v717_v26 = vmax.f32 %v491_v40, 0.0  ;;  %v2315_v34 = vadd.f32 %v2251_v59, %v2117_v58  ;;  %v1527_v60 = vadd.f32 %v1463_v24, %v1330_v54  ;;  %v2252_v2 = vmul.f32 %v4598_v47, %v4733_v33  ;;  %v4749_v59 = vld [vmem:[#allocation2 + $0x78] sm:$0xff] }
 0x121   :  { %951 = vst [vmem:[#allocation2 + $0x109] sm:$0xff] %v778_v57  ;;  %v2907_v51 = vmin.f32 %v2843_v29, 6.0  ;;  %v716_v3 = vmax.f32 %v486_v48, 0.0  ;;  %v2449_v21 = vmul.f32 %v4526_v1, %v4592_v44  ;;  %v2646_v20 = vmul.f32 %v4588_v41, %v4737_v46  ;;  %v3791_v10 = vpop.f32.mrb[24].mxu0  ;;  %v4759_v56 = vld [vmem:[#allocation2 + $0x7a] sm:$0xff] }
 0x122   :  { %v781_v30 = vmin.f32 %v717_v26, 6.0  ;;  %v2512_v6 = vadd.f32 %v2448_v63, %v2315_v34  ;;  %v1724_v11 = vadd.f32 %v1660_v53, %v1527_v60  ;;  %v501_v13 = vadd.f32 %v3791_v10, %v4491_v31  ;;  %v495_v35 = vpop.f32.mrb[25].mxu0  ;;  %v4779_v10 = vld [vmem:[#allocation2 + $0x80] sm:$0xff] }
 0x123   :  { %3885 = vmatmul.mubr.f32.gmra.mrb[66].mxu0 %v2907_v51  ;;  %v780_v23 = vmin.f32 %v716_v3, 6.0  ;;  %v1070_v62 = vmul.f32 %v4496_v32, %v4639_v8  ;;  %v1267_v24 = vmul.f32 %v4501_v36, %v4562_v22  ;;  %v1464_v15 = vmul.f32 %v4510_v42, %v4641_v37 }
 0x124   :  { %954 = vst [vmem:[#allocation2 + $0x129] sm:$0xff] %v781_v30  ;;  %v2709_v4 = vadd.f32 %v2645_v25, %v2512_v6  ;;  %v1921_v63 = vadd.f32 %v1857_v38, %v1724_v11  ;;  %v719_v9 = vmax.f32 %v501_v13, 0.0  ;;  %v1661_v53 = vmul.f32 %v4554_v19, %v4706_v39 }
 0x125   :  { %953 = vst [vmem:[#allocation2 + $0x121] sm:$0xff] %v780_v23  ;;  %v1331_v40 = vadd.f32 %v1267_v24, %v1070_v62  ;;  %v1858_v8 = vmul.f32 %v4520_v61, %v4602_v50  ;;  %v2055_v22 = vmul.f32 %v4539_v12, %v4713_v55  ;;  %v2253_v37 = vmul.f32 %v4598_v47, %v4749_v59  ;;  %v3794_v58 = vpop.f32.mrb[26].mxu0 }
 0x126   :  { %v2780_v25 = vadd.f32 %v4661_v0, %v2709_v4  ;;  %v2118_v38 = vadd.f32 %v2054_v49, %v1921_v63  ;;  %v783_v14 = vmin.f32 %v719_v9, 6.0  ;;  %v2450_v54 = vmul.f32 %v4526_v1, %v4631_v17  ;;  %v505_v57 = vpop.f32.mrb[27].mxu0 }
 0x127   :  { %v1528_v29 = vadd.f32 %v1464_v15, %v1331_v40  ;;  %v2647_v48 = vmul.f32 %v4588_v41, %v4759_v56  ;;  %v496_v26 = vadd.f32 %v4491_v31, %v495_v35  ;;  %v1071_v34 = vmul.f32 %v4496_v32, %v4671_v7  ;;  %v4785_v7 = vld [vmem:[#allocation2 + $0x82] sm:$0xff] }
 0x128   :  { %v2844_v60 = vmax.f32 %v2780_v25, 0.0  ;;  %v2316_v51 = vadd.f32 %v2252_v2, %v2118_v38  ;;  %956 = vst [vmem:[#allocation2 + $0x141] sm:$0xff] %v783_v14  ;;  %v1268_v49 = vmul.f32 %v4501_v36, %v4548_v16  ;;  %v1465_v3 = vmul.f32 %v4510_v42, %v4676_v27 }
 0x129   :  { %v1725_v30 = vadd.f32 %v1661_v53, %v1528_v29  ;;  %v718_v6 = vmax.f32 %v496_v26, 0.0  ;;  %v1662_v11 = vmul.f32 %v4554_v19, %v4733_v33  ;;  %v1859_v13 = vmul.f32 %v4520_v61, %v4592_v44  ;;  %v4787_v2 = vpop.f32.mrb[28].mxu0  ;;  %v4806_v29 = vld [vmem:[#allocation2 + $0x90] sm:$0xff] }
 0x12a   :  { %v2908_v35 = vmin.f32 %v2844_v60, 6.0  ;;  %v2513_v23 = vadd.f32 %v2449_v21, %v2316_v51  ;;  %v1332_v16 = vadd.f32 %v1268_v49, %v1071_v34  ;;  %v2056_v27 = vmul.f32 %v4539_v12, %v4737_v46  ;;  %v4791_v62 = vpop.f32.mrb[29].mxu0 }
 0x12b   :  { %v1922_v24 = vadd.f32 %v1858_v8, %v1725_v30  ;;  %v782_v15 = vmin.f32 %v718_v6, 6.0  ;;  %v2254_v4 = vmul.f32 %v4598_v47, %v4779_v10  ;;  %v2451_v63 = vmul.f32 %v4526_v1, %v4625_v5 }
 0x12c   :  { %3887 = vmatprep.mubr.f32.mxu0 %v2908_v35  ;;  %v2710_v9 = vadd.f32 %v2646_v20, %v2513_v23  ;;  %v1529_v53 = vadd.f32 %v1465_v3, %v1332_v16  ;;  %v2648_v21 = vmul.f32 %v4588_v41, %v4785_v7  ;;  %v511_v40 = vadd.f32 %v3794_v58, %v4491_v31  ;;  %v4813_v58 = vld [vmem:[#allocation2 + $0x92] sm:$0xff] }
 0x12d   :  { %v2119_v25 = vadd.f32 %v2055_v22, %v1922_v24  ;;  %955 = vst [vmem:[#allocation2 + $0x139] sm:$0xff] %v782_v15  ;;  %v1072_v8 = vmul.f32 %v4496_v32, %v4706_v39  ;;  %v1269_v38 = vmul.f32 %v4501_v36, %v4602_v50  ;;  %v1466_v14 = vmul.f32 %v4510_v42, %v4713_v55  ;;  %v4808_v20 = vpop.f32.mrb[30].mxu0 }
 0x12e   :  { %v2781_v26 = vadd.f32 %v4661_v0, %v2710_v9  ;;  %v1726_v34 = vadd.f32 %v1662_v11, %v1529_v53  ;;  %v721_v60 = vmax.f32 %v511_v40, 0.0  ;;  %v1663_v22 = vmul.f32 %v4554_v19, %v4749_v59  ;;  %v4815_v39 = vpop.f32.mrb[31].mxu0 }
 0x12f   :  { %v2317_v51 = vadd.f32 %v2253_v37, %v2119_v25  ;;  %v1333_v50 = vadd.f32 %v1269_v38, %v1072_v8  ;;  %v1860_v55 = vmul.f32 %v4520_v61, %v4631_v17  ;;  %v2057_v49 = vmul.f32 %v4539_v12, %v4759_v56 }
 0x130   :  { %v2845_v3 = vmax.f32 %v2781_v26, 0.0  ;;  %v1923_v30 = vadd.f32 %v1859_v13, %v1726_v34  ;;  %v785_v6 = vmin.f32 %v721_v60, 6.0  ;;  %v2255_v11 = vmul.f32 %v4598_v47, %v4806_v29  ;;  %v4844_v34 = vld [vmem:[#allocation2 + $0x9a] sm:$0xff] }
 0x131   :  { %v2514_v35 = vadd.f32 %v2450_v54, %v2317_v51  ;;  %v1530_v23 = vadd.f32 %v1466_v14, %v1333_v50  ;;  %v2452_v16 = vmul.f32 %v4526_v1, %v4651_v52  ;;  %v2649_v37 = vmul.f32 %v4588_v41, %v4813_v58  ;;  %v4827_v24 = vpop.f32.mrb[32].mxu0  ;;  %v4838_v14 = vld [vmem:[#allocation2 + $0x98] sm:$0xff] }
 0x132   :  { %v2909_v15 = vmin.f32 %v2845_v3, 6.0  ;;  %v2120_v9 = vadd.f32 %v2056_v27, %v1923_v30  ;;  %958 = vst [vmem:[#allocation2 + $0x159] sm:$0xff] %v785_v6  ;;  %v506_v53 = vadd.f32 %v4491_v31, %v505_v57  ;;  %v1073_v13 = vmul.f32 %v4496_v32, %v4733_v33  ;;  %v4832_v40 = vpop.f32.mrb[33].mxu0 }
 0x133   :  { %v2711_v54 = vadd.f32 %v2647_v48, %v2514_v35  ;;  %v1727_v25 = vadd.f32 %v1663_v22, %v1530_v23  ;;  %v1270_v8 = vmul.f32 %v4501_v36, %v4592_v44  ;;  %v1467_v38 = vmul.f32 %v4510_v42, %v4737_v46 }
 0x134   :  { %3888 = vmatmul.mubr.f32.gmra.mrb[68].mxu0 %v2909_v15  ;;  %v2318_v27 = vadd.f32 %v2254_v4, %v2120_v9  ;;  %v720_v26 = vmax.f32 %v506_v53, 0.0  ;;  %v1664_v57 = vmul.f32 %v4554_v19, %v4779_v10  ;;  %v1861_v33 = vmul.f32 %v4520_v61, %v4625_v5 }
 0x135   :  { %v2782_v48 = vadd.f32 %v4661_v0, %v2711_v54  ;;  %v1924_v60 = vadd.f32 %v1860_v55, %v1727_v25  ;;  %v1334_v44 = vadd.f32 %v1270_v8, %v1073_v13  ;;  %v2058_v46 = vmul.f32 %v4539_v12, %v4785_v7  ;;  %v4849_v22 = vpop.f32.mrb[34].mxu0  ;;  %v4867_v8 = vld [vmem:[#allocation2 + $0xa8] sm:$0xff] }
 0x136   :  { %v2515_v51 = vadd.f32 %v2451_v63, %v2318_v27  ;;  %v784_v4 = vmin.f32 %v720_v26, 6.0  ;;  %v2256_v50 = vmul.f32 %v4598_v47, %v4838_v14  ;;  %v2453_v3 = vmul.f32 %v4526_v1, %v4648_v45  ;;  %v4855_v30 = vpop.f32.mrb[35].mxu0  ;;  %v4874_v26 = vld [vmem:[#allocation2 + $0xaa] sm:$0xff] }
 0x137   :  { %v2846_v6 = vmax.f32 %v2782_v48, 0.0  ;;  %v2121_v35 = vadd.f32 %v2057_v49, %v1924_v60  ;;  %v1531_v23 = vadd.f32 %v1467_v38, %v1334_v44  ;;  %v2650_v55 = vmul.f32 %v4588_v41, %v4844_v34 }
 0x138   :  { %v2712_v15 = vadd.f32 %v2648_v21, %v2515_v51  ;;  %957 = vst [vmem:[#allocation2 + $0x151] sm:$0xff] %v784_v4  ;;  %v521_v63 = vadd.f32 %v4787_v2, %v4491_v31  ;;  %v1074_v9 = vmul.f32 %v4496_v32, %v4749_v59  ;;  %v1271_v53 = vmul.f32 %v4501_v36, %v4631_v17 }
 0x139   :  { %v2910_v13 = vmin.f32 %v2846_v6, 6.0  ;;  %v2319_v54 = vadd.f32 %v2255_v11, %v2121_v35  ;;  %v1728_v25 = vadd.f32 %v1664_v57, %v1531_v23  ;;  %v1468_v49 = vmul.f32 %v4510_v42, %v4759_v56  ;;  %v4869_v38 = vpop.f32.mrb[36].mxu0 }
 0x13a   :  { %v2783_v21 = vadd.f32 %v4661_v0, %v2712_v15  ;;  %v723_v27 = vmax.f32 %v521_v63, 0.0  ;;  %v1335_v2 = vadd.f32 %v1271_v53, %v1074_v9  ;;  %v1665_v59 = vmul.f32 %v4554_v19, %v4806_v29  ;;  %v4876_v17 = vpop.f32.mrb[37].mxu0 }
 0x13b   :  { %3890 = vmatprep.mubr.f32.mxu1 %v2910_v13  ;;  %v2516_v11 = vadd.f32 %v2452_v16, %v2319_v54  ;;  %v1925_v57 = vadd.f32 %v1861_v33, %v1728_v25  ;;  %v1862_v56 = vmul.f32 %v4520_v61, %v4651_v52  ;;  %v2059_v48 = vmul.f32 %v4539_v12, %v4813_v58 }
 0x13c   :  { %v2847_v60 = vmax.f32 %v2783_v21, 0.0  ;;  %v787_v44 = vmin.f32 %v723_v27, 6.0  ;;  %v1532_v51 = vadd.f32 %v1468_v49, %v1335_v2  ;;  %v2257_v4 = vmul.f32 %v4598_v47, %v4867_v8  ;;  %v4901_v49 = vld [vmem:[#allocation2 + $0xb0] sm:$0xff] }
 0x13d   :  { %v2713_v6 = vadd.f32 %v2649_v37, %v2516_v11  ;;  %v2122_v35 = vadd.f32 %v2058_v46, %v1925_v57  ;;  %v2454_v23 = vmul.f32 %v4526_v1, %v4678_v28  ;;  %v2651_v16 = vmul.f32 %v4588_v41, %v4874_v26  ;;  %v4888_v33 = vpop.f32.mrb[38].mxu0  ;;  %v4907_v2 = vld [vmem:[#allocation2 + $0xb2] sm:$0xff] }
 0x13e   :  { %v2911_v15 = vmin.f32 %v2847_v60, 6.0  ;;  %960 = vst [vmem:[#allocation2 + $0x171] sm:$0xff] %v787_v44  ;;  %v1729_v63 = vadd.f32 %v1665_v59, %v1532_v51  ;;  %v516_v9 = vadd.f32 %v4491_v31, %v4791_v62  ;;  %v1075_v53 = vmul.f32 %v4496_v32, %v4779_v10  ;;  %v4894_v13 = vpop.f32.mrb[39].mxu0 }
 0x13f   :  { %v2784_v37 = vadd.f32 %v4661_v0, %v2713_v6  ;;  %v2320_v46 = vadd.f32 %v2256_v50, %v2122_v35  ;;  %v1272_v54 = vmul.f32 %v4501_v36, %v4625_v5  ;;  %v1469_v25 = vmul.f32 %v4510_v42, %v4785_v7 }
 0x140   :  { %3891 = vmatmul.mubr.f32.vlgmr.msra.gmra.mrb[0].mxu1 %v2911_v15  ;;  %v1926_v21 = vadd.f32 %v1862_v56, %v1729_v63  ;;  %v722_v27 = vmax.f32 %v516_v9, 0.0  ;;  %v1666_v62 = vmul.f32 %v4554_v19, %v4838_v14  ;;  %v1863_v10 = vmul.f32 %v4520_v61, %v4648_v45  ;;  %v4929_v9 = vld [vmem:[#allocation2 + $0xc0] sm:$0xff] }
 0x141   :  { %v2848_v50 = vmax.f32 %v2784_v37, 0.0  ;;  %v2517_v59 = vadd.f32 %v2453_v3, %v2320_v46  ;;  %v1336_v11 = vadd.f32 %v1272_v54, %v1075_v53  ;;  %v2060_v5 = vmul.f32 %v4539_v12, %v4844_v34  ;;  %v4911_v7 = vpop.f32.mrb[40].mxu0 }
 0x142   :  { %v2123_v57 = vadd.f32 %v2059_v48, %v1926_v21  ;;  %v786_v60 = vmin.f32 %v722_v27, 6.0  ;;  %v2258_v56 = vmul.f32 %v4598_v47, %v4901_v49  ;;  %v2455_v44 = vmul.f32 %v4526_v1, %v4673_v18  ;;  %v4917_v51 = vpop.f32.mrb[41].mxu0 }
 0x143   :  { %v2912_v45 = vmin.f32 %v2848_v50, 6.0  ;;  %v2714_v6 = vadd.f32 %v2650_v55, %v2517_v59  ;;  %v1533_v35 = vadd.f32 %v1469_v25, %v1336_v11  ;;  %v4921_v3 = vmul.f32 %v4588_v41, %v4907_v2  ;;  %v4940_v25 = vld [vmem:[#allocation2 + $0xc2] sm:$0xff]  ;;  %v1206_v59 = vld [vmem:[#allocation2 + $0x99] sm:$0xff] }
 0x144   :  { %v2321_v15 = vadd.f32 %v2257_v4, %v2123_v57  ;;  %959 = vst [vmem:[#allocation2 + $0x169] sm:$0xff] %v786_v60  ;;  %v531_v48 = vadd.f32 %v4808_v20, %v4491_v31  ;;  %v1076_v63 = vmul.f32 %v4496_v32, %v4806_v29  ;;  %v1273_v18 = vmul.f32 %v4501_v36, %v4651_v52 }
 0x145   :  { %3893 = vmatprep.mubr.f32.mxu1 %v2912_v45  ;;  %v2785_v55 = vadd.f32 %v4661_v0, %v2714_v6  ;;  %v1730_v53 = vadd.f32 %v1666_v62, %v1533_v35  ;;  %v1470_v37 = vmul.f32 %v4510_v42, %v4813_v58  ;;  %v1667_v4 = vmul.f32 %v4554_v19, %v4867_v8  ;;  %v4936_v46 = vpop.f32.mrb[42].mxu0  ;;  %v4954_v35 = vld [vmem:[#allocation2 + $0xb1] sm:$0xff] }
 0x146   :  { %v2518_v20 = vadd.f32 %v2454_v23, %v2321_v15  ;;  %v725_v54 = vmax.f32 %v531_v48, 0.0  ;;  %v1337_v29 = vadd.f32 %v1273_v18, %v1076_v63  ;;  %v1864_v52 = vmul.f32 %v4520_v61, %v4678_v28  ;;  %v4942_v21 = vpop.f32.mrb[43].mxu0 }
 0x147   :  { %v2849_v27 = vmax.f32 %v2785_v55, 0.0  ;;  %v1927_v62 = vadd.f32 %v1863_v10, %v1730_v53  ;;  %v2061_v58 = vmul.f32 %v4539_v12, %v4874_v26  ;;  %v2259_v50 = vmul.f32 %v4598_v47, %v4929_v9 }
 0x148   :  { %v2715_v11 = vadd.f32 %v2651_v16, %v2518_v20  ;;  %v789_v23 = vmin.f32 %v725_v54, 6.0  ;;  %v1534_v57 = vadd.f32 %v1470_v37, %v1337_v29  ;;  %v2456_v60 = vmul.f32 %v4526_v1, %v4692_v43  ;;  %v4970_v20 = vld [vmem:[#allocation2 + $0xc9] sm:$0xff] }
 0x149   :  { %v2913_v28 = vmin.f32 %v2849_v27, 6.0  ;;  %v2124_v45 = vadd.f32 %v2060_v5, %v1927_v62  ;;  %v2653_v6 = vmul.f32 %v4588_v41, %v4940_v25  ;;  %v526_v10 = vadd.f32 %v4491_v31, %v4815_v39  ;;  %v4956_v15 = vpop.f32.mrb[44].mxu0  ;;  %v4962_v5 = vld [vmem:[#allocation2 + $0xc8] sm:$0xff] }
 0x14a   :  { %v2786_v48 = vadd.f32 %v4661_v0, %v2715_v11  ;;  %962 = vst [vmem:[#allocation2 + $0x189] sm:$0xff] %v789_v23  ;;  %v1731_v16 = vadd.f32 %v1667_v4, %v1534_v57  ;;  %v1077_v63 = vmul.f32 %v4496_v32, %v4838_v14  ;;  %v1274_v43 = vmul.f32 %v4501_v36, %v1206_v59  ;;  %v4964_v18 = vpop.f32.mrb[45].mxu0  ;;  %v4974_v27 = vld [vmem:[#allocation2 + $0xca] sm:$0xff] }
 0x14b   :  { %3894 = vmatmul.mubr.f32.gmra.mrb[2].mxu1 %v2913_v28  ;;  %v2322_v55 = vadd.f32 %v2258_v56, %v2124_v45  ;;  %v724_v39 = vmax.f32 %v526_v10, 0.0  ;;  %v1471_v53 = vmul.f32 %v4510_v42, %v4844_v34  ;;  %v1668_v37 = vmul.f32 %v4554_v19, %v4901_v49  ;;  %v1207_v11 = vld [vmem:[#allocation2 + $0xa9] sm:$0xff]  ;;  %v4984_v10 = vld [vmem:[#allocation2 + $0xc1] sm:$0xff] }
 0x14c   :  { %v2850_v4 = vmax.f32 %v2786_v48, 0.0  ;;  %v1928_v54 = vadd.f32 %v1864_v52, %v1731_v16  ;;  %v1338_v14 = vadd.f32 %v1274_v43, %v1077_v63  ;;  %v1865_v29 = vmul.f32 %v4520_v61, %v4954_v35 }
 0x14d   :  { %v2519_v62 = vadd.f32 %v2455_v44, %v2322_v55  ;;  %v788_v59 = vmin.f32 %v724_v39, 6.0  ;;  %v2062_v56 = vmul.f32 %v4539_v12, %v4907_v2  ;;  %v2260_v34 = vmul.f32 %v4598_v47, %v4962_v5  ;;  %v4980_v23 = vpop.f32.mrb[46].mxu0 }
 0x14e   :  { %v2914_v57 = vmin.f32 %v2850_v4, 6.0  ;;  %v2125_v28 = vadd.f32 %v2061_v58, %v1928_v54  ;;  %v1535_v52 = vadd.f32 %v1471_v53, %v1338_v14  ;;  %v2457_v45 = vmul.f32 %v4526_v1, %v4970_v20  ;;  %v4986_v48 = vpop.f32.mrb[47].mxu0  ;;  %v5002_v4 = vld [vmem:[#allocation2 + $0xd9] sm:$0xff] }
 0x14f   :  { %v2716_v44 = vadd.f32 %v4921_v3, %v2519_v62  ;;  %961 = vst [vmem:[#allocation2 + $0x181] sm:$0xff] %v788_v59  ;;  %v4991_v16 = vmul.f32 %v4588_v41, %v4974_v27  ;;  %v541_v63 = vadd.f32 %v4827_v24, %v4491_v31  ;;  %v1078_v58 = vmul.f32 %v4496_v32, %v4867_v8  ;;  %v5000_v3 = vld [vmem:[#allocation2 + $0xd8] sm:$0xff] }
 0x150   :  { %3896 = vmatprep.mubr.f32.mxu1 %v2914_v57  ;;  %v2323_v43 = vadd.f32 %v2259_v50, %v2125_v28  ;;  %v1732_v55 = vadd.f32 %v1668_v37, %v1535_v52  ;;  %v1275_v39 = vmul.f32 %v4501_v36, %v1207_v11  ;;  %v1472_v53 = vmul.f32 %v4510_v42, %v4874_v26  ;;  %v5009_v24 = vld [vmem:[#allocation2 + $0xda] sm:$0xff] }
 0x151   :  { %v2787_v54 = vadd.f32 %v4661_v0, %v2716_v44  ;;  %v727_v14 = vmax.f32 %v541_v63, 0.0  ;;  %v1669_v31 = vmul.f32 %v4554_v19, %v4929_v9  ;;  %v1866_v32 = vmul.f32 %v4520_v61, %v4984_v10  ;;  %v5011_v8 = vpop.f32.mrb[48].mxu0  ;;  %v5030_v44 = vld [vmem:[%s6670_s2] ss:$0 sm:$0xff] }
 0x152   :  { %v2520_v36 = vadd.f32 %v2456_v60, %v2323_v43  ;;  %v1929_v50 = vadd.f32 %v1865_v29, %v1732_v55  ;;  %v1339_v42 = vadd.f32 %v1275_v39, %v1078_v58  ;;  %v2063_v26 = vmul.f32 %v4539_v12, %v4940_v25  ;;  %v5015_v37 = vpop.f32.mrb[49].mxu0 }
 0x153   :  { %v2851_v62 = vmax.f32 %v2787_v54, 0.0  ;;  %v791_v59 = vmin.f32 %v727_v14, 6.0  ;;  %v2261_v11 = vmul.f32 %v4598_v47, %v5000_v3  ;;  %v5021_v61 = vmul.f32 %v4526_v1, %v5002_v4  ;;  %v5037_v1 = vld [vmem:[%s6671_s3] ss:$0 sm:$0xff]  ;;  %v5060_v14 = vld [vmem:[#allocation2 + $0xe1] sm:$0xff] }
 0x154   :  { %v2717_v57 = vadd.f32 %v2653_v6, %v2520_v36  ;;  %v2126_v28 = vadd.f32 %v2062_v56, %v1929_v50  ;;  %v1536_v52 = vadd.f32 %v1472_v53, %v1339_v42  ;;  %v5025_v60 = vmul.f32 %v4588_v41, %v5009_v24  ;;  %v5044_v56 = vld [vmem:[%s6671_s3 + $0x1] ss:$0 sm:$0xff]  ;;  %v5054_v53 = vld [vmem:[%s6671_s3 + $0x2] ss:$0 sm:$0xff] }
 0x155   :  { %v2915_v29 = vmin.f32 %v2851_v62, 6.0  ;;  %964 = vst [vmem:[#allocation2 + $0x1d1] sm:$0xff] %v791_v59  ;;  %v536_v63 = vadd.f32 %v5030_v44, %v4832_v40  ;;  %v1079_v6 = vmul.f32 %v5037_v1, %v4901_v49  ;;  %v1276_v58 = vmul.f32 %v5044_v56, %v4954_v35  ;;  %v5048_v43 = vpop.f32.mrb[50].mxu0  ;;  %v5058_v54 = vld [vmem:[#allocation2 + $0xe0] sm:$0xff] }
 0x156   :  { %v2788_v40 = vadd.f32 %v4661_v0, %v2717_v57  ;;  %v2324_v55 = vadd.f32 %v2260_v34, %v2126_v28  ;;  %v1733_v39 = vadd.f32 %v1669_v31, %v1536_v52  ;;  %v1473_v49 = vmul.f32 %v5054_v53, %v4907_v2  ;;  %v5062_v36 = vpop.f32.mrb[51].mxu0  ;;  %v5069_v31 = vld [vmem:[%s6671_s3 + $0x4] ss:$0 sm:$0xff] }
 0x157   :  { %6676 = vst [vmem:[#allocation9_spill] sm:$0xff] %v5062_v36  ;;  %3897 = vmatmul.mubr.f32.gmra.mrb[4].mxu1 %v2915_v29  ;;  %v726_v35 = vmax.f32 %v536_v63, 0.0  ;;  %v1340_v50 = vadd.f32 %v1276_v58, %v1079_v6  ;;  %v1670_v34 = vmul.f32 %v4554_v19, %v4962_v5  ;;  %v1867_v2 = vmul.f32 %v5069_v31, %v4970_v20  ;;  %v5073_v42 = vld [vmem:[#allocation2 + $0xe2] sm:$0xff] }
 0x158   :  { %v2852_v62 = vmax.f32 %v2788_v40, 0.0  ;;  %v2521_v59 = vadd.f32 %v2457_v45, %v2324_v55  ;;  %v1930_v57 = vadd.f32 %v1866_v32, %v1733_v39  ;;  %v2064_v28 = vmul.f32 %v4539_v12, %v4974_v27  ;;  %v5082_v63 = vld [vmem:[%s6671_s3 + $0x7] ss:$0 sm:$0xff] }
 0x159   :  { %v790_v52 = vmin.f32 %v726_v35, 6.0  ;;  %v1537_v29 = vadd.f32 %v1473_v49, %v1340_v50  ;;  %v2262_v19 = vmul.f32 %v4598_v47, %v5058_v54  ;;  %v2459_v6 = vmul.f32 %v5082_v63, %v5060_v14  ;;  %v5086_v58 = vpop.f32.mrb[52].mxu0 }
 0x15a   :  { %6677 = vst [vmem:[#allocation10_spill] sm:$0xff] %v5086_v58  ;;  %v2916_v45 = vmin.f32 %v2852_v62, 6.0  ;;  %v2718_v32 = vadd.f32 %v4991_v16, %v2521_v59  ;;  %v2127_v40 = vadd.f32 %v2063_v26, %v1930_v57  ;;  %v2656_v12 = vmul.f32 %v4588_v41, %v5073_v42  ;;  %v5091_v55 = vpop.f32.mrb[53].mxu0  ;;  %v5099_v62 = vld [vmem:[#allocation2 + $0xf0] sm:$0xff] }
 0x15b   :  { %6678 = vst [vmem:[#allocation11_spill] sm:$0xff] %v5091_v55  ;;  %963 = vst [vmem:[#allocation2 + $0x1c9] sm:$0xff] %v790_v52  ;;  %v1734_v39 = vadd.f32 %v1670_v34, %v1537_v29  ;;  %v551_v49 = vadd.f32 %v5030_v44, %v4849_v22  ;;  %v1080_v35 = vmul.f32 %v5037_v1, %v4929_v9  ;;  %v5107_v34 = vld [vmem:[%s6671_s3 + $0x3] ss:$0 sm:$0xff]  ;;  %v5111_v9 = vld [vmem:[#allocation2 + $0xf1] sm:$0xff] }
 0x15c   :  { %v1277_v50 = vmul.f32 %v5044_v56, %v4984_v10  ;;  %3899 = vmatprep.mubr.f32.mxu1 %v2916_v45  ;;  %v2789_v16 = vadd.f32 %v4661_v0, %v2718_v32  ;;  %v2325_v26 = vadd.f32 %v2261_v11, %v2127_v40  ;;  %v1474_v59 = vmul.f32 %v5054_v53, %v4940_v25  ;;  %v5115_v11 = vld [vmem:[#allocation2 + $0xf2] sm:$0xff]  ;;  %v5121_v32 = vld [vmem:[%s6671_s3 + $0x5] ss:$0 sm:$0xff] }
 0x15d   :  { %v1671_v22 = vmul.f32 %v5107_v34, %v5000_v3  ;;  %v1931_v10 = vadd.f32 %v1867_v2, %v1734_v39  ;;  %v729_v57 = vmax.f32 %v551_v49, 0.0  ;;  %v1868_v29 = vmul.f32 %v5069_v31, %v5002_v4  ;;  %v5134_v58 = vpop.f32.mrb[54].mxu0 }
 0x15e   :  { %v1341_v52 = vadd.f32 %v1277_v50, %v1080_v35  ;;  %v2853_v45 = vmax.f32 %v2789_v16, 0.0  ;;  %v2522_v25 = vadd.f32 %v5021_v61, %v2325_v26  ;;  %v2065_v40 = vmul.f32 %v5121_v32, %v5009_v24  ;;  %6679 = vst [vmem:[#allocation12_spill] sm:$0xff] %v5134_v58 }
 0x15f   :  { %v2263_v2 = vmul.f32 %v4598_v47, %v5099_v62  ;;  %v2128_v39 = vadd.f32 %v2064_v28, %v1931_v10  ;;  %v793_v49 = vmin.f32 %v729_v57, 6.0  ;;  %v2460_v50 = vmul.f32 %v5082_v63, %v5111_v9  ;;  %v5140_v10 = vld [vmem:[#allocation2 + $0xf8] sm:$0xff] }
 0x160   :  { %v1538_v35 = vadd.f32 %v1474_v59, %v1341_v52  ;;  %v2917_v16 = vmin.f32 %v2853_v45, 6.0  ;;  %v2719_v61 = vadd.f32 %v5025_v60, %v2522_v25  ;;  %v2657_v26 = vmul.f32 %v4588_v41, %v5115_v11  ;;  %v5147_v57 = vld [vmem:[#allocation2 + $0xf9] sm:$0xff] }
 0x161   :  { %v546_v55 = vadd.f32 %v5030_v44, %v4855_v30  ;;  %v2326_v36 = vadd.f32 %v2262_v19, %v2128_v39  ;;  %966 = vst [vmem:[#allocation2 + $0x1e9] sm:$0xff] %v793_v49  ;;  %v1081_v28 = vmul.f32 %v5037_v1, %v4962_v5  ;;  %v1278_v59 = vmul.f32 %v5044_v56, %v4970_v20  ;;  %v5151_v45 = vld [vmem:[#allocation2 + $0xfa] sm:$0xff] }
 0x162   :  { %v1735_v47 = vadd.f32 %v1671_v22, %v1538_v35  ;;  %3900 = vmatmul.mubr.f32.gmra.mrb[6].mxu1 %v2917_v16  ;;  %v2790_v60 = vadd.f32 %v4661_v0, %v2719_v61  ;;  %v1475_v30 = vmul.f32 %v5054_v53, %v4974_v27  ;;  %v1672_v19 = vmul.f32 %v5107_v34, %v5058_v54  ;;  %v5158_v27 = vld [vmem:[%s6671_s3 + $0x6] ss:$0 sm:$0xff]  ;;  %v5167_v61 = vld [vmem:[%s6671_s3 + $0x8] ss:$0 sm:$0xff] }
 0x163   :  { %v728_v41 = vmax.f32 %v546_v55, 0.0  ;;  %v2523_v22 = vadd.f32 %v2459_v6, %v2326_v36  ;;  %v1342_v5 = vadd.f32 %v1278_v59, %v1081_v28  ;;  %v1869_v20 = vmul.f32 %v5069_v31, %v5060_v14 }
 0x164   :  { %v1932_v52 = vadd.f32 %v1868_v29, %v1735_v47  ;;  %v2854_v25 = vmax.f32 %v2790_v60, 0.0  ;;  %v2066_v55 = vmul.f32 %v5121_v32, %v5073_v42  ;;  %v2264_v36 = vmul.f32 %v5158_v27, %v5140_v10 }
 0x165   :  { %v792_v39 = vmin.f32 %v728_v41, 6.0  ;;  %v2720_v6 = vadd.f32 %v2656_v12, %v2523_v22  ;;  %v1539_v49 = vadd.f32 %v1475_v30, %v1342_v5  ;;  %v2461_v35 = vmul.f32 %v5082_v63, %v5147_v57  ;;  %v5180_v22 = vld [vmem:[#allocation2 + $0x108] sm:$0xff] }
 0x166   :  { %v2129_v29 = vadd.f32 %v2065_v40, %v1932_v52  ;;  %v2918_v16 = vmin.f32 %v2854_v25, 6.0  ;;  %v2658_v47 = vmul.f32 %v5167_v61, %v5151_v45  ;;  %v561_v28 = vadd.f32 %v5030_v44, %v4869_v38  ;;  %v5175_v40 = vpop.f32.mrb[55].mxu0  ;;  %v5182_v52 = vld [vmem:[#allocation2 + $0x109] sm:$0xff] }
 0x167   :  { %965 = vst [vmem:[#allocation2 + $0x1e1] sm:$0xff] %v792_v39  ;;  %v1082_v12 = vmul.f32 %v5037_v1, %v5000_v3  ;;  %6680 = vst [vmem:[#allocation13_spill] sm:$0xff] %v5175_v40  ;;  %v2791_v59 = vadd.f32 %v4661_v0, %v2720_v6  ;;  %v1736_v41 = vadd.f32 %v1672_v19, %v1539_v49 }
 0x168   :  { %v2327_v60 = vadd.f32 %v2263_v2, %v2129_v29  ;;  %v1279_v30 = vmul.f32 %v5044_v56, %v5002_v4  ;;  %3902 = vmatprep.mubr.f32.mxu1 %v2918_v16  ;;  %v731_v5 = vmax.f32 %v561_v28, 0.0  ;;  %v1476_v38 = vmul.f32 %v5054_v53, %v5009_v24  ;;  %v5190_v4 = vld [vmem:[#allocation2 + $0x10a] sm:$0xff] }
 0x169   :  { %v1673_v3 = vmul.f32 %v5107_v34, %v5099_v62  ;;  %v1870_v0 = vmul.f32 %v5069_v31, %v5111_v9  ;;  %v2855_v2 = vmax.f32 %v2791_v59, 0.0  ;;  %v1933_v25 = vadd.f32 %v1869_v20, %v1736_v41  ;;  %v5198_v59 = vpop.f32.mrb[56].mxu0 }
 0x16a   :  { %v2524_v19 = vadd.f32 %v2460_v50, %v2327_v60  ;;  %v1343_v39 = vadd.f32 %v1279_v30, %v1082_v12  ;;  %v795_v6 = vmin.f32 %v731_v5, 6.0  ;;  %v2067_v29 = vmul.f32 %v5121_v32, %v5115_v11 }
 0x16b   :  { %v2265_v49 = vmul.f32 %v5158_v27, %v5180_v22  ;;  %v2462_v24 = vmul.f32 %v5082_v63, %v5182_v52  ;;  %v2919_v16 = vmin.f32 %v2855_v2, 6.0  ;;  %v2130_v40 = vadd.f32 %v2066_v55, %v1933_v25  ;;  %v5224_v25 = vld [vmem:[#allocation2 + $0x112] sm:$0xff] }
 0x16c   :  { %v2721_v28 = vadd.f32 %v2657_v26, %v2524_v19  ;;  %v1540_v58 = vadd.f32 %v1476_v38, %v1343_v39  ;;  %968 = vst [vmem:[#allocation2 + $0x201] sm:$0xff] %v795_v6  ;;  %v2659_v50 = vmul.f32 %v5167_v61, %v5190_v4  ;;  %v556_v20 = vadd.f32 %v5030_v44, %v4876_v17  ;;  %v5211_v26 = vld [vmem:[%s6672_s4] ss:$0 sm:$0xff]  ;;  %v5216_v17 = vld [vmem:[#allocation2 + $0x110] sm:$0xff] }
 0x16d   :  { %v1083_v12 = vmul.f32 %v5037_v1, %v5058_v54  ;;  %v1280_v60 = vmul.f32 %v5044_v56, %v5060_v14  ;;  %3903 = vmatmul.mubr.f32.gmra.mrb[8].mxu1 %v2919_v16  ;;  %v2328_v41 = vadd.f32 %v2264_v36, %v2130_v40  ;;  %v1477_v5 = vmul.f32 %v5054_v53, %v5073_v42  ;;  %v5218_v38 = vld [vmem:[#allocation2 + $0x111] sm:$0xff] }
 0x16e   :  { %v2792_v55 = vadd.f32 %v5211_v26, %v2721_v28  ;;  %v1737_v30 = vadd.f32 %v1673_v3, %v1540_v58  ;;  %v730_v54 = vmax.f32 %v556_v20, 0.0  ;;  %v1674_v14 = vmul.f32 %v5107_v34, %v5140_v10 }
 0x16f   :  { %v1344_v2 = vadd.f32 %v1280_v60, %v1083_v12  ;;  %v1871_v19 = vmul.f32 %v5069_v31, %v5147_v57  ;;  %v2525_v36 = vadd.f32 %v2461_v35, %v2328_v41  ;;  %v2068_v42 = vmul.f32 %v5121_v32, %v5151_v45 }
 0x170   :  { %v2856_v39 = vmax.f32 %v2792_v55, 0.0  ;;  %v1934_v58 = vadd.f32 %v1870_v0, %v1737_v30  ;;  %v794_v40 = vmin.f32 %v730_v54, 6.0  ;;  %v2266_v6 = vmul.f32 %v5158_v27, %v5216_v17  ;;  %v5234_v55 = vpop.f32.mrb[57].mxu0 }
 0x171   :  { %v1541_v3 = vadd.f32 %v1477_v5, %v1344_v2  ;;  %v2463_v16 = vmul.f32 %v5082_v63, %v5218_v38  ;;  %v2722_v20 = vadd.f32 %v2658_v47, %v2525_v36  ;;  %v2660_v60 = vmul.f32 %v5167_v61, %v5224_v25  ;;  %v5242_v5 = vld [vmem:[#allocation2 + $0x120] sm:$0xff] }
 0x172   :  { %v2920_v28 = vmin.f32 %v2856_v39, 6.0  ;;  %v2131_v12 = vadd.f32 %v2067_v29, %v1934_v58  ;;  %967 = vst [vmem:[#allocation2 + $0x1f9] sm:$0xff] %v794_v40  ;;  %v571_v0 = vadd.f32 %v5030_v44, %v4888_v33  ;;  %v1084_v41 = vmul.f32 %v5037_v1, %v5099_v62  ;;  %v5253_v36 = vld [vmem:[#allocation2 + $0x122] sm:$0xff] }
 0x173   :  { %v1738_v35 = vadd.f32 %v1674_v14, %v1541_v3  ;;  %v1281_v30 = vmul.f32 %v5044_v56, %v5111_v9  ;;  %v2793_v47 = vadd.f32 %v5211_v26, %v2722_v20  ;;  %v1478_v54 = vmul.f32 %v5054_v53, %v5115_v11  ;;  %v5249_v14 = vld [vmem:[#allocation2 + $0x121] sm:$0xff] }
 0x174   :  { %3905 = vmatprep.mubr.f32.mxu1 %v2920_v28  ;;  %v2329_v29 = vadd.f32 %v2265_v49, %v2131_v12  ;;  %v1675_v2 = vmul.f32 %v5107_v34, %v5180_v22  ;;  %v733_v39 = vmax.f32 %v571_v0, 0.0  ;;  %v1872_v9 = vmul.f32 %v5069_v31, %v5182_v52 }
 0x175   :  { %v1935_v33 = vadd.f32 %v1871_v19, %v1738_v35  ;;  %v1345_v62 = vadd.f32 %v1281_v30, %v1084_v41  ;;  %v2857_v58 = vmax.f32 %v2793_v47, 0.0  ;;  %v2069_v49 = vmul.f32 %v5121_v32, %v5190_v4  ;;  %v5265_v41 = vpop.f32.mrb[58].mxu0 }
 0x176   :  { %v2526_v40 = vadd.f32 %v2462_v24, %v2329_v29  ;;  %v2267_v11 = vmul.f32 %v5158_v27, %v5242_v5  ;;  %v797_v28 = vmin.f32 %v733_v39, 6.0  ;;  %v2464_v19 = vmul.f32 %v5082_v63, %v5249_v14  ;;  %v5278_v39 = vld [vmem:[#allocation2 + $0x129] sm:$0xff] }
 0x177   :  { %v2132_v3 = vadd.f32 %v2068_v42, %v1935_v33  ;;  %v1542_v20 = vadd.f32 %v1478_v54, %v1345_v62  ;;  %v2921_v12 = vmin.f32 %v2857_v58, 6.0  ;;  %v2661_v0 = vmul.f32 %v5167_v61, %v5253_v36  ;;  %v5271_v54 = vld [vmem:[#allocation2 + $0x128] sm:$0xff] }
 0x178   :  { %v2723_v35 = vadd.f32 %v2659_v50, %v2526_v40  ;;  %v566_v24 = vadd.f32 %v5030_v44, %v4894_v13  ;;  %970 = vst [vmem:[#allocation2 + $0x219] sm:$0xff] %v797_v28  ;;  %v1085_v42 = vmul.f32 %v5037_v1, %v5140_v10  ;;  %v1282_v29 = vmul.f32 %v5044_v56, %v5147_v57  ;;  %v5282_v58 = vld [vmem:[#allocation2 + $0x12a] sm:$0xff] }
 0x179   :  { %v2330_v30 = vadd.f32 %v2266_v6, %v2132_v3  ;;  %v1739_v47 = vadd.f32 %v1675_v2, %v1542_v20  ;;  %3906 = vmatmul.mubr.f32.gmra.mrb[10].mxu1 %v2921_v12  ;;  %v1479_v13 = vmul.f32 %v5054_v53, %v5151_v45  ;;  %v1676_v6 = vmul.f32 %v5107_v34, %v5216_v17 }
 0x17a   :  { %v2794_v50 = vadd.f32 %v5211_v26, %v2723_v35  ;;  %v732_v33 = vmax.f32 %v566_v24, 0.0  ;;  %v1346_v10 = vadd.f32 %v1282_v29, %v1085_v42  ;;  %v1873_v57 = vmul.f32 %v5069_v31, %v5218_v38  ;;  %v5296_v42 = vpop.f32.mrb[59].mxu0 }
 0x17b   :  { %v2527_v2 = vadd.f32 %v2463_v16, %v2330_v30  ;;  %v1936_v62 = vadd.f32 %v1872_v9, %v1739_v47  ;;  %v2070_v28 = vmul.f32 %v5121_v32, %v5224_v25  ;;  %v2268_v45 = vmul.f32 %v5158_v27, %v5271_v54  ;;  %6681 = vst [vmem:[#allocation14_spill] sm:$0xff] %v5296_v42 }
 0x17c   :  { %v2858_v40 = vmax.f32 %v2794_v50, 0.0  ;;  %v796_v3 = vmin.f32 %v732_v33, 6.0  ;;  %v1543_v35 = vadd.f32 %v1479_v13, %v1346_v10  ;;  %v2465_v16 = vmul.f32 %v5082_v63, %v5278_v39  ;;  %v5301_v33 = vld [vmem:[#allocation2 + $0x138] sm:$0xff] }
 0x17d   :  { %v2724_v20 = vadd.f32 %v2660_v60, %v2527_v2  ;;  %v2133_v12 = vadd.f32 %v2069_v49, %v1936_v62  ;;  %v2662_v24 = vmul.f32 %v5167_v61, %v5282_v58  ;;  %v581_v30 = vadd.f32 %v5030_v44, %v4911_v7  ;;  %v5303_v13 = vld [vmem:[#allocation2 + $0x139] sm:$0xff] }
 0x17e   :  { %v2922_v9 = vmin.f32 %v2858_v40, 6.0  ;;  %969 = vst [vmem:[#allocation2 + $0x211] sm:$0xff] %v796_v3  ;;  %v1086_v47 = vmul.f32 %v5037_v1, %v5180_v22  ;;  %v1740_v29 = vadd.f32 %v1676_v6, %v1543_v35  ;;  %v1283_v50 = vmul.f32 %v5044_v56, %v5182_v52  ;;  %v5311_v52 = vld [vmem:[#allocation2 + $0x13a] sm:$0xff] }
 0x17f   :  { %v2795_v60 = vadd.f32 %v5211_v26, %v2724_v20  ;;  %v2331_v49 = vadd.f32 %v2267_v11, %v2133_v12  ;;  %v735_v2 = vmax.f32 %v581_v30, 0.0  ;;  %v1480_v7 = vmul.f32 %v5054_v53, %v5190_v4 }
 0x180   :  { %3908 = vmatprep.mubr.f32.mxu1 %v2922_v9  ;;  %v1677_v22 = vmul.f32 %v5107_v34, %v5242_v5  ;;  %v1874_v62 = vmul.f32 %v5069_v31, %v5249_v14  ;;  %v1937_v10 = vadd.f32 %v1873_v57, %v1740_v29  ;;  %v1347_v40 = vadd.f32 %v1283_v50, %v1086_v47 }
 0x181   :  { %v2859_v11 = vmax.f32 %v2795_v60, 0.0  ;;  %v2528_v6 = vadd.f32 %v2464_v19, %v2331_v49  ;;  %v799_v3 = vmin.f32 %v735_v2, 6.0  ;;  %v2071_v20 = vmul.f32 %v5121_v32, %v5253_v36  ;;  %v5319_v60 = vpop.f32.mrb[60].mxu0  ;;  %v5332_v2 = vld [vmem:[#allocation2 + $0x140] sm:$0xff] }
 0x182   :  { %v2269_v12 = vmul.f32 %v5158_v27, %v5301_v33  ;;  %v2466_v4 = vmul.f32 %v5082_v63, %v5303_v13  ;;  %v2134_v30 = vadd.f32 %v2070_v28, %v1937_v10  ;;  %v1544_v42 = vadd.f32 %v1480_v7, %v1347_v40  ;;  %v5334_v7 = vld [vmem:[#allocation2 + $0x141] sm:$0xff] }
 0x183   :  { %v2923_v35 = vmin.f32 %v2859_v11, 6.0  ;;  %v2725_v9 = vadd.f32 %v2661_v0, %v2528_v6  ;;  %972 = vst [vmem:[#allocation2 + $0x231] sm:$0xff] %v799_v3  ;;  %v2663_v19 = vmul.f32 %v5167_v61, %v5311_v52  ;;  %v576_v57 = vadd.f32 %v5030_v44, %v4917_v51  ;;  %v5340_v6 = vld [vmem:[#allocation2 + $0x142] sm:$0xff] }
 0x184   :  { %v1087_v47 = vmul.f32 %v5037_v1, %v5216_v17  ;;  %v1284_v49 = vmul.f32 %v5044_v56, %v5218_v38  ;;  %v2332_v28 = vadd.f32 %v2268_v45, %v2134_v30  ;;  %v1741_v29 = vadd.f32 %v1677_v22, %v1544_v42 }
 0x185   :  { %3909 = vmatmul.mubr.f32.gmra.mrb[12].mxu1 %v2923_v35  ;;  %v2796_v0 = vadd.f32 %v5211_v26, %v2725_v9  ;;  %v1481_v50 = vmul.f32 %v5054_v53, %v5224_v25  ;;  %v734_v11 = vmax.f32 %v576_v57, 0.0  ;;  %v1678_v17 = vmul.f32 %v5107_v34, %v5271_v54 }
 0x186   :  { %v1348_v51 = vadd.f32 %v1284_v49, %v1087_v47  ;;  %v1875_v38 = vmul.f32 %v5069_v31, %v5278_v39  ;;  %v2529_v45 = vadd.f32 %v2465_v16, %v2332_v28  ;;  %v1938_v42 = vadd.f32 %v1874_v62, %v1741_v29  ;;  %v5350_v49 = vpop.f32.mrb[61].mxu0  ;;  %v5358_v29 = vld [vmem:[#allocation2 + $0x150] sm:$0xff] }
 0x187   :  { %v2860_v10 = vmax.f32 %v2796_v0, 0.0  ;;  %v2072_v25 = vmul.f32 %v5121_v32, %v5282_v58  ;;  %v798_v22 = vmin.f32 %v734_v11, 6.0  ;;  %v2270_v3 = vmul.f32 %v5158_v27, %v5332_v2 }
 0x188   :  { %v1545_v40 = vadd.f32 %v1481_v50, %v1348_v51  ;;  %v2467_v35 = vmul.f32 %v5082_v63, %v5334_v7  ;;  %v2726_v30 = vadd.f32 %v2662_v24, %v2529_v45  ;;  %v2135_v57 = vadd.f32 %v2071_v20, %v1938_v42  ;;  %v5365_v51 = vld [vmem:[#allocation2 + $0x151] sm:$0xff] }
 0x189   :  { %v2924_v9 = vmin.f32 %v2860_v10, 6.0  ;;  %v2664_v47 = vmul.f32 %v5167_v61, %v5340_v6  ;;  %971 = vst [vmem:[#allocation2 + $0x229] sm:$0xff] %v798_v22  ;;  %v591_v62 = vadd.f32 %v5030_v44, %v4936_v46  ;;  %v1088_v0 = vmul.f32 %v5037_v1, %v5242_v5  ;;  %v5369_v10 = vld [vmem:[#allocation2 + $0x152] sm:$0xff] }
 0x18a   :  { %v1742_v16 = vadd.f32 %v1678_v17, %v1545_v40  ;;  %v1285_v28 = vmul.f32 %v5044_v56, %v5249_v14  ;;  %v2797_v24 = vadd.f32 %v5211_v26, %v2726_v30  ;;  %v2333_v20 = vadd.f32 %v2269_v12, %v2135_v57 }
 0x18b   :  { %3911 = vmatprep.mubr.f32.mxu1 %v2924_v9  ;;  %v1482_v50 = vmul.f32 %v5054_v53, %v5253_v36  ;;  %v1679_v11 = vmul.f32 %v5107_v34, %v5301_v33  ;;  %v737_v17 = vmax.f32 %v591_v62, 0.0  ;;  %v1876_v14 = vmul.f32 %v5069_v31, %v5303_v13  ;;  %v5381_v62 = vpop.f32.mrb[62].mxu0 }
 0x18c   :  { %v1939_v46 = vadd.f32 %v1875_v38, %v1742_v16  ;;  %v1349_v5 = vadd.f32 %v1285_v28, %v1088_v0  ;;  %v2861_v45 = vmax.f32 %v2797_v24, 0.0  ;;  %v2530_v42 = vadd.f32 %v2466_v4, %v2333_v20  ;;  %v5387_v20 = vld [vmem:[#allocation2 + $0x158] sm:$0xff] }
 0x18d   :  { %v2073_v12 = vmul.f32 %v5121_v32, %v5311_v52  ;;  %v2271_v36 = vmul.f32 %v5158_v27, %v5358_v29  ;;  %v801_v40 = vmin.f32 %v737_v17, 6.0  ;;  %v2468_v38 = vmul.f32 %v5082_v63, %v5365_v51 }
 0x18e   :  { %v2136_v22 = vadd.f32 %v2072_v25, %v1939_v46  ;;  %v1546_v9 = vadd.f32 %v1482_v50, %v1349_v5  ;;  %v2925_v30 = vmin.f32 %v2861_v45, 6.0  ;;  %v2727_v57 = vadd.f32 %v2663_v19, %v2530_v42  ;;  %v5394_v46 = vld [vmem:[#allocation2 + $0x159] sm:$0xff] }
 0x18f   :  { %v2665_v16 = vmul.f32 %v5167_v61, %v5369_v10  ;;  %v586_v4 = vadd.f32 %v5030_v44, %v4942_v21  ;;  %974 = vst [vmem:[#allocation2 + $0x249] sm:$0xff] %v801_v40  ;;  %v1089_v25 = vmul.f32 %v5037_v1, %v5271_v54  ;;  %v1286_v24 = vmul.f32 %v5044_v56, %v5278_v39  ;;  %v5398_v5 = vld [vmem:[#allocation2 + $0x15a] sm:$0xff] }
 0x190   :  { %v2334_v0 = vadd.f32 %v2270_v3, %v2136_v22  ;;  %v1743_v28 = vadd.f32 %v1679_v11, %v1546_v9  ;;  %3912 = vmatmul.mubr.f32.gmra.mrb[14].mxu1 %v2925_v30  ;;  %v2798_v19 = vadd.f32 %v5211_v26, %v2727_v57  ;;  %v1483_v21 = vmul.f32 %v5054_v53, %v5282_v58 }
 0x191   :  { %v736_v50 = vmax.f32 %v586_v4, 0.0  ;;  %v1680_v3 = vmul.f32 %v5107_v34, %v5332_v2  ;;  %v1350_v54 = vadd.f32 %v1286_v24, %v1089_v25  ;;  %v1877_v39 = vmul.f32 %v5069_v31, %v5334_v7 }
 0x192   :  { %v2531_v11 = vadd.f32 %v2467_v35, %v2334_v0  ;;  %v1940_v17 = vadd.f32 %v1876_v14, %v1743_v28  ;;  %v2862_v45 = vmax.f32 %v2798_v19, 0.0  ;;  %v2074_v22 = vmul.f32 %v5121_v32, %v5340_v6  ;;  %v5412_v28 = vpop.f32.mrb[63].mxu0  ;;  %v5417_v19 = vld [vmem:[#allocation2 + $0x168] sm:$0xff] }
 0x193   :  { %v800_v42 = vmin.f32 %v736_v50, 6.0  ;;  %v2272_v58 = vmul.f32 %v5158_v27, %v5387_v20  ;;  %v1547_v30 = vadd.f32 %v1483_v21, %v1350_v54  ;;  %v2469_v35 = vmul.f32 %v5082_v63, %v5394_v46  ;;  %v5419_v50 = vld [vmem:[#allocation2 + $0x169] sm:$0xff] }
 0x194   :  { %v2728_v40 = vadd.f32 %v2664_v47, %v2531_v11  ;;  %v2137_v9 = vadd.f32 %v2073_v12, %v1940_v17  ;;  %v2926_v14 = vmin.f32 %v2862_v45, 6.0  ;;  %v2666_v57 = vmul.f32 %v5167_v61, %v5398_v5 }
 0x195   :  { %973 = vst [vmem:[#allocation2 + $0x241] sm:$0xff] %v800_v42  ;;  %v601_v4 = vadd.f32 %v5030_v44, %v4956_v15  ;;  %v1090_v0 = vmul.f32 %v5037_v1, %v5301_v33  ;;  %v1744_v25 = vadd.f32 %v1680_v3, %v1547_v30  ;;  %v1287_v24 = vmul.f32 %v5044_v56, %v5303_v13  ;;  %v5427_v13 = vld [vmem:[#allocation2 + $0x16a] sm:$0xff] }
 0x196   :  { %v2799_v47 = vadd.f32 %v5211_v26, %v2728_v40  ;;  %v2335_v12 = vadd.f32 %v2271_v36, %v2137_v9  ;;  %3914 = vmatprep.mubr.f32.mxu1 %v2926_v14  ;;  %v1484_v15 = vmul.f32 %v5054_v53, %v5311_v52  ;;  %v1681_v33 = vmul.f32 %v5107_v34, %v5358_v29 }
 0x197   :  { %v739_v21 = vmax.f32 %v601_v4, 0.0  ;;  %v1878_v11 = vmul.f32 %v5069_v31, %v5365_v51  ;;  %v1941_v17 = vadd.f32 %v1877_v39, %v1744_v25  ;;  %v1351_v54 = vadd.f32 %v1287_v24, %v1090_v0  ;;  %v5446_v24 = vld [vmem:[#allocation2 + $0x170] sm:$0xff] }
 0x198   :  { %v2863_v36 = vmax.f32 %v2799_v47, 0.0  ;;  %v2532_v3 = vadd.f32 %v2468_v38, %v2335_v12  ;;  %v2075_v42 = vmul.f32 %v5121_v32, %v5369_v10  ;;  %v2273_v40 = vmul.f32 %v5158_v27, %v5417_v19 }
 0x199   :  { %v803_v45 = vmin.f32 %v739_v21, 6.0  ;;  %v2470_v52 = vmul.f32 %v5082_v63, %v5419_v50  ;;  %v2138_v14 = vadd.f32 %v2074_v22, %v1941_v17  ;;  %v1548_v4 = vadd.f32 %v1484_v15, %v1351_v54  ;;  %v5448_v21 = vld [vmem:[#allocation2 + $0x171] sm:$0xff] }
 0x19a   :  { %v2927_v9 = vmin.f32 %v2863_v36, 6.0  ;;  %v2729_v30 = vadd.f32 %v2665_v16, %v2532_v3  ;;  %v2667_v38 = vmul.f32 %v5167_v61, %v5427_v13  ;;  %v596_v39 = vadd.f32 %v5030_v44, %v4964_v18  ;;  %v5454_v36 = vld [vmem:[#allocation2 + $0x172] sm:$0xff] }
 0x19b   :  { %976 = vst [vmem:[#allocation2 + $0x261] sm:$0xff] %v803_v45  ;;  %v1091_v0 = vmul.f32 %v5037_v1, %v5332_v2  ;;  %v1288_v47 = vmul.f32 %v5044_v56, %v5334_v7  ;;  %v2336_v25 = vadd.f32 %v2272_v58, %v2138_v14  ;;  %v1745_v16 = vadd.f32 %v1681_v33, %v1548_v4 }
 0x19c   :  { %3915 = vmatmul.mubr.f32.gmra.mrb[16].mxu1 %v2927_v9  ;;  %v2800_v12 = vadd.f32 %v5211_v26, %v2729_v30  ;;  %v1485_v22 = vmul.f32 %v5054_v53, %v5340_v6  ;;  %v738_v15 = vmax.f32 %v596_v39, 0.0  ;;  %v1682_v2 = vmul.f32 %v5107_v34, %v5387_v20 }
 0x19d   :  { %v1352_v18 = vadd.f32 %v1288_v47, %v1091_v0  ;;  %v1879_v7 = vmul.f32 %v5069_v31, %v5394_v46  ;;  %v2533_v58 = vadd.f32 %v2469_v35, %v2336_v25  ;;  %v1942_v33 = vadd.f32 %v1878_v11, %v1745_v16 }
 0x19e   :  { %v2864_v3 = vmax.f32 %v2800_v12, 0.0  ;;  %v2076_v6 = vmul.f32 %v5121_v32, %v5398_v5  ;;  %v802_v17 = vmin.f32 %v738_v15, 6.0  ;;  %v2274_v45 = vmul.f32 %v5158_v27, %v5446_v24  ;;  %v2207_v12 = vld [vmem:[#allocation2 + $0x180] sm:$0xff] }
 0x19f   :  { %v1549_v54 = vadd.f32 %v1485_v22, %v1352_v18  ;;  %v2471_v9 = vmul.f32 %v5082_v63, %v5448_v21  ;;  %v2730_v14 = vadd.f32 %v2666_v57, %v2533_v58  ;;  %v2139_v4 = vadd.f32 %v2075_v42, %v1942_v33  ;;  %v2404_v22 = vld [vmem:[#allocation2 + $0x181] sm:$0xff] }
 0x1a0   :  { %v2928_v30 = vmin.f32 %v2864_v3, 6.0  ;;  %v2668_v39 = vmul.f32 %v5167_v61, %v5454_v36  ;;  %975 = vst [vmem:[#allocation2 + $0x259] sm:$0xff] %v802_v17  ;;  %v611_v11 = vadd.f32 %v5030_v44, %v4980_v23  ;;  %v1092_v0 = vmul.f32 %v5037_v1, %v5358_v29 }
 0x1a1   :  { %v1746_v35 = vadd.f32 %v1682_v2, %v1549_v54  ;;  %v1289_v47 = vmul.f32 %v5044_v56, %v5365_v51  ;;  %v2801_v25 = vadd.f32 %v5211_v26, %v2730_v14  ;;  %v2337_v57 = vadd.f32 %v2273_v40, %v2139_v4  ;;  %v2601_v2 = vld [vmem:[#allocation2 + $0x182] sm:$0xff] }
 0x1a2   :  { %3917 = vmatprep.mubr.f32.mxu1 %v2928_v30  ;;  %v1486_v42 = vmul.f32 %v5054_v53, %v5369_v10  ;;  %v1683_v16 = vmul.f32 %v5107_v34, %v5417_v19  ;;  %v741_v23 = vmax.f32 %v611_v11, 0.0  ;;  %v1880_v29 = vmul.f32 %v5069_v31, %v5419_v50 }
 0x1a3   :  { %v1943_v15 = vadd.f32 %v1879_v7, %v1746_v35  ;;  %v1353_v18 = vadd.f32 %v1289_v47, %v1092_v0  ;;  %v2865_v51 = vmax.f32 %v2801_v25, 0.0  ;;  %v2534_v3 = vadd.f32 %v2470_v52, %v2337_v57  ;;  %v5488_v0 = vld [vmem:[#allocation2 + $0x188] sm:$0xff] }
 0x1a4   :  { %v2077_v58 = vmul.f32 %v5121_v32, %v5427_v13  ;;  %v2275_v40 = vmul.f32 %v5158_v27, %v2207_v12  ;;  %v805_v10 = vmin.f32 %v741_v23, 6.0  ;;  %v2472_v54 = vmul.f32 %v5082_v63, %v2404_v22 }
 0x1a5   :  { %v2140_v33 = vadd.f32 %v2076_v6, %v1943_v15  ;;  %v1550_v17 = vadd.f32 %v1486_v42, %v1353_v18  ;;  %v2929_v30 = vmin.f32 %v2865_v51, 6.0  ;;  %v2731_v7 = vadd.f32 %v2667_v38, %v2534_v3 }
 0x1a6   :  { %v2669_v14 = vmul.f32 %v5167_v61, %v2601_v2  ;;  %v606_v4 = vadd.f32 %v5030_v44, %v4986_v48  ;;  %978 = vst [vmem:[#allocation2 + $0x279] sm:$0xff] %v805_v10  ;;  %v1093_v11 = vmul.f32 %v5037_v1, %v5387_v20  ;;  %v1290_v6 = vmul.f32 %v5044_v56, %v5394_v46  ;;  %v2602_v46 = vld [vmem:[#allocation2 + $0x18a] sm:$0xff] }
 0x1a7   :  { %v2338_v35 = vadd.f32 %v2274_v45, %v2140_v33  ;;  %v1747_v52 = vadd.f32 %v1683_v16, %v1550_v17  ;;  %3918 = vmatmul.mubr.f32.gmra.mrb[18].mxu1 %v2929_v30  ;;  %v2802_v47 = vadd.f32 %v5211_v26, %v2731_v7  ;;  %v1487_v25 = vmul.f32 %v5054_v53, %v5398_v5  ;;  %v2405_v45 = vld [vmem:[#allocation2 + $0x189] sm:$0xff] }
 0x1a8   :  { %v740_v38 = vmax.f32 %v606_v4, 0.0  ;;  %v1684_v48 = vmul.f32 %v5107_v34, %v5446_v24  ;;  %v1354_v16 = vadd.f32 %v1290_v6, %v1093_v11  ;;  %v1881_v20 = vmul.f32 %v5069_v31, %v5448_v21 }
 0x1a9   :  { %v2535_v57 = vadd.f32 %v2471_v9, %v2338_v35  ;;  %v1944_v42 = vadd.f32 %v1880_v29, %v1747_v52  ;;  %v2866_v15 = vmax.f32 %v2802_v47, 0.0  ;;  %v2078_v18 = vmul.f32 %v5121_v32, %v5454_v36 }
 0x1aa   :  { %v804_v23 = vmin.f32 %v740_v38, 6.0  ;;  %v2276_v51 = vmul.f32 %v5158_v27, %v5488_v0  ;;  %v1551_v33 = vadd.f32 %v1487_v25, %v1354_v16  ;;  %v2473_v10 = vmul.f32 %v5082_v63, %v2405_v45 }
 0x1ab   :  { %v2732_v5 = vadd.f32 %v2668_v39, %v2535_v57  ;;  %v2141_v3 = vadd.f32 %v2077_v58, %v1944_v42  ;;  %v2930_v9 = vmin.f32 %v2866_v15, 6.0  ;;  %v2670_v29 = vmul.f32 %v5167_v61, %v2602_v46  ;;  %v2406_v58 = vld [vmem:[#allocation2 + $0x199] sm:$0xff] }
 0x1ac   :  { %977 = vst [vmem:[#allocation2 + $0x271] sm:$0xff] %v804_v23  ;;  %v621_v17 = vadd.f32 %v5030_v44, %v5011_v8  ;;  %v1094_v30 = vmul.f32 %v5037_v1, %v5417_v19  ;;  %v1748_v35 = vadd.f32 %v1684_v48, %v1551_v33  ;;  %v1291_v39 = vmul.f32 %v5044_v56, %v5419_v50  ;;  %v2603_v57 = vld [vmem:[#allocation2 + $0x19a] sm:$0xff] }
 0x1ad   :  { %v2803_v7 = vadd.f32 %v5211_v26, %v2732_v5  ;;  %v2339_v4 = vadd.f32 %v2275_v40, %v2141_v3  ;;  %3920 = vmatprep.mubr.f32.mxu1 %v2930_v9  ;;  %v1488_v11 = vmul.f32 %v5054_v53, %v5427_v13  ;;  %v1685_v6 = vmul.f32 %v5107_v34, %v2207_v12  ;;  %v4049_v42 = vld [vmem:[#allocation2] sm:$0xff] }
 0x1ae   :  { %v743_v52 = vmax.f32 %v621_v17, 0.0  ;;  %v1882_v8 = vmul.f32 %v5069_v31, %v2404_v22  ;;  %v1945_v19 = vadd.f32 %v1881_v20, %v1748_v35  ;;  %v1355_v25 = vadd.f32 %v1291_v39, %v1094_v30  ;;  %v2604_v9 = vld [vmem:[#allocation2 + $0x1a2] sm:$0xff]  ;;  %v1225_v39 = vld [vmem:[#allocation2 + $0x1b1] sm:$0xff] }
 0x1af   :  { %v2867_v47 = vmax.f32 %v2803_v7, 0.0  ;;  %v2536_v38 = vadd.f32 %v2472_v54, %v2339_v4  ;;  %v2079_v48 = vmul.f32 %v5121_v32, %v2601_v2  ;;  %v5516_v50 = vmul.f32 %v4049_v42, %v5158_v27 }
 0x1b0   :  { %v807_v40 = vmin.f32 %v743_v52, 6.0  ;;  %v2474_v16 = vmul.f32 %v5082_v63, %v2406_v58  ;;  %v2142_v23 = vadd.f32 %v2078_v18, %v1945_v19  ;;  %v1552_v12 = vadd.f32 %v1488_v11, %v1355_v25  ;;  %v2407_v18 = vld [vmem:[#allocation2 + $0x1a1] sm:$0xff] }
 0x1b1   :  { %v2931_v15 = vmin.f32 %v2867_v47, 6.0  ;;  %v2733_v13 = vadd.f32 %v2669_v14, %v2536_v38  ;;  %v2671_v22 = vmul.f32 %v5167_v61, %v2603_v57  ;;  %v616_v54 = vadd.f32 %v5030_v44, %v5015_v37 }
 0x1b2   :  { %980 = vst [vmem:[#allocation2 + $0x291] sm:$0xff] %v807_v40  ;;  %v1095_v20 = vmul.f32 %v5037_v1, %v5446_v24  ;;  %v1292_v2 = vmul.f32 %v5044_v56, %v5448_v21  ;;  %v2340_v3 = vadd.f32 %v2276_v51, %v2142_v23  ;;  %v1749_v33 = vadd.f32 %v1685_v6, %v1552_v12  ;;  %v1422_v51 = vld [vmem:[#allocation2 + $0x1b2] sm:$0xff]  ;;  %v5537_v6 = vld [vmem:[#allocation2 + $0x1c8] sm:$0xff]  ;;  %v5548_v40 = vld [vmem:[#allocation2 + $0x1e0] sm:$0xff] }
 0x1b3   :  { %3921 = vmatmul.mubr.f32.gmra.mrb[20].mxu1 %v2931_v15  ;;  %v2804_v5 = vadd.f32 %v5211_v26, %v2733_v13  ;;  %v1489_v14 = vmul.f32 %v5054_v53, %v5454_v36  ;;  %v742_v17 = vmax.f32 %v616_v54, 0.0  ;;  %v1686_v37 = vmul.f32 %v5107_v34, %v5488_v0  ;;  %v5554_v15 = vld [vmem:[#allocation2 + $0x1e1] sm:$0xff]  ;;  %v1226_v23 = vld [vmem:[#allocation2 + $0x1b9] sm:$0xff] }
 0x1b4   :  { %v1356_v30 = vadd.f32 %v1292_v2, %v1095_v20  ;;  %v1883_v24 = vmul.f32 %v5069_v31, %v2405_v45  ;;  %v2537_v4 = vadd.f32 %v2473_v10, %v2340_v3  ;;  %v1946_v21 = vadd.f32 %v1882_v8, %v1749_v33  ;;  %v5541_v10 = vld [vmem:[#allocation2 + $0x1c9] sm:$0xff] }
 0x1b5   :  { %v2868_v7 = vmax.f32 %v2804_v5, 0.0  ;;  %v2080_v35 = vmul.f32 %v5121_v32, %v2602_v46  ;;  %v806_v58 = vmin.f32 %v742_v17, 6.0  ;;  %v2475_v36 = vmul.f32 %v5082_v63, %v2407_v18  ;;  %v5543_v46 = vld [vmem:[#allocation2 + $0x1ca] sm:$0xff]  ;;  %v5556_v13 = vld [vmem:[#allocation2 + $0x1e2] sm:$0xff]  ;;  %v1423_v5 = vld [vmem:[#allocation2 + $0x1ba] sm:$0xff] }
 0x1b6   :  { %v1553_v52 = vadd.f32 %v1489_v14, %v1356_v30  ;;  %v5535_v11 = vmul.f32 %v5167_v61, %v2604_v9  ;;  %v2734_v0 = vadd.f32 %v2670_v29, %v2537_v4  ;;  %v2143_v38 = vadd.f32 %v2079_v48, %v1946_v21  ;;  %v5564_v3 = vld [vmem:[#allocation2 + $0x1d0] sm:$0xff]  ;;  %v5577_v30 = vld [vmem:[%s6670_s2] ss:$0 sm:$0xff]  ;;  %v5589_v21 = vld [vmem:[#allocation2 + $0x1e8] sm:$0xff] }
 0x1b7   :  { %v2932_v47 = vmin.f32 %v2868_v7, 6.0  ;;  %v631_v45 = vadd.f32 %v5030_v44, %v5048_v43  ;;  %979 = vst [vmem:[#allocation2 + $0x289] sm:$0xff] %v806_v58  ;;  %v1096_v19 = vmul.f32 %v4049_v42, %v5037_v1  ;;  %v1293_v25 = vmul.f32 %v5044_v56, %v1225_v39  ;;  %v5572_v9 = vld [vmem:[#allocation2 + $0x1d1] sm:$0xff]  ;;  %v5595_v39 = vld [vmem:[%s6671_s3 + $0x2] ss:$0 sm:$0xff] }
 0x1b8   :  { %v1750_v8 = vadd.f32 %v1686_v37, %v1553_v52  ;;  %v1490_v57 = vmul.f32 %v5054_v53, %v1422_v51  ;;  %v2805_v29 = vadd.f32 %v5211_v26, %v2734_v0  ;;  %v2341_v48 = vadd.f32 %v5516_v50, %v2143_v38  ;;  %v6682_v37 = vld [vmem:[#allocation9_spill] sm:$0xff]  ;;  %v5587_v4 = vld [vmem:[#allocation2 + $0x1d2] sm:$0xff]  ;;  %v5600_v52 = vld [vmem:[#allocation2 + $0x1e9] sm:$0xff] }
 0x1b9   :  { %3923 = vmatprep.mubr.f32.mxu1 %v2932_v47  ;;  %v745_v44 = vmax.f32 %v631_v45, 0.0  ;;  %v1687_v43 = vmul.f32 %v5107_v34, %v5537_v6  ;;  %v1357_v42 = vadd.f32 %v1293_v25, %v1096_v19  ;;  %v1884_v56 = vmul.f32 %v5069_v31, %v5541_v10 }
 0x1ba   :  { %v1947_v1 = vadd.f32 %v1883_v24, %v1750_v8  ;;  %v2081_v53 = vmul.f32 %v5121_v32, %v5543_v46  ;;  %v2869_v12 = vmax.f32 %v2805_v29, 0.0  ;;  %v2538_v54 = vadd.f32 %v2474_v16, %v2341_v48  ;;  %v5610_v8 = vld [vmem:[#allocation2 + $0x1ea] sm:$0xff] }
 0x1bb   :  { %v809_v20 = vmin.f32 %v745_v44, 6.0  ;;  %v2279_v2 = vmul.f32 %v5158_v27, %v5548_v40  ;;  %v1554_v14 = vadd.f32 %v1490_v57, %v1357_v42  ;;  %v2476_v18 = vmul.f32 %v5082_v63, %v5554_v15  ;;  %v5584_v63 = vld [vmem:[%s6671_s3 + $0x1] ss:$0 sm:$0xff] }
 0x1bc   :  { %v2144_v33 = vadd.f32 %v2080_v35, %v1947_v1  ;;  %v5570_v31 = vmul.f32 %v5167_v61, %v5556_v13  ;;  %v2933_v17 = vmin.f32 %v2869_v12, 6.0  ;;  %v2735_v16 = vadd.f32 %v2671_v22, %v2538_v54 }
 0x1bd   :  { %982 = vst [vmem:[#allocation2 + $0x2a9] sm:$0xff] %v809_v20  ;;  %v626_v24 = vadd.f32 %v5577_v30, %v6682_v37  ;;  %v1294_v7 = vmul.f32 %v5584_v63, %v1226_v23  ;;  %v1751_v35 = vadd.f32 %v1687_v43, %v1554_v14  ;;  %v1491_v51 = vmul.f32 %v5595_v39, %v1423_v5  ;;  %v5619_v43 = vld [vmem:[%s6671_s3 + $0x7] ss:$0 sm:$0xff]  ;;  %v5631_v20 = vld [vmem:[%s6671_s3] ss:$0 sm:$0xff] }
 0x1be   :  { %v2342_v22 = vadd.f32 %v5516_v50, %v2144_v33  ;;  %v1688_v58 = vmul.f32 %v5107_v34, %v5564_v3  ;;  %3924 = vmatmul.mubr.f32.gmra.mrb[22].mxu1 %v2933_v17  ;;  %v2806_v47 = vadd.f32 %v5211_v26, %v2735_v16  ;;  %v5606_v50 = vld [vmem:[%s6671_s3 + $0x4] ss:$0 sm:$0xff]  ;;  %v2082_v34 = vmul.f32 %v5121_v32, %v5587_v4  ;;  %v5640_v16 = vld [vmem:[#allocation2 + $0x1f8] sm:$0xff] }
 0x1bf   :  { %v744_v0 = vmax.f32 %v626_v24, 0.0  ;;  %v1358_v38 = vadd.f32 %v1294_v7, %v1096_v19  ;;  %v1885_v45 = vmul.f32 %v5606_v50, %v5572_v9  ;;  %v1948_v57 = vadd.f32 %v1884_v56, %v1751_v35  ;;  %v6683_v56 = vld [vmem:[#allocation10_spill] sm:$0xff]  ;;  %v5642_v37 = vld [vmem:[#allocation2 + $0x1f9] sm:$0xff] }
 0x1c0   :  { %v2539_v25 = vadd.f32 %v2475_v36, %v2342_v22  ;;  %v2280_v29 = vmul.f32 %v5158_v27, %v5589_v21  ;;  %v2870_v48 = vmax.f32 %v2806_v47, 0.0  ;;  %v2477_v1 = vmul.f32 %v5619_v43, %v5600_v52  ;;  %v5653_v22 = vld [vmem:[#allocation2 + $0x1fa] sm:$0xff] }
 0x1c1   :  { %v808_v19 = vmin.f32 %v744_v0, 6.0  ;;  %v1555_v44 = vadd.f32 %v1491_v51, %v1358_v38  ;;  %v2145_v42 = vadd.f32 %v2081_v53, %v1948_v57  ;;  %v2674_v32 = vmul.f32 %v5167_v61, %v5610_v8 }
 0x1c2   :  { %v2736_v36 = vadd.f32 %v5535_v11, %v2539_v25  ;;  %v641_v23 = vadd.f32 %v5577_v30, %v6683_v56  ;;  %v2934_v12 = vmin.f32 %v2870_v48, 6.0  ;;  %v1098_v5 = vmul.f32 %v5631_v20, %v5537_v6  ;;  %v5647_v6 = vld [vmem:[%s6671_s3 + $0x3] ss:$0 sm:$0xff] }
 0x1c3   :  { %981 = vst [vmem:[#allocation2 + $0x2a1] sm:$0xff] %v808_v19  ;;  %v1752_v54 = vadd.f32 %v1688_v58, %v1555_v44  ;;  %v1295_v11 = vmul.f32 %v5584_v63, %v5541_v10  ;;  %v2343_v33 = vadd.f32 %v2279_v2, %v2145_v42  ;;  %v1492_v17 = vmul.f32 %v5595_v39, %v5543_v46  ;;  %v5658_v58 = vld [vmem:[%s6671_s3 + $0x5] ss:$0 sm:$0xff]  ;;  %v6684_v19 = vld [vmem:[#allocation11_spill] sm:$0xff] }
 0x1c4   :  { %v2807_v53 = vadd.f32 %v5211_v26, %v2736_v36  ;;  %v747_v14 = vmax.f32 %v641_v23, 0.0  ;;  %3926 = vmatprep.mubr.f32.mxu1 %v2934_v12  ;;  %v1689_v10 = vmul.f32 %v5647_v6, %v5548_v40  ;;  %v1886_v2 = vmul.f32 %v5606_v50, %v5554_v15  ;;  %v5675_v56 = vld [vmem:[#allocation2 + $0x200] sm:$0xff] }
 0x1c5   :  { %v1949_v24 = vadd.f32 %v1885_v45, %v1752_v54  ;;  %v1359_v7 = vadd.f32 %v1295_v11, %v1098_v5  ;;  %v2540_v35 = vadd.f32 %v2476_v18, %v2343_v33  ;;  %v2083_v47 = vmul.f32 %v5658_v58, %v5556_v13  ;;  %v5686_v11 = vld [vmem:[#allocation2 + $0x202] sm:$0xff] }
 0x1c6   :  { %v2871_v46 = vmax.f32 %v2807_v53, 0.0  ;;  %v811_v51 = vmin.f32 %v747_v14, 6.0  ;;  %v2281_v45 = vmul.f32 %v5158_v27, %v5640_v16  ;;  %v2478_v25 = vmul.f32 %v5619_v43, %v5642_v37 }
 0x1c7   :  { %v2146_v0 = vadd.f32 %v2082_v34, %v1949_v24  ;;  %v1556_v38 = vadd.f32 %v1492_v17, %v1359_v7  ;;  %v2737_v18 = vadd.f32 %v5570_v31, %v2540_v35  ;;  %v2675_v48 = vmul.f32 %v5167_v61, %v5653_v22 }
 0x1c8   :  { %v2935_v57 = vmin.f32 %v2871_v46, 6.0  ;;  %984 = vst [vmem:[#allocation2 + $0x2c1] sm:$0xff] %v811_v51  ;;  %v636_v44 = vadd.f32 %v5577_v30, %v6684_v19  ;;  %v1099_v34 = vmul.f32 %v5631_v20, %v5564_v3  ;;  %v1296_v27 = vmul.f32 %v5584_v63, %v5572_v9  ;;  %v5702_v46 = vld [vmem:[%s6671_s3 + $0x8] ss:$0 sm:$0xff]  ;;  %v6685_v51 = vld [vmem:[#allocation12_spill] sm:$0xff]  ;;  %v5713_v19 = vld [vmem:[#allocation2 + $0x210] sm:$0xff] }
 0x1c9   :  { %v2344_v36 = vadd.f32 %v2280_v29, %v2146_v0  ;;  %v1753_v42 = vadd.f32 %v1689_v10, %v1556_v38  ;;  %v2808_v31 = vadd.f32 %v5211_v26, %v2737_v18  ;;  %v1493_v61 = vmul.f32 %v5595_v39, %v5587_v4  ;;  %v5682_v29 = vld [vmem:[#allocation2 + $0x201] sm:$0xff] }
 0x1ca   :  { %3927 = vmatmul.mubr.f32.gmra.mrb[24].mxu1 %v2935_v57  ;;  %v746_v23 = vmax.f32 %v636_v44, 0.0  ;;  %v1690_v12 = vmul.f32 %v5647_v6, %v5589_v21  ;;  %v1360_v3 = vadd.f32 %v1296_v27, %v1099_v34  ;;  %v1887_v9 = vmul.f32 %v5606_v50, %v5600_v52  ;;  %v5693_v4 = vld [vmem:[%s6671_s3 + $0x6] ss:$0 sm:$0xff]  ;;  %v5715_v44 = vld [vmem:[#allocation2 + $0x211] sm:$0xff] }
 0x1cb   :  { %v2541_v54 = vadd.f32 %v2477_v1, %v2344_v36  ;;  %v1950_v5 = vadd.f32 %v1886_v2, %v1753_v42  ;;  %v2872_v53 = vmax.f32 %v2808_v31, 0.0  ;;  %v2084_v14 = vmul.f32 %v5658_v58, %v5610_v8 }
 0x1cc   :  { %v810_v33 = vmin.f32 %v746_v23, 6.0  ;;  %v2282_v1 = vmul.f32 %v5693_v4, %v5675_v56  ;;  %v1557_v7 = vadd.f32 %v1493_v61, %v1360_v3  ;;  %v2479_v10 = vmul.f32 %v5619_v43, %v5682_v29 }
 0x1cd   :  { %v2738_v17 = vadd.f32 %v2674_v32, %v2541_v54  ;;  %v2147_v24 = vadd.f32 %v2083_v47, %v1950_v5  ;;  %v2936_v2 = vmin.f32 %v2872_v53, 6.0  ;;  %v2676_v35 = vmul.f32 %v5702_v46, %v5686_v11 }
 0x1ce   :  { %983 = vst [vmem:[#allocation2 + $0x2b9] sm:$0xff] %v810_v33  ;;  %v651_v0 = vadd.f32 %v5577_v30, %v6685_v51  ;;  %v1100_v32 = vmul.f32 %v5631_v20, %v5548_v40  ;;  %v1754_v57 = vadd.f32 %v1690_v12, %v1557_v7  ;;  %v1297_v18 = vmul.f32 %v5584_v63, %v5554_v15  ;;  %v5723_v15 = vld [vmem:[#allocation2 + $0x212] sm:$0xff] }
 0x1cf   :  { %v2809_v47 = vadd.f32 %v5211_v26, %v2738_v17  ;;  %v2345_v38 = vadd.f32 %v2281_v45, %v2147_v24  ;;  %3929 = vmatprep.mubr.f32.mxu1 %v2936_v2  ;;  %v1494_v42 = vmul.f32 %v5595_v39, %v5556_v13  ;;  %v1691_v34 = vmul.f32 %v5647_v6, %v5640_v16 }
 0x1d0   :  { %v749_v36 = vmax.f32 %v651_v0, 0.0  ;;  %v1888_v26 = vmul.f32 %v5606_v50, %v5642_v37  ;;  %v1951_v27 = vadd.f32 %v1887_v9, %v1754_v57  ;;  %v1361_v31 = vadd.f32 %v1297_v18, %v1100_v32  ;;  %v6686_v9 = vld [vmem:[#allocation13_spill] sm:$0xff]  ;;  %v5747_v0 = vld [vmem:[#allocation2 + $0x218] sm:$0xff] }
 0x1d1   :  { %v2873_v40 = vmax.f32 %v2809_v47, 0.0  ;;  %v2542_v45 = vadd.f32 %v2478_v25, %v2345_v38  ;;  %v2085_v61 = vmul.f32 %v5658_v58, %v5653_v22  ;;  %v2283_v12 = vmul.f32 %v5693_v4, %v5713_v19  ;;  %v5749_v32 = vld [vmem:[#allocation2 + $0x219] sm:$0xff] }
 0x1d2   :  { %v813_v23 = vmin.f32 %v749_v36, 6.0  ;;  %v2480_v13 = vmul.f32 %v5619_v43, %v5715_v44  ;;  %v2148_v3 = vadd.f32 %v2084_v14, %v1951_v27  ;;  %v1558_v53 = vadd.f32 %v1494_v42, %v1361_v31  ;;  %v5755_v57 = vld [vmem:[#allocation2 + $0x21a] sm:$0xff] }
 0x1d3   :  { %v2937_v54 = vmin.f32 %v2873_v40, 6.0  ;;  %v2739_v5 = vadd.f32 %v2675_v48, %v2542_v45  ;;  %v2677_v25 = vmul.f32 %v5702_v46, %v5723_v15  ;;  %v646_v33 = vadd.f32 %v5577_v30, %v6686_v9  ;;  %v5742_v48 = vld [vmem:[%s6672_s4] ss:$0 sm:$0xff] }
 0x1d4   :  { %986 = vst [vmem:[#allocation2 + $0x2d9] sm:$0xff] %v813_v23  ;;  %v1101_v17 = vmul.f32 %v5631_v20, %v5589_v21  ;;  %v1298_v24 = vmul.f32 %v5584_v63, %v5600_v52  ;;  %v2346_v7 = vadd.f32 %v2282_v1, %v2148_v3  ;;  %v1755_v2 = vadd.f32 %v1691_v34, %v1558_v53  ;;  %v5774_v53 = vld [vmem:[#allocation2 + $0x228] sm:$0xff] }
 0x1d5   :  { %3930 = vmatmul.mubr.f32.gmra.mrb[26].mxu1 %v2937_v54  ;;  %v2810_v14 = vadd.f32 %v5742_v48, %v2739_v5  ;;  %v1495_v51 = vmul.f32 %v5595_v39, %v5610_v8  ;;  %v748_v21 = vmax.f32 %v646_v33, 0.0  ;;  %v1692_v52 = vmul.f32 %v5647_v6, %v5675_v56 }
 0x1d6   :  { %v1362_v47 = vadd.f32 %v1298_v24, %v1101_v17  ;;  %v1889_v38 = vmul.f32 %v5606_v50, %v5682_v29  ;;  %v2543_v1 = vadd.f32 %v2479_v10, %v2346_v7  ;;  %v1952_v36 = vadd.f32 %v1888_v26, %v1755_v2  ;;  %v5781_v17 = vld [vmem:[#allocation2 + $0x229] sm:$0xff] }
 0x1d7   :  { %v2874_v18 = vmax.f32 %v2810_v14, 0.0  ;;  %v2086_v8 = vmul.f32 %v5658_v58, %v5686_v11  ;;  %v5759_v42 = vmin.f32 %v748_v21, 6.0  ;;  %v2284_v40 = vmul.f32 %v5693_v4, %v5747_v0  ;;  %v5785_v14 = vld [vmem:[#allocation2 + $0x22a] sm:$0xff] }
 0x1d8   :  { %v1559_v34 = vadd.f32 %v1495_v51, %v1362_v47  ;;  %v2481_v45 = vmul.f32 %v5619_v43, %v5749_v32  ;;  %v2740_v31 = vadd.f32 %v2676_v35, %v2543_v1  ;;  %v2149_v23 = vadd.f32 %v2085_v61, %v1952_v36 }
 0x1d9   :  { %v2938_v27 = vmin.f32 %v2874_v18, 6.0  ;;  %v2678_v54 = vmul.f32 %v5702_v46, %v5755_v57  ;;  %985 = vst [vmem:[#allocation2 + $0x2d1] sm:$0xff] %v5759_v42  ;;  %v661_v26 = vadd.f32 %v5577_v30, %v5198_v59  ;;  %v1102_v5 = vmul.f32 %v5631_v20, %v5640_v16 }
 0x1da   :  { %v1756_v10 = vadd.f32 %v1692_v52, %v1559_v34  ;;  %v1299_v3 = vmul.f32 %v5584_v63, %v5642_v37  ;;  %v2811_v35 = vadd.f32 %v5742_v48, %v2740_v31  ;;  %v2347_v61 = vadd.f32 %v2283_v12, %v2149_v23  ;;  %v5801_v31 = vld [vmem:[#allocation2 + $0x230] sm:$0xff] }
 0x1db   :  { %3932 = vmatprep.mubr.f32.mxu1 %v2938_v27  ;;  %v1496_v9 = vmul.f32 %v5595_v39, %v5653_v22  ;;  %v1693_v33 = vmul.f32 %v5647_v6, %v5713_v19  ;;  %v751_v24 = vmax.f32 %v661_v26, 0.0  ;;  %v1890_v37 = vmul.f32 %v5606_v50, %v5715_v44 }
 0x1dc   :  { %v1953_v59 = vadd.f32 %v1889_v38, %v1756_v10  ;;  %v1363_v16 = vadd.f32 %v1299_v3, %v1102_v5  ;;  %v2875_v7 = vmax.f32 %v2811_v35, 0.0  ;;  %v2544_v2 = vadd.f32 %v2480_v13, %v2347_v61  ;;  %v5812_v3 = vld [vmem:[#allocation2 + $0x232] sm:$0xff] }
 0x1dd   :  { %v2087_v12 = vmul.f32 %v5658_v58, %v5723_v15  ;;  %v2285_v22 = vmul.f32 %v5693_v4, %v5774_v53  ;;  %v815_v21 = vmin.f32 %v751_v24, 6.0  ;;  %v2482_v52 = vmul.f32 %v5619_v43, %v5781_v17 }
 0x1de   :  { %v2150_v51 = vadd.f32 %v2086_v8, %v1953_v59  ;;  %v1560_v47 = vadd.f32 %v1496_v9, %v1363_v16  ;;  %v2939_v38 = vmin.f32 %v2875_v7, 6.0  ;;  %v2741_v18 = vadd.f32 %v2677_v25, %v2544_v2 }
 0x1df   :  { %v2679_v1 = vmul.f32 %v5702_v46, %v5785_v14  ;;  %v656_v13 = vadd.f32 %v5577_v30, %v5234_v55  ;;  %988 = vst [vmem:[#allocation2 + $0x2f1] sm:$0xff] %v815_v21  ;;  %v1103_v27 = vmul.f32 %v5631_v20, %v5675_v56  ;;  %v1300_v8 = vmul.f32 %v5584_v63, %v5682_v29 }
 0x1e0   :  { %v2348_v36 = vadd.f32 %v2284_v40, %v2150_v51  ;;  %v1757_v34 = vadd.f32 %v1693_v33, %v1560_v47  ;;  %3933 = vmatmul.mubr.f32.gmra.mrb[28].mxu1 %v2939_v38  ;;  %v2812_v25 = vadd.f32 %v5742_v48, %v2741_v18  ;;  %v1497_v10 = vmul.f32 %v5595_v39, %v5686_v11  ;;  %v5808_v40 = vld [vmem:[#allocation2 + $0x231] sm:$0xff]  ;;  %v5832_v47 = vld [vmem:[#allocation2 + $0x240] sm:$0xff] }
 0x1e1   :  { %v750_v23 = vmax.f32 %v656_v13, 0.0  ;;  %v1694_v55 = vmul.f32 %v5647_v6, %v5747_v0  ;;  %v1364_v56 = vadd.f32 %v1300_v8, %v1103_v27  ;;  %v1891_v29 = vmul.f32 %v5606_v50, %v5749_v32  ;;  %v5834_v38 = vld [vmem:[#allocation2 + $0x241] sm:$0xff] }
 0x1e2   :  { %v2545_v26 = vadd.f32 %v2481_v45, %v2348_v36  ;;  %v1954_v5 = vadd.f32 %v1890_v37, %v1757_v34  ;;  %v2876_v35 = vmax.f32 %v2812_v25, 0.0  ;;  %v2088_v9 = vmul.f32 %v5658_v58, %v5755_v57 }
 0x1e3   :  { %v5814_v61 = vmin.f32 %v750_v23, 6.0  ;;  %v2286_v11 = vmul.f32 %v5693_v4, %v5801_v31  ;;  %v1561_v24 = vadd.f32 %v1497_v10, %v1364_v56  ;;  %v2483_v45 = vmul.f32 %v5619_v43, %v5808_v40  ;;  %v6687_v56 = vld [vmem:[#allocation14_spill] sm:$0xff] }
 0x1e4   :  { %v2742_v33 = vadd.f32 %v2678_v54, %v2545_v26  ;;  %v2151_v59 = vadd.f32 %v2087_v12, %v1954_v5  ;;  %v2940_v16 = vmin.f32 %v2876_v35, 6.0  ;;  %v2680_v37 = vmul.f32 %v5702_v46, %v5812_v3 }
 0x1e5   :  { %987 = vst [vmem:[#allocation2 + $0x2e9] sm:$0xff] %v5814_v61  ;;  %v671_v7 = vadd.f32 %v5577_v30, %v5265_v41  ;;  %v1104_v2 = vmul.f32 %v5631_v20, %v5713_v19  ;;  %v1758_v12 = vadd.f32 %v1694_v55, %v1561_v24  ;;  %v1301_v21 = vmul.f32 %v5584_v63, %v5715_v44  ;;  %v5842_v44 = vld [vmem:[#allocation2 + $0x242] sm:$0xff] }
 0x1e6   :  { %v2813_v51 = vadd.f32 %v5742_v48, %v2742_v33  ;;  %v2349_v54 = vadd.f32 %v2285_v22, %v2151_v59  ;;  %3935 = vmatprep.mubr.f32.mxu1 %v2940_v16  ;;  %v1498_v13 = vmul.f32 %v5595_v39, %v5723_v15  ;;  %v1695_v41 = vmul.f32 %v5647_v6, %v5774_v53  ;;  %v5861_v16 = vld [vmem:[#allocation2 + $0x248] sm:$0xff] }
 0x1e7   :  { %v753_v18 = vmax.f32 %v671_v7, 0.0  ;;  %v1892_v19 = vmul.f32 %v5606_v50, %v5781_v17  ;;  %v1955_v34 = vadd.f32 %v1891_v29, %v1758_v12  ;;  %v1365_v27 = vadd.f32 %v1301_v21, %v1104_v2  ;;  %v5863_v7 = vld [vmem:[#allocation2 + $0x249] sm:$0xff] }
 0x1e8   :  { %v2877_v22 = vmax.f32 %v2813_v51, 0.0  ;;  %v2546_v36 = vadd.f32 %v2482_v52, %v2349_v54  ;;  %v2089_v25 = vmul.f32 %v5658_v58, %v5785_v14  ;;  %v2287_v23 = vmul.f32 %v5693_v4, %v5832_v47  ;;  %v5869_v54 = vld [vmem:[#allocation2 + $0x24a] sm:$0xff] }
 0x1e9   :  { %v817_v8 = vmin.f32 %v753_v18, 6.0  ;;  %v2484_v15 = vmul.f32 %v5619_v43, %v5834_v38  ;;  %v2152_v26 = vadd.f32 %v2088_v9, %v1955_v34  ;;  %v1562_v5 = vadd.f32 %v1498_v13, %v1365_v27 }
 0x1ea   :  { %v2941_v10 = vmin.f32 %v2877_v22, 6.0  ;;  %v2743_v55 = vadd.f32 %v2679_v1, %v2546_v36  ;;  %v2681_v52 = vmul.f32 %v5702_v46, %v5842_v44  ;;  %v666_v29 = vadd.f32 %v5577_v30, %v6687_v56 }
 0x1eb   :  { %990 = vst [vmem:[#allocation2 + $0x309] sm:$0xff] %v817_v8  ;;  %v1105_v35 = vmul.f32 %v5631_v20, %v5747_v0  ;;  %v1302_v33 = vmul.f32 %v5584_v63, %v5749_v32  ;;  %v2350_v24 = vadd.f32 %v2286_v11, %v2152_v26  ;;  %v1759_v1 = vadd.f32 %v1695_v41, %v1562_v5  ;;  %v5888_v26 = vld [vmem:[#allocation2 + $0x258] sm:$0xff] }
 0x1ec   :  { %3936 = vmatmul.mubr.f32.gmra.mrb[30].mxu1 %v2941_v10  ;;  %v2814_v59 = vadd.f32 %v5742_v48, %v2743_v55  ;;  %v1499_v9 = vmul.f32 %v5595_v39, %v5755_v57  ;;  %v752_v2 = vmax.f32 %v666_v29, 0.0  ;;  %v1696_v0 = vmul.f32 %v5647_v6, %v5801_v31  ;;  %v5895_v29 = vld [vmem:[#allocation2 + $0x259] sm:$0xff] }
 0x1ed   :  { %v1366_v51 = vadd.f32 %v1302_v33, %v1105_v35  ;;  %v1893_v32 = vmul.f32 %v5606_v50, %v5808_v40  ;;  %v2547_v11 = vadd.f32 %v2483_v45, %v2350_v24  ;;  %v1956_v21 = vadd.f32 %v1892_v19, %v1759_v1  ;;  %v5899_v33 = vld [vmem:[#allocation2 + $0x25a] sm:$0xff]  ;;  %v5905_v1 = vpop.f32.mrb[64].mxu0 }
 0x1ee   :  { %v2878_v12 = vmax.f32 %v2814_v59, 0.0  ;;  %v2090_v57 = vmul.f32 %v5658_v58, %v5812_v3  ;;  %v5873_v18 = vmin.f32 %v752_v2, 6.0  ;;  %v2288_v41 = vmul.f32 %v5693_v4, %v5861_v16 }
 0x1ef   :  { %v1563_v13 = vadd.f32 %v1499_v9, %v1366_v51  ;;  %v2485_v22 = vmul.f32 %v5619_v43, %v5863_v7  ;;  %v2744_v34 = vadd.f32 %v2680_v37, %v2547_v11  ;;  %v2153_v27 = vadd.f32 %v2089_v25, %v1956_v21 }
 0x1f0   :  { %v2942_v36 = vmin.f32 %v2878_v12, 6.0  ;;  %v2682_v8 = vmul.f32 %v5702_v46, %v5869_v54  ;;  %989 = vst [vmem:[#allocation2 + $0x301] sm:$0xff] %v5873_v18  ;;  %v681_v19 = vadd.f32 %v5577_v30, %v5319_v60  ;;  %v1106_v10 = vmul.f32 %v5631_v20, %v5774_v53 }
 0x1f1   :  { %v1760_v45 = vadd.f32 %v1696_v0, %v1563_v13  ;;  %v1303_v55 = vmul.f32 %v5584_v63, %v5781_v17  ;;  %v2815_v37 = vadd.f32 %v5742_v48, %v2744_v34  ;;  %v2351_v25 = vadd.f32 %v2287_v23, %v2153_v27  ;;  %v5919_v27 = vld [vmem:[#allocation2 + $0x260] sm:$0xff] }
 0x1f2   :  { %3938 = vmatprep.mubr.f32.mxu1 %v2942_v36  ;;  %v1500_v5 = vmul.f32 %v5595_v39, %v5785_v14  ;;  %v1697_v56 = vmul.f32 %v5647_v6, %v5832_v47  ;;  %v755_v35 = vmax.f32 %v681_v19, 0.0  ;;  %v1894_v17 = vmul.f32 %v5606_v50, %v5834_v38 }
 0x1f3   :  { %v1957_v60 = vadd.f32 %v1893_v32, %v1760_v45  ;;  %v1367_v53 = vadd.f32 %v1303_v55, %v1106_v10  ;;  %v2879_v59 = vmax.f32 %v2815_v37, 0.0  ;;  %v2548_v24 = vadd.f32 %v2484_v15, %v2351_v25  ;;  %v5909_v32 = vpop.f32.mrb[65].mxu0  ;;  %v5928_v10 = vld [vmem:[#allocation2 + $0x261] sm:$0xff] }
 0x1f4   :  { %v2091_v23 = vmul.f32 %v5658_v58, %v5842_v44  ;;  %v2289_v14 = vmul.f32 %v5693_v4, %v5888_v26  ;;  %v819_v2 = vmin.f32 %v755_v35, 6.0  ;;  %v2486_v0 = vmul.f32 %v5619_v43, %v5895_v29 }
 0x1f5   :  { %v2154_v9 = vadd.f32 %v2090_v57, %v1957_v60  ;;  %v1564_v51 = vadd.f32 %v1500_v5, %v1367_v53  ;;  %v2943_v12 = vmin.f32 %v2879_v59, 6.0  ;;  %v2745_v11 = vadd.f32 %v2681_v52, %v2548_v24  ;;  %v5934_v5 = vld [vmem:[#allocation2 + $0x262] sm:$0xff] }
 0x1f6   :  { %v2683_v15 = vmul.f32 %v5702_v46, %v5899_v33  ;;  %v676_v21 = vadd.f32 %v5577_v30, %v5350_v49  ;;  %992 = vst [vmem:[#allocation2 + $0x321] sm:$0xff] %v819_v2  ;;  %v1107_v57 = vmul.f32 %v5631_v20, %v5801_v31  ;;  %v1304_v34 = vmul.f32 %v5584_v63, %v5808_v40  ;;  %v5921_v45 = vpop.f32.mrb[66].mxu0 }
 0x1f7   :  { %v2352_v13 = vadd.f32 %v2288_v41, %v2154_v9  ;;  %v1761_v36 = vadd.f32 %v1697_v56, %v1564_v51  ;;  %3939 = vmatmul.mubr.f32.gmra.mrb[32].mxu1 %v2943_v12  ;;  %v2816_v52 = vadd.f32 %v5742_v48, %v2745_v11  ;;  %v1501_v49 = vmul.f32 %v5595_v39, %v5812_v3  ;;  %v5930_v31 = vpop.f32.mrb[67].mxu0 }
 0x1f8   :  { %v754_v19 = vmax.f32 %v676_v21, 0.0  ;;  %v1698_v41 = vmul.f32 %v5647_v6, %v5861_v16  ;;  %v1368_v37 = vadd.f32 %v1304_v34, %v1107_v57  ;;  %v1895_v25 = vmul.f32 %v5606_v50, %v5863_v7  ;;  %v5954_v21 = vld [vmem:[#allocation2 + $0x270] sm:$0xff] }
 0x1f9   :  { %v2549_v55 = vadd.f32 %v2485_v22, %v2352_v13  ;;  %v1958_v40 = vadd.f32 %v1894_v17, %v1761_v36  ;;  %v2880_v56 = vmax.f32 %v2816_v52, 0.0  ;;  %v2092_v3 = vmul.f32 %v5658_v58, %v5869_v54  ;;  %v5956_v13 = vld [vmem:[#allocation2 + $0x271] sm:$0xff] }
 0x1fa   :  { %v5936_v60 = vmin.f32 %v754_v19, 6.0  ;;  %v2290_v35 = vmul.f32 %v5693_v4, %v5919_v27  ;;  %v1565_v24 = vadd.f32 %v1501_v49, %v1368_v37  ;;  %v2487_v22 = vmul.f32 %v5619_v43, %v5928_v10 }
 0x1fb   :  { %v2746_v53 = vadd.f32 %v2682_v8, %v2549_v55  ;;  %v2155_v59 = vadd.f32 %v2091_v23, %v1958_v40  ;;  %v2944_v17 = vmin.f32 %v2880_v56, 6.0  ;;  %v2684_v9 = vmul.f32 %v5702_v46, %v5934_v5 }
 0x1fc   :  { %991 = vst [vmem:[#allocation2 + $0x319] sm:$0xff] %v5936_v60  ;;  %v691_v2 = vadd.f32 %v5577_v30, %v5381_v62  ;;  %v1108_v51 = vmul.f32 %v5631_v20, %v5832_v47  ;;  %v1762_v23 = vadd.f32 %v1698_v41, %v1565_v24  ;;  %v1305_v11 = vmul.f32 %v5584_v63, %v5834_v38  ;;  %v5964_v38 = vld [vmem:[#allocation2 + $0x272] sm:$0xff] }
 0x1fd   :  { %v2817_v12 = vadd.f32 %v5742_v48, %v2746_v53  ;;  %v2353_v8 = vadd.f32 %v2289_v14, %v2155_v59  ;;  %3941 = vmatprep.mubr.f32.mxu1 %v2944_v17  ;;  %v1502_v57 = vmul.f32 %v5595_v39, %v5842_v44  ;;  %v1699_v62 = vmul.f32 %v5647_v6, %v5888_v26 }
 0x1fe   :  { %v757_v36 = vmax.f32 %v691_v2, 0.0  ;;  %v1896_v47 = vmul.f32 %v5606_v50, %v5895_v29  ;;  %v1959_v52 = vadd.f32 %v1895_v25, %v1762_v23  ;;  %v1369_v19 = vadd.f32 %v1305_v11, %v1108_v51  ;;  %v5983_v51 = vld [vmem:[#allocation2 + $0x278] sm:$0xff] }
 0x1ff   :  { %v2881_v14 = vmax.f32 %v2817_v12, 0.0  ;;  %v2550_v34 = vadd.f32 %v2486_v0, %v2353_v8  ;;  %v2093_v41 = vmul.f32 %v5658_v58, %v5899_v33  ;;  %v2291_v55 = vmul.f32 %v5693_v4, %v5954_v21  ;;  %v5985_v12 = vld [vmem:[#allocation2 + $0x279] sm:$0xff] }
 0x200   :  { %v821_v49 = vmin.f32 %v757_v36, 6.0  ;;  %v2488_v44 = vmul.f32 %v5619_v43, %v5956_v13  ;;  %v2156_v56 = vadd.f32 %v2092_v3, %v1959_v52  ;;  %v1566_v53 = vadd.f32 %v1502_v57, %v1369_v19 }
 0x201   :  { %v2945_v40 = vmin.f32 %v2881_v14, 6.0  ;;  %v2747_v37 = vadd.f32 %v2683_v15, %v2550_v34  ;;  %v2685_v0 = vmul.f32 %v5702_v46, %v5964_v38  ;;  %v686_v25 = vadd.f32 %v5577_v30, %v5412_v28 }
 0x202   :  { %994 = vst [vmem:[#allocation2 + $0x339] sm:$0xff] %v821_v49  ;;  %v1109_v59 = vmul.f32 %v5631_v20, %v5861_v16  ;;  %v1306_v24 = vmul.f32 %v5584_v63, %v5863_v7  ;;  %v2354_v2 = vadd.f32 %v2290_v35, %v2156_v56  ;;  %v1763_v15 = vadd.f32 %v1699_v62, %v1566_v53  ;;  %v5991_v7 = vld [vmem:[#allocation2 + $0x27a] sm:$0xff]  ;;  %v6012_v53 = vld [vmem:[#allocation2 + $0x289] sm:$0xff] }
 0x203   :  { %3942 = vmatmul.mubr.f32.gmra.mrb[34].mxu1 %v2945_v40  ;;  %v2818_v17 = vadd.f32 %v5742_v48, %v2747_v37  ;;  %v1503_v3 = vmul.f32 %v5595_v39, %v5869_v54  ;;  %v756_v8 = vmax.f32 %v686_v25, 0.0  ;;  %v1700_v30 = vmul.f32 %v5647_v6, %v5919_v27 }
 0x204   :  { %v1370_v28 = vadd.f32 %v1306_v24, %v1109_v59  ;;  %v1897_v16 = vmul.f32 %v5606_v50, %v5928_v10  ;;  %v2551_v35 = vadd.f32 %v2487_v22, %v2354_v2  ;;  %v1960_v11 = vadd.f32 %v1896_v47, %v1763_v15  ;;  %v6003_v22 = vld [vmem:[#allocation2 + $0x288] sm:$0xff] }
 0x205   :  { %v2882_v23 = vmax.f32 %v2818_v17, 0.0  ;;  %v2094_v54 = vmul.f32 %v5658_v58, %v5934_v5  ;;  %v5995_v36 = vmin.f32 %v756_v8, 6.0  ;;  %v2292_v62 = vmul.f32 %v5693_v4, %v5983_v51 }
 0x206   :  { %v1567_v57 = vadd.f32 %v1503_v3, %v1370_v28  ;;  %v2489_v14 = vmul.f32 %v5619_v43, %v5985_v12  ;;  %v2748_v52 = vadd.f32 %v2684_v9, %v2551_v35  ;;  %v2157_v19 = vadd.f32 %v2093_v41, %v1960_v11  ;;  %v6014_v9 = vld [vmem:[#allocation2 + $0x28a] sm:$0xff] }
 0x207   :  { %v2946_v34 = vmin.f32 %v2882_v23, 6.0  ;;  %v2686_v49 = vmul.f32 %v5702_v46, %v5991_v7  ;;  %993 = vst [vmem:[#allocation2 + $0x331] sm:$0xff] %v5995_v36  ;;  %v1110_v40 = vmul.f32 %v5631_v20, %v5888_v26  ;;  %v1307_v37 = vmul.f32 %v5584_v63, %v5895_v29  ;;  %v6016_v41 = vpop.f32.mrb[68].mxu0  ;;  %v6039_v11 = vld [vmem:[#allocation2 + $0x290] sm:$0xff] }
 0x208   :  { %v1764_v47 = vadd.f32 %v1700_v30, %v1567_v57  ;;  %v1504_v56 = vmul.f32 %v5595_v39, %v5899_v33  ;;  %v2819_v25 = vadd.f32 %v5742_v48, %v2748_v52  ;;  %v2355_v59 = vadd.f32 %v2291_v55, %v2157_v19  ;;  %v6023_v29 = vpop.f32.mrb[69].mxu0  ;;  %v6041_v57 = vld [vmem:[#allocation2 + $0x291] sm:$0xff] }
 0x209   :  { %3944 = vmatprep.mubr.f32.mxu1 %v2946_v34  ;;  %v1701_v24 = vmul.f32 %v5647_v6, %v5954_v21  ;;  %v1898_v26 = vmul.f32 %v5606_v50, %v5956_v13  ;;  %v1371_v33 = vadd.f32 %v1307_v37, %v1110_v40  ;;  %v2095_v2 = vmul.f32 %v5658_v58, %v5964_v38 }
 0x20a   :  { %v1961_v17 = vadd.f32 %v1897_v16, %v1764_v47  ;;  %v2293_v15 = vmul.f32 %v5693_v4, %v6003_v22  ;;  %v2883_v3 = vmax.f32 %v2819_v25, 0.0  ;;  %v2552_v8 = vadd.f32 %v2488_v44, %v2355_v59 }
 0x20b   :  { %v2490_v55 = vmul.f32 %v5619_v43, %v6012_v53  ;;  %v6033_v28 = vmul.f32 %v5702_v46, %v6014_v9  ;;  %v1568_v23 = vadd.f32 %v1504_v56, %v1371_v33  ;;  %v1111_v16 = vmul.f32 %v5631_v20, %v5919_v27 }
 0x20c   :  { %v2158_v30 = vadd.f32 %v2094_v54, %v1961_v17  ;;  %v1308_v35 = vmul.f32 %v5584_v63, %v5928_v10  ;;  %v2947_v44 = vmin.f32 %v2883_v3, 6.0  ;;  %v2749_v34 = vadd.f32 %v2685_v0, %v2552_v8  ;;  %v6047_v54 = vld [vmem:[#allocation2 + $0x292] sm:$0xff] }
 0x20d   :  { %v1505_v52 = vmul.f32 %v5595_v39, %v5934_v5  ;;  %v1702_v19 = vmul.f32 %v5647_v6, %v5983_v51  ;;  %v1765_v40 = vadd.f32 %v1701_v24, %v1568_v23  ;;  %v1899_v10 = vmul.f32 %v5606_v50, %v5985_v12 }
 0x20e   :  { %v2356_v47 = vadd.f32 %v2292_v62, %v2158_v30  ;;  %v1372_v27 = vadd.f32 %v1308_v35, %v1111_v16  ;;  %3945 = vmatmul.mubr.f32.gmra.mrb[36].mxu1 %v2947_v44  ;;  %v2820_v37 = vadd.f32 %v5742_v48, %v2749_v34  ;;  %v2096_v0 = vmul.f32 %v5658_v58, %v5991_v7  ;;  %v6066_v30 = vld [vmem:[#allocation2 + $0x2a0] sm:$0xff] }
 0x20f   :  { %v2294_v5 = vmul.f32 %v5693_v4, %v6039_v11  ;;  %v2491_v56 = vmul.f32 %v5619_v43, %v6041_v57  ;;  %v1962_v59 = vadd.f32 %v1898_v26, %v1765_v40  ;;  %v2688_v24 = vmul.f32 %v5702_v46, %v6047_v54  ;;  %v6070_v35 = vld [vmem:[#allocation2 + $0x2a1] sm:$0xff] }
 0x210   :  { %v2553_v25 = vadd.f32 %v2489_v14, %v2356_v47  ;;  %v1569_v62 = vadd.f32 %v1505_v52, %v1372_v27  ;;  %v2884_v17 = vmax.f32 %v2820_v37, 0.0  ;;  %v1112_v33 = vmul.f32 %v5631_v20, %v5954_v21  ;;  %v6072_v44 = vld [vmem:[#allocation2 + $0x2a2] sm:$0xff] }
 0x211   :  { %v1309_v3 = vmul.f32 %v5584_v63, %v5956_v13  ;;  %v1506_v8 = vmul.f32 %v5595_v39, %v5964_v38  ;;  %v2159_v16 = vadd.f32 %v2095_v2, %v1962_v59  ;;  %v1703_v26 = vmul.f32 %v5647_v6, %v6003_v22 }
 0x212   :  { %v2750_v23 = vadd.f32 %v2686_v49, %v2553_v25  ;;  %v1766_v14 = vadd.f32 %v1702_v19, %v1569_v62  ;;  %v2948_v34 = vmin.f32 %v2884_v17, 6.0  ;;  %v1900_v13 = vmul.f32 %v5606_v50, %v6012_v53 }
 0x213   :  { %v1373_v21 = vadd.f32 %v1309_v3, %v1112_v33  ;;  %v2097_v38 = vmul.f32 %v5658_v58, %v6014_v9  ;;  %v2357_v49 = vadd.f32 %v2293_v15, %v2159_v16  ;;  %v2295_v19 = vmul.f32 %v5693_v4, %v6066_v30  ;;  %v6081_v47 = vpop.f32.mrb[0].mxu1  ;;  %v6093_v33 = vld [vmem:[#allocation2 + $0x2a8] sm:$0xff] }
 0x214   :  { %v2821_v52 = vadd.f32 %v5742_v48, %v2750_v23  ;;  %v1963_v2 = vadd.f32 %v1899_v10, %v1766_v14  ;;  %3947 = vmatprep.mubr.f32.mxu1 %v2948_v34  ;;  %v2492_v27 = vmul.f32 %v5619_v43, %v6070_v35  ;;  %v2689_v37 = vmul.f32 %v5702_v46, %v6072_v44  ;;  %v6089_v59 = vpop.f32.mrb[1].mxu1  ;;  %v6095_v3 = vld [vmem:[#allocation2 + $0x2a9] sm:$0xff] }
 0x215   :  { %v1570_v40 = vadd.f32 %v1506_v8, %v1373_v21  ;;  %v1113_v25 = vmul.f32 %v5631_v20, %v5983_v51  ;;  %v2554_v10 = vadd.f32 %v2490_v55, %v2357_v49  ;;  %v1310_v17 = vmul.f32 %v5584_v63, %v5985_v12  ;;  %v6103_v14 = vld [vmem:[#allocation2 + $0x2aa] sm:$0xff] }
 0x216   :  { %v2885_v15 = vmax.f32 %v2821_v52, 0.0  ;;  %v2160_v62 = vadd.f32 %v2096_v0, %v1963_v2  ;;  %v1507_v23 = vmul.f32 %v5595_v39, %v5991_v7  ;;  %v1704_v16 = vmul.f32 %v5647_v6, %v6039_v11 }
 0x217   :  { %v1767_v8 = vadd.f32 %v1703_v26, %v1570_v40  ;;  %v1901_v51 = vmul.f32 %v5606_v50, %v6041_v57  ;;  %v2751_v0 = vadd.f32 %v6033_v28, %v2554_v10  ;;  %v1374_v34 = vadd.f32 %v1310_v17, %v1113_v25  ;;  %v6121_v10 = vld [vmem:[#allocation2 + $0x2b8] sm:$0xff] }
 0x218   :  { %v2949_v55 = vmin.f32 %v2885_v15, 6.0  ;;  %v2358_v12 = vadd.f32 %v2294_v5, %v2160_v62  ;;  %v2098_v26 = vmul.f32 %v5658_v58, %v6047_v54  ;;  %v2296_v7 = vmul.f32 %v5693_v4, %v6093_v33 }
 0x219   :  { %v1964_v21 = vadd.f32 %v1900_v13, %v1767_v8  ;;  %v2493_v52 = vmul.f32 %v5619_v43, %v6095_v3  ;;  %v2822_v49 = vadd.f32 %v5742_v48, %v2751_v0  ;;  %v1571_v40 = vadd.f32 %v1507_v23, %v1374_v34  ;;  %v6125_v23 = vld [vmem:[#allocation2 + $0x2b9] sm:$0xff] }
 0x21a   :  { %3948 = vmatmul.mubr.f32.gmra.mrb[38].mxu1 %v2949_v55  ;;  %v2555_v2 = vadd.f32 %v2491_v56, %v2358_v12  ;;  %v2690_v28 = vmul.f32 %v5702_v46, %v6103_v14  ;;  %v1114_v13 = vmul.f32 %v5631_v20, %v6003_v22  ;;  %v1311_v25 = vmul.f32 %v5584_v63, %v6012_v53 }
 0x21b   :  { %v2161_v5 = vadd.f32 %v2097_v38, %v1964_v21  ;;  %v1508_v15 = vmul.f32 %v5595_v39, %v6014_v9  ;;  %v2886_v62 = vmax.f32 %v2822_v49, 0.0  ;;  %v1768_v8 = vadd.f32 %v1704_v16, %v1571_v40  ;;  %v6127_v38 = vld [vmem:[#allocation2 + $0x2ba] sm:$0xff] }
 0x21c   :  { %v2752_v17 = vadd.f32 %v2688_v24, %v2555_v2  ;;  %v1705_v56 = vmul.f32 %v5647_v6, %v6066_v30  ;;  %v1375_v22 = vadd.f32 %v1311_v25, %v1114_v13  ;;  %v1902_v53 = vmul.f32 %v5606_v50, %v6070_v35  ;;  %v6146_v25 = vld [vmem:[#allocation2 + $0x2c0] sm:$0xff] }
 0x21d   :  { %v2359_v55 = vadd.f32 %v2295_v19, %v2161_v5  ;;  %v2099_v9 = vmul.f32 %v5658_v58, %v6072_v44  ;;  %v2950_v0 = vmin.f32 %v2886_v62, 6.0  ;;  %v1965_v24 = vadd.f32 %v1901_v51, %v1768_v8 }
 0x21e   :  { %v2823_v12 = vadd.f32 %v5742_v48, %v2752_v17  ;;  %v2297_v16 = vmul.f32 %v5693_v4, %v6121_v10  ;;  %v1572_v21 = vadd.f32 %v1508_v15, %v1375_v22  ;;  %v2494_v49 = vmul.f32 %v5619_v43, %v6125_v23  ;;  %v6140_v2 = vpop.f32.mrb[2].mxu1 }
 0x21f   :  { %v2556_v34 = vadd.f32 %v2492_v27, %v2359_v55  ;;  %v2691_v19 = vmul.f32 %v5702_v46, %v6127_v38  ;;  %3950 = vmatprep.mubr.f32.mxu1 %v2950_v0  ;;  %v2162_v5 = vadd.f32 %v2098_v26, %v1965_v24  ;;  %v1115_v13 = vmul.f32 %v5631_v20, %v6039_v11  ;;  %v6148_v27 = vpop.f32.mrb[3].mxu1  ;;  %v6154_v55 = vld [vmem:[#allocation2 + $0x2c1] sm:$0xff] }
 0x220   :  { %v2887_v40 = vmax.f32 %v2823_v12, 0.0  ;;  %v1312_v51 = vmul.f32 %v5584_v63, %v6041_v57  ;;  %v1769_v62 = vadd.f32 %v1705_v56, %v1572_v21  ;;  %v1509_v17 = vmul.f32 %v5595_v39, %v6047_v54  ;;  %v6156_v26 = vld [vmem:[#allocation2 + $0x2c2] sm:$0xff]  ;;  %v6174_v21 = vld [vmem:[%s6671_s3 + $0x1] ss:$0 sm:$0xff] }
 0x221   :  { %v2753_v15 = vadd.f32 %v2689_v37, %v2556_v34  ;;  %v1706_v8 = vmul.f32 %v5647_v6, %v6093_v33  ;;  %v2360_v22 = vadd.f32 %v2296_v7, %v2162_v5  ;;  %v1903_v63 = vmul.f32 %v5606_v50, %v6095_v3 }
 0x222   :  { %v2951_v11 = vmin.f32 %v2887_v40, 6.0  ;;  %v1376_v0 = vadd.f32 %v1312_v51, %v1115_v13  ;;  %v1966_v37 = vadd.f32 %v1902_v53, %v1769_v62  ;;  %v2100_v56 = vmul.f32 %v5658_v58, %v6103_v14  ;;  %v6178_v40 = vld [vmem:[#allocation2 + $0x2d0] sm:$0xff]  ;;  %v6183_v13 = vld [vmem:[%s6671_s3 + $0x2] ss:$0 sm:$0xff] }
 0x223   :  { %v2824_v57 = vadd.f32 %v5742_v48, %v2753_v15  ;;  %v2298_v39 = vmul.f32 %v5693_v4, %v6146_v25  ;;  %v2557_v54 = vadd.f32 %v2493_v52, %v2360_v22  ;;  %v2495_v24 = vmul.f32 %v5619_v43, %v6154_v55  ;;  %v6189_v51 = vld [vmem:[#allocation2 + $0x2d2] sm:$0xff] }
 0x224   :  { %3951 = vmatmul.mubr.f32.gmra.mrb[40].mxu1 %v2951_v11  ;;  %v1573_v12 = vadd.f32 %v1509_v17, %v1376_v0  ;;  %v2692_v7 = vmul.f32 %v5702_v46, %v6156_v26  ;;  %v2163_v50 = vadd.f32 %v2099_v9, %v1966_v37  ;;  %v1116_v53 = vmul.f32 %v5631_v20, %v6066_v30 }
 0x225   :  { %v2888_v34 = vmax.f32 %v2824_v57, 0.0  ;;  %v1313_v52 = vmul.f32 %v6174_v21, %v6070_v35  ;;  %v2754_v5 = vadd.f32 %v2690_v28, %v2557_v54  ;;  %v1510_v30 = vmul.f32 %v6183_v13, %v6072_v44  ;;  %v6194_v28 = vld [vmem:[%s6671_s3 + $0x4] ss:$0 sm:$0xff]  ;;  %v6206_v57 = vld [vmem:[%s6671_s3 + $0x7] ss:$0 sm:$0xff] }
 0x226   :  { %v1770_v43 = vadd.f32 %v1706_v8, %v1573_v12  ;;  %v1707_v9 = vmul.f32 %v5647_v6, %v6121_v10  ;;  %v2361_v62 = vadd.f32 %v2297_v16, %v2163_v50  ;;  %v1904_v17 = vmul.f32 %v6194_v28, %v6125_v23  ;;  %v6216_v50 = vld [vmem:[#allocation2 + $0x2d8] sm:$0xff] }
 0x227   :  { %v2952_v15 = vmin.f32 %v2888_v34, 6.0  ;;  %v1377_v35 = vadd.f32 %v1313_v52, %v1116_v53  ;;  %v2825_v8 = vadd.f32 %v5742_v48, %v2754_v5  ;;  %v2101_v44 = vmul.f32 %v5658_v58, %v6127_v38 }
 0x228   :  { %v1967_v11 = vadd.f32 %v1903_v63, %v1770_v43  ;;  %v2299_v22 = vmul.f32 %v5693_v4, %v6178_v40  ;;  %v2558_v16 = vadd.f32 %v2494_v49, %v2361_v62  ;;  %v2496_v37 = vmul.f32 %v6206_v57, %v5759_v42  ;;  %v6222_v43 = vld [vmem:[#allocation2 + $0x2d9] sm:$0xff] }
 0x229   :  { %3953 = vmatprep.mubr.f32.mxu1 %v2952_v15  ;;  %v1574_v0 = vadd.f32 %v1510_v30, %v1377_v35  ;;  %v2693_v63 = vmul.f32 %v5702_v46, %v6189_v51  ;;  %v2889_v54 = vmax.f32 %v2825_v8, 0.0  ;;  %v1117_v34 = vmul.f32 %v5631_v20, %v6093_v33  ;;  %v6224_v30 = vld [vmem:[#allocation2 + $0x2da] sm:$0xff] }
 0x22a   :  { %v2164_v12 = vadd.f32 %v2100_v56, %v1967_v11  ;;  %v1314_v49 = vmul.f32 %v6174_v21, %v6095_v3  ;;  %v2755_v53 = vadd.f32 %v2691_v19, %v2558_v16  ;;  %v1511_v5 = vmul.f32 %v6183_v13, %v6103_v14  ;;  %v6226_v56 = vpop.f32.mrb[4].mxu1  ;;  %v1838_v16 = vld [vmem:[#allocation2 + $0x2d1] sm:$0xff] }
 0x22b   :  { %v1771_v52 = vadd.f32 %v1707_v9, %v1574_v0  ;;  %v1708_v42 = vmul.f32 %v5647_v6, %v6146_v25  ;;  %v2953_v20 = vmin.f32 %v2889_v54, 6.0  ;;  %v1905_v3 = vmul.f32 %v6194_v28, %v6154_v55  ;;  %v6230_v19 = vpop.f32.mrb[5].mxu1 }
 0x22c   :  { %v2362_v33 = vadd.f32 %v2298_v39, %v2164_v12  ;;  %v1378_v15 = vadd.f32 %v1314_v49, %v1117_v34  ;;  %v2826_v9 = vadd.f32 %v5742_v48, %v2755_v53  ;;  %v2102_v6 = vmul.f32 %v5658_v58, %v6156_v26  ;;  %v6250_v12 = vld [vmem:[#allocation2 + $0x2e8] sm:$0xff] }
 0x22d   :  { %v1968_v14 = vadd.f32 %v1904_v17, %v1771_v52  ;;  %v2300_v62 = vmul.f32 %v5693_v4, %v6216_v50  ;;  %3954 = vmatmul.mubr.f32.gmra.mrb[42].mxu1 %v2953_v20  ;;  %v2497_v39 = vmul.f32 %v6206_v57, %v6222_v43  ;;  %v2694_v11 = vmul.f32 %v5702_v46, %v6224_v30  ;;  %v6244_v17 = vld [vmem:[%s6671_s3] ss:$0 sm:$0xff] }
 0x22e   :  { %v2559_v35 = vadd.f32 %v2495_v24, %v2362_v33  ;;  %v1575_v8 = vadd.f32 %v1511_v5, %v1378_v15  ;;  %v2890_v0 = vmax.f32 %v2826_v9, 0.0  ;;  %v1118_v58 = vmul.f32 %v6244_v17, %v6121_v10  ;;  %v6261_v5 = vld [vmem:[#allocation2 + $0x2ea] sm:$0xff] }
 0x22f   :  { %v2165_v54 = vadd.f32 %v2101_v44, %v1968_v14  ;;  %v1315_v24 = vmul.f32 %v6174_v21, %v6125_v23  ;;  %v1512_v53 = vmul.f32 %v6183_v13, %v6127_v38  ;;  %v6257_v44 = vld [vmem:[%s6671_s3 + $0x3] ss:$0 sm:$0xff]  ;;  %v1906_v33 = vmul.f32 %v6194_v28, %v1838_v16  ;;  %v6268_v38 = vld [vmem:[%s6671_s3 + $0x5] ss:$0 sm:$0xff] }
 0x230   :  { %v2756_v34 = vadd.f32 %v2692_v7, %v2559_v35  ;;  %v1772_v49 = vadd.f32 %v1708_v42, %v1575_v8  ;;  %v1709_v52 = vmul.f32 %v6257_v44, %v6178_v40  ;;  %v2954_v10 = vmin.f32 %v2890_v0, 6.0 }
 0x231   :  { %v2363_v20 = vadd.f32 %v2299_v22, %v2165_v54  ;;  %v1379_v23 = vadd.f32 %v1315_v24, %v1118_v58  ;;  %v2103_v15 = vmul.f32 %v6268_v38, %v6189_v51  ;;  %v2301_v9 = vmul.f32 %v5693_v4, %v6250_v12  ;;  %v6282_v24 = vld [vmem:[#allocation2 + $0x2f0] sm:$0xff] }
 0x232   :  { %v2827_v7 = vadd.f32 %v5742_v48, %v2756_v34  ;;  %v1969_v42 = vadd.f32 %v1905_v3, %v1772_v49  ;;  %3956 = vmatprep.mubr.f32.mxu1 %v2954_v10  ;;  %v2498_v35 = vmul.f32 %v6206_v57, %v5814_v61  ;;  %v2695_v3 = vmul.f32 %v5702_v46, %v6261_v5  ;;  %v6288_v49 = vld [vmem:[#allocation2 + $0x2f1] sm:$0xff] }
 0x233   :  { %v2560_v14 = vadd.f32 %v2496_v37, %v2363_v20  ;;  %v1576_v22 = vadd.f32 %v1512_v53, %v1379_v23  ;;  %v1119_v54 = vmul.f32 %v6244_v17, %v6146_v25  ;;  %v1316_v58 = vmul.f32 %v6174_v21, %v6154_v55  ;;  %v6290_v46 = vld [vmem:[#allocation2 + $0x2f2] sm:$0xff]  ;;  %v6302_v20 = vld [vmem:[%s6671_s3 + $0x6] ss:$0 sm:$0xff] }
 0x234   :  { %v2891_v8 = vmax.f32 %v2827_v7, 0.0  ;;  %v2166_v0 = vadd.f32 %v2102_v6, %v1969_v42  ;;  %v1513_v37 = vmul.f32 %v6183_v13, %v6156_v26  ;;  %v1710_v61 = vmul.f32 %v6257_v44, %v6216_v50 }
 0x235   :  { %v2757_v4 = vadd.f32 %v2693_v63, %v2560_v14  ;;  %v1773_v34 = vadd.f32 %v1709_v52, %v1576_v22  ;;  %v1380_v25 = vadd.f32 %v1316_v58, %v1119_v54  ;;  %v1907_v55 = vmul.f32 %v6194_v28, %v6222_v43  ;;  %v6294_v10 = vpop.f32.mrb[6].mxu1  ;;  %v1840_v22 = vld [vmem:[#allocation2 + $0x2e9] sm:$0xff]  ;;  %v6320_v58 = vld [vmem:[#allocation2 + $0x300] sm:$0xff] }
 0x236   :  { %v2955_v6 = vmin.f32 %v2891_v8, 6.0  ;;  %v2364_v53 = vadd.f32 %v2300_v62, %v2166_v0  ;;  %v2104_v26 = vmul.f32 %v6268_v38, %v6224_v30  ;;  %v2302_v62 = vmul.f32 %v6302_v20, %v6282_v24  ;;  %v6306_v23 = vpop.f32.mrb[7].mxu1 }
 0x237   :  { %v2828_v63 = vadd.f32 %v5742_v48, %v2757_v4  ;;  %v1970_v52 = vadd.f32 %v1906_v33, %v1773_v34  ;;  %6688 = vst [vmem:[#allocation9_spill] sm:$0xff] %v6306_v23  ;;  %v1577_v42 = vadd.f32 %v1513_v37, %v1380_v25  ;;  %v2499_v48 = vmul.f32 %v6206_v57, %v6288_v49  ;;  %v6313_v33 = vld [vmem:[%s6671_s3 + $0x8] ss:$0 sm:$0xff] }
 0x238   :  { %3957 = vmatmul.mubr.f32.gmra.mrb[44].mxu1 %v2955_v6  ;;  %v2561_v7 = vadd.f32 %v2497_v39, %v2364_v53  ;;  %v2696_v14 = vmul.f32 %v6313_v33, %v6290_v46  ;;  %v1120_v54 = vmul.f32 %v6244_v17, %v6178_v40  ;;  %v1317_v39 = vmul.f32 %v6174_v21, %v1838_v16  ;;  %v6326_v53 = vld [vmem:[#allocation2 + $0x302] sm:$0xff]  ;;  %v6332_v40 = vld [vmem:[%s6672_s4] ss:$0 sm:$0xff] }
 0x239   :  { %v2892_v8 = vmax.f32 %v2828_v63, 0.0  ;;  %v2167_v0 = vadd.f32 %v2103_v15, %v1970_v52  ;;  %v1774_v34 = vadd.f32 %v1710_v61, %v1577_v42  ;;  %v1514_v37 = vmul.f32 %v6183_v13, %v6189_v51 }
 0x23a   :  { %v2758_v4 = vadd.f32 %v2694_v11, %v2561_v7  ;;  %v1711_v6 = vmul.f32 %v6257_v44, %v6250_v12  ;;  %v1381_v15 = vadd.f32 %v1317_v39, %v1120_v54  ;;  %v1908_v52 = vmul.f32 %v6194_v28, %v1840_v22 }
 0x23b   :  { %v2956_v25 = vmin.f32 %v2892_v8, 6.0  ;;  %v2365_v63 = vadd.f32 %v2301_v9, %v2167_v0  ;;  %v1971_v16 = vadd.f32 %v1907_v55, %v1774_v34  ;;  %v2105_v51 = vmul.f32 %v6268_v38, %v6261_v5 }
 0x23c   :  { %v2829_v11 = vadd.f32 %v6332_v40, %v2758_v4  ;;  %v2303_v61 = vmul.f32 %v6302_v20, %v6320_v58  ;;  %v1578_v9 = vadd.f32 %v1514_v37, %v1381_v15  ;;  %v2500_v42 = vmul.f32 %v6206_v57, %v5873_v18  ;;  %v6347_v4 = vld [vmem:[#allocation2 + $0x308] sm:$0xff] }
 0x23d   :  { %3959 = vmatprep.mubr.f32.mxu1 %v2956_v25  ;;  %v2562_v7 = vadd.f32 %v2498_v35, %v2365_v63  ;;  %v2697_v8 = vmul.f32 %v6313_v33, %v6326_v53  ;;  %v2168_v54 = vadd.f32 %v2104_v26, %v1971_v16  ;;  %v1121_v55 = vmul.f32 %v6244_v17, %v6216_v50  ;;  %v6353_v37 = vld [vmem:[#allocation2 + $0x309] sm:$0xff] }
 0x23e   :  { %v2893_v0 = vmax.f32 %v2829_v11, 0.0  ;;  %v1318_v39 = vmul.f32 %v6174_v21, %v6222_v43  ;;  %v1775_v25 = vadd.f32 %v1711_v6, %v1578_v9  ;;  %v1515_v35 = vmul.f32 %v6183_v13, %v6224_v30  ;;  %v6355_v63 = vld [vmem:[#allocation2 + $0x30a] sm:$0xff] }
 0x23f   :  { %v2759_v34 = vadd.f32 %v2695_v3, %v2562_v7  ;;  %v1712_v18 = vmul.f32 %v6257_v44, %v6282_v24  ;;  %v2366_v15 = vadd.f32 %v2302_v62, %v2168_v54  ;;  %v1909_v43 = vmul.f32 %v6194_v28, %v6288_v49  ;;  %v1842_v54 = vld [vmem:[#allocation2 + $0x301] sm:$0xff] }
 0x240   :  { %v2957_v26 = vmin.f32 %v2893_v0, 6.0  ;;  %v1382_v50 = vadd.f32 %v1318_v39, %v1121_v55  ;;  %v1972_v3 = vadd.f32 %v1908_v52, %v1775_v25  ;;  %v2106_v6 = vmul.f32 %v6268_v38, %v6290_v46  ;;  %v6364_v16 = vpop.f32.mrb[8].mxu1 }
 0x241   :  { %v2830_v11 = vadd.f32 %v6332_v40, %v2759_v34  ;;  %v2304_v30 = vmul.f32 %v6302_v20, %v6347_v4  ;;  %6689 = vst [vmem:[#allocation10_spill] sm:$0xff] %v6364_v16  ;;  %v2563_v7 = vadd.f32 %v2499_v48, %v2366_v15  ;;  %v2501_v62 = vmul.f32 %v6206_v57, %v6353_v37  ;;  %v6370_v55 = vpop.f32.mrb[9].mxu1  ;;  %v6375_v16 = vld [vmem:[#allocation2 + $0x318] sm:$0xff] }
 0x242   :  { %3960 = vmatmul.mubr.f32.gmra.mrb[46].mxu1 %v2957_v26  ;;  %v1579_v9 = vadd.f32 %v1515_v35, %v1382_v50  ;;  %v2698_v0 = vmul.f32 %v6313_v33, %v6355_v63  ;;  %6690 = vst [vmem:[#allocation11_spill] sm:$0xff] %v6370_v55  ;;  %v2169_v39 = vadd.f32 %v2105_v51, %v1972_v3  ;;  %v6381_v50 = vld [vmem:[#allocation2 + $0x31a] sm:$0xff] }
 0x243   :  { %v2894_v52 = vmax.f32 %v2830_v11, 0.0  ;;  %v1122_v34 = vmul.f32 %v6244_v17, %v6250_v12  ;;  %v1319_v25 = vmul.f32 %v6174_v21, %v1840_v22  ;;  %v2760_v48 = vadd.f32 %v2696_v14, %v2563_v7 }
 0x244   :  { %v1776_v35 = vadd.f32 %v1712_v18, %v1579_v9  ;;  %v1516_v26 = vmul.f32 %v6183_v13, %v6261_v5  ;;  %v1713_v15 = vmul.f32 %v6257_v44, %v6320_v58  ;;  %v2367_v11 = vadd.f32 %v2303_v61, %v2169_v39 }
 0x245   :  { %v2958_v55 = vmin.f32 %v2894_v52, 6.0  ;;  %v1383_v51 = vadd.f32 %v1319_v25, %v1122_v34  ;;  %v1910_v3 = vmul.f32 %v6194_v28, %v1842_v54  ;;  %v2831_v12 = vadd.f32 %v6332_v40, %v2760_v48  ;;  %v6397_v25 = vld [vmem:[#allocation2 + $0x320] sm:$0xff] }
 0x246   :  { %v1973_v22 = vadd.f32 %v1909_v43, %v1776_v35  ;;  %v2107_v14 = vmul.f32 %v6268_v38, %v6326_v53  ;;  %v2305_v18 = vmul.f32 %v6302_v20, %v6375_v16  ;;  %v2564_v5 = vadd.f32 %v2500_v42, %v2367_v11  ;;  %v6403_v35 = vld [vmem:[#allocation2 + $0x321] sm:$0xff] }
 0x247   :  { %3962 = vmatprep.mubr.f32.mxu1 %v2958_v55  ;;  %v1580_v7 = vadd.f32 %v1516_v26, %v1383_v51  ;;  %v2502_v9 = vmul.f32 %v6206_v57, %v5936_v60  ;;  %v2699_v61 = vmul.f32 %v6313_v33, %v6381_v50  ;;  %v2895_v52 = vmax.f32 %v2831_v12, 0.0  ;;  %v6405_v26 = vld [vmem:[#allocation2 + $0x322] sm:$0xff] }
 0x248   :  { %v2170_v39 = vadd.f32 %v2106_v6, %v1973_v22  ;;  %v1123_v43 = vmul.f32 %v6244_v17, %v6282_v24  ;;  %v1320_v34 = vmul.f32 %v6174_v21, %v6288_v49  ;;  %v2761_v48 = vadd.f32 %v2697_v8, %v2564_v5 }
 0x249   :  { %v1777_v55 = vadd.f32 %v1713_v15, %v1580_v7  ;;  %v1517_v42 = vmul.f32 %v6183_v13, %v6290_v46  ;;  %v1714_v60 = vmul.f32 %v6257_v44, %v6347_v4  ;;  %v2959_v6 = vmin.f32 %v2895_v52, 6.0  ;;  %v1844_v7 = vld [vmem:[#allocation2 + $0x319] sm:$0xff] }
 0x24a   :  { %v2368_v11 = vadd.f32 %v2304_v30, %v2170_v39  ;;  %v1384_v24 = vadd.f32 %v1320_v34, %v1123_v43  ;;  %v1911_v49 = vmul.f32 %v6194_v28, %v6353_v37  ;;  %v2832_v51 = vadd.f32 %v6332_v40, %v2761_v48  ;;  %v2239_v34 = vld [vmem:[#allocation2 + $0x330] sm:$0xff] }
 0x24b   :  { %v1974_v8 = vadd.f32 %v1910_v3, %v1777_v55  ;;  %v2108_v15 = vmul.f32 %v6268_v38, %v6355_v63  ;;  %v2306_v46 = vmul.f32 %v6302_v20, %v6397_v25  ;;  %3963 = vmatmul.mubr.f32.gmra.mrb[48].mxu1 %v2959_v6  ;;  %v2503_v5 = vmul.f32 %v6206_v57, %v6403_v35 }
 0x24c   :  { %v2565_v12 = vadd.f32 %v2501_v62, %v2368_v11  ;;  %v1581_v22 = vadd.f32 %v1517_v42, %v1384_v24  ;;  %v2700_v30 = vmul.f32 %v6313_v33, %v6405_v26  ;;  %v2896_v52 = vmax.f32 %v2832_v51, 0.0  ;;  %v6421_v48 = vpop.f32.mrb[10].mxu1  ;;  %v2633_v11 = vld [vmem:[#allocation2 + $0x332] sm:$0xff] }
 0x24d   :  { %v2171_v39 = vadd.f32 %v2107_v14, %v1974_v8  ;;  %v1124_v3 = vmul.f32 %v6244_v17, %v6320_v58  ;;  %v1321_v43 = vmul.f32 %v6174_v21, %v1842_v54  ;;  %v1518_v42 = vmul.f32 %v6183_v13, %v6326_v53  ;;  %v6427_v24 = vpop.f32.mrb[11].mxu1 }
 0x24e   :  { %v2762_v55 = vadd.f32 %v2698_v0, %v2565_v12  ;;  %v1778_v62 = vadd.f32 %v1714_v60, %v1581_v22  ;;  %v1715_v6 = vmul.f32 %v6257_v44, %v6375_v16  ;;  %6691 = vst [vmem:[#allocation12_spill] sm:$0xff] %v6427_v24  ;;  %v2960_v14 = vmin.f32 %v2896_v52, 6.0 }
 0x24f   :  { %v2369_v51 = vadd.f32 %v2305_v18, %v2171_v39  ;;  %v1385_v8 = vadd.f32 %v1321_v43, %v1124_v3  ;;  %v1912_v58 = vmul.f32 %v6194_v28, %v1844_v7  ;;  %v2109_v0 = vmul.f32 %v6268_v38, %v6381_v50  ;;  %v2240_v43 = vld [vmem:[#allocation2 + $0x338] sm:$0xff] }
 0x250   :  { %v2833_v54 = vadd.f32 %v6332_v40, %v2762_v55  ;;  %v1975_v23 = vadd.f32 %v1911_v49, %v1778_v62  ;;  %v2307_v60 = vmul.f32 %v6302_v20, %v2239_v34  ;;  %3965 = vmatprep.mubr.f32.mxu1 %v2960_v14  ;;  %v2504_v22 = vmul.f32 %v6206_v57, %v5995_v36  ;;  %v2437_v36 = vld [vmem:[#allocation2 + $0x339] sm:$0xff] }
 0x251   :  { %v2566_v53 = vadd.f32 %v2502_v9, %v2369_v51  ;;  %v1582_v12 = vadd.f32 %v1518_v42, %v1385_v8  ;;  %v2701_v52 = vmul.f32 %v6313_v33, %v2633_v11  ;;  %v1125_v3 = vmul.f32 %v6244_v17, %v6347_v4  ;;  %v2634_v14 = vld [vmem:[#allocation2 + $0x33a] sm:$0xff] }
 0x252   :  { %v2897_v18 = vmax.f32 %v2833_v54, 0.0  ;;  %v2172_v39 = vadd.f32 %v2108_v15, %v1975_v23  ;;  %v1322_v49 = vmul.f32 %v6174_v21, %v6353_v37  ;;  %v1519_v9 = vmul.f32 %v6183_v13, %v6355_v63 }
 0x253   :  { %v2763_v55 = vadd.f32 %v2699_v61, %v2566_v53  ;;  %v1779_v62 = vadd.f32 %v1715_v6, %v1582_v12  ;;  %v1716_v42 = vmul.f32 %v6257_v44, %v6397_v25  ;;  %v1913_v4 = vmul.f32 %v6194_v28, %v6403_v35 }
 0x254   :  { %v2961_v51 = vmin.f32 %v2897_v18, 6.0  ;;  %v2370_v8 = vadd.f32 %v2306_v46, %v2172_v39  ;;  %v1386_v23 = vadd.f32 %v1322_v49, %v1125_v3  ;;  %v2110_v61 = vmul.f32 %v6268_v38, %v6405_v26  ;;  %v1846_v46 = vld [vmem:[#allocation2 + $0x331] sm:$0xff] }
 0x255   :  { %v2834_v15 = vadd.f32 %v6332_v40, %v2763_v55  ;;  %v1976_v37 = vadd.f32 %v1912_v58, %v1779_v62  ;;  %v2308_v6 = vmul.f32 %v6302_v20, %v2240_v43  ;;  %v2505_v53 = vmul.f32 %v6206_v57, %v2437_v36 }
 0x256   :  { %3966 = vmatmul.mubr.f32.gmra.mrb[50].mxu1 %v2961_v51  ;;  %v2567_v63 = vadd.f32 %v2503_v5, %v2370_v8  ;;  %v1583_v54 = vadd.f32 %v1519_v9, %v1386_v23  ;;  %v2702_v12 = vmul.f32 %v6313_v33, %v2634_v14  ;;  %v1126_v3 = vmul.f32 %v6244_v17, %v6375_v16  ;;  %v2438_v9 = vld [vmem:[#allocation2 + $0x349] sm:$0xff] }
 0x257   :  { %v2898_v18 = vmax.f32 %v2834_v15, 0.0  ;;  %v2173_v39 = vadd.f32 %v2109_v0, %v1976_v37  ;;  %v1323_v58 = vmul.f32 %v6174_v21, %v1844_v7  ;;  %v1520_v62 = vmul.f32 %v6183_v13, %v6381_v50  ;;  %v2635_v51 = vld [vmem:[#allocation2 + $0x34a] sm:$0xff] }
 0x258   :  { %v2764_v49 = vadd.f32 %v2700_v30, %v2567_v63  ;;  %v1780_v55 = vadd.f32 %v1716_v42, %v1583_v54  ;;  %v1717_v5 = vmul.f32 %v6257_v44, %v2239_v34  ;;  %v6459_v8 = vpop.f32.mrb[12].mxu1  ;;  %v1914_v0 = vmul.f32 %v6194_v28, %v1846_v46  ;;  %v4071_v42 = vld [vmem:[#allocation2] sm:$0xff] }
 0x259   :  { %v2962_v23 = vmin.f32 %v2898_v18, 6.0  ;;  %v2371_v24 = vadd.f32 %v2307_v60, %v2173_v39  ;;  %v1387_v15 = vadd.f32 %v1323_v58, %v1126_v3  ;;  %v6462_v37 = vpop.f32.mrb[13].mxu1  ;;  %v2111_v7 = vmul.f32 %v6268_v38, %v2633_v11  ;;  %v2439_v11 = vld [vmem:[#allocation2 + $0x351] sm:$0xff] }
 0x25a   :  { %v2835_v16 = vadd.f32 %v6332_v40, %v2764_v49  ;;  %v1977_v30 = vadd.f32 %v1913_v4, %v1780_v55  ;;  %v6467_v50 = vmul.f32 %v4071_v42, %v6302_v20  ;;  %v2506_v54 = vmul.f32 %v6206_v57, %v2438_v9  ;;  %v6481_v49 = vld [vmem:[%s6674_s6] ss:$0 sm:$0xff]  ;;  %s4188_s6 = smov [#allocation6]  }
 0x25b   :  { %3968 = vmatprep.mubr.f32.mxu1 %v2962_v23  ;;  %v2568_v34 = vadd.f32 %v2504_v22, %v2371_v24  ;;  %v1584_v63 = vadd.f32 %v1520_v62, %v1387_v15  ;;  %v2703_v60 = vmul.f32 %v6313_v33, %v2635_v51  ;;  %v1127_v39 = vmul.f32 %v6244_v17, %v6397_v25  ;;  %v2636_v22 = vld [vmem:[#allocation2 + $0x352] sm:$0xff]  ;;  %v4073_v23 = vld [vmem:[#allocation3] sm:$0xff]  ;;  %s3509_s20 = sshll.u32 %s4188_s6, 4  ;;  %s3510_s20 = int_to_ptr.vmem [resolvable:$true] %s3509_s20 }
 0x25c   :  { %v2899_v18 = vmax.f32 %v2835_v16, 0.0  ;;  %v2174_v46 = vadd.f32 %v2110_v61, %v1977_v30  ;;  %v1324_v4 = vmul.f32 %v6174_v21, %v6403_v35  ;;  %v1521_v20 = vmul.f32 %v6183_v13, %v6405_v26  ;;  %v4074_v15 = vld [vmem:[#allocation3 + $0x18] sm:$0xff]  ;;  %s4158_s21 = scalar_lea.vmem %s3510_s20, 8192  ;;  %p4163_p9 = scmp.lt.s32.totalorder %s3510_s20, %s3510_s20 }
 0x25d   :  { %v2765_v3 = vadd.f32 %v2701_v52, %v2568_v34  ;;  %v1781_v58 = vadd.f32 %v1717_v5, %v1584_v63  ;;  %v1718_v24 = vmul.f32 %v6257_v44, %v2240_v43  ;;  %v1915_v25 = vmul.f32 %v6194_v28, %v2437_v36  ;;  %p4159_p8 = scmp.ne.s32.totalorder %s3510_s20, %s4158_s21  ;;  %p4164_p10 = scmp.lt.s32.totalorder %s4158_s21, %s4158_s21 }
 0x25e   :  { %v2963_v61 = vmin.f32 %v2899_v18, 6.0  ;;  %v2372_v55 = vadd.f32 %v2308_v6, %v2174_v46  ;;  %v1388_v17 = vadd.f32 %v1324_v4, %v1127_v39  ;;  %v2112_v52 = vmul.f32 %v6268_v38, %v2634_v14  ;;  %v4072_v14 = vld [vmem:[#allocation3 + $0x8] sm:$0xff] }
 0x25f   :  { %v2836_v21 = vadd.f32 %v6332_v40, %v2765_v3  ;;  %v1978_v35 = vadd.f32 %v1914_v0, %v1781_v58  ;;  %v6487_v13 = vmul.f32 %v6206_v57, %v2439_v11  ;;  %v6490_v43 = vmul.f32 %v6313_v33, %v2636_v22  ;;  %v4077_v3 = vld [vmem:[#allocation3 + $0x20] sm:$0xff]  ;;  %v4078_v58 = vld [vmem:[#allocation3 + $0x38] sm:$0xff]  ;;  %p4165_p11 = por %p4164_p10, %p4163_p9 }
 0x260   :  { %3969 = vmatmul.mubr.f32.gmra.mrb[52].mxu1 %v2963_v61  ;;  %v2569_v44 = vadd.f32 %v2505_v53, %v2372_v55  ;;  %v1585_v26 = vadd.f32 %v1521_v20, %v1388_v17  ;;  %v3063_v6 = vadd.f32 %v5905_v1, %v6481_v49  ;;  %v3058_v28 = vadd.f32 %v6481_v49, %v5909_v32  ;;  %v4080_v61 = vld [vmem:[#allocation3 + $0x48] sm:$0xff] }
 0x261   :  { %v2900_v62 = vmax.f32 %v2836_v21, 0.0  ;;  %v2175_v5 = vadd.f32 %v2111_v7, %v1978_v35  ;;  %v3073_v38 = vadd.f32 %v5921_v45, %v6481_v49  ;;  %v3068_v53 = vadd.f32 %v6481_v49, %v5930_v31  ;;  %v4075_v45 = vld [vmem:[#allocation3 + $0x10] sm:$0xff]  ;;  %v4081_v21 = vld [vmem:[#allocation3 + $0x40] sm:$0xff]  ;;  %p4166_p12 = pnand %p4165_p11, %p4159_p8 }
 0x262   :  { %v2766_v36 = vadd.f32 %v2702_v12, %v2569_v44  ;;  %v1782_v57 = vadd.f32 %v1718_v24, %v1585_v26  ;;  %v3377_v9 = vadd.f32 %v4072_v14, %v3063_v6  ;;  %v3376_v1 = vadd.f32 %v4073_v23, %v3058_v28  ;;  %v6693_v26 = vld [vmem:[#allocation10_spill] sm:$0xff]  ;;  %v4086_v14 = vld [vmem:[#allocation3 + $0x78] sm:$0xff] }
 0x263   :  { %v2964_v33 = vmin.f32 %v2900_v62, 6.0  ;;  %v2373_v51 = vadd.f32 %v6467_v50, %v2175_v5  ;;  %v3379_v0 = vadd.f32 %v4074_v15, %v3073_v38  ;;  %v3378_v12 = vadd.f32 %v4075_v45, %v3068_v53  ;;  %v6505_v7 = vpop.f32.mrb[14].mxu1  ;;  %v4082_v62 = vld [vmem:[#allocation3 + $0x58] sm:$0xff]  ;;  %v4084_v38 = vld [vmem:[#allocation3 + $0x68] sm:$0xff]  ;;  %v6694_v53 = vld [vmem:[#allocation11_spill] sm:$0xff] }
 0x264   :  { %v2837_v16 = vadd.f32 %v6332_v40, %v2766_v36  ;;  %v1979_v32 = vadd.f32 %v1915_v25, %v1782_v57  ;;  %3441 = vst.msk [vmem:[#allocation6 + $0x8] sm:$0xff] %vm116_vm0, %v3377_v9  ;;  %v3083_v30 = vadd.f32 %v6016_v41, %v6481_v49  ;;  %3440 = vst.msk [vmem:[#allocation6] sm:$0xff] %vm116_vm0, %v3376_v1  ;;  %v6515_v18 = vpop.f32.mrb[15].mxu1 }
 0x265   :  { %3971 = vmatprep.mubr.f32.mxu1 %v2964_v33  ;;  %v2570_v31 = vadd.f32 %v2506_v54, %v2373_v51  ;;  %3443 = vst.msk [vmem:[#allocation6 + $0x18] sm:$0xff] %vm116_vm0, %v3379_v0  ;;  %v3078_v42 = vadd.f32 %v6481_v49, %v6023_v29  ;;  %v3093_v34 = vadd.f32 %v6081_v47, %v6481_v49  ;;  %3442 = vst.msk [vmem:[#allocation6 + $0x10] sm:$0xff] %vm116_vm0, %v3378_v12  ;;  %v4076_v54 = vld [vmem:[#allocation3 + $0x28] sm:$0xff]  ;;  %v4079_v47 = vld [vmem:[#allocation3 + $0x30] sm:$0xff] }
 0x266   :  { %v3088_v63 = vadd.f32 %v6481_v49, %v6089_v59  ;;  %v2901_v41 = vmax.f32 %v2837_v16, 0.0  ;;  %v2176_v46 = vadd.f32 %v2112_v52, %v1979_v32  ;;  %v3381_v39 = vadd.f32 %v4076_v54, %v3083_v30  ;;  %v6692_v52 = vld [vmem:[#allocation9_spill] sm:$0xff]  ;;  %v4087_v16 = vld [vmem:[#allocation3 + $0x70] sm:$0xff]  ;;  %v4088_v12 = vld [vmem:[#allocation3 + $0x88] sm:$0xff] }
 0x267   :  { %v3103_v4 = vadd.f32 %v6140_v2, %v6481_v49  ;;  %v2767_v11 = vadd.f32 %v2703_v60, %v2570_v31  ;;  %v3380_v29 = vadd.f32 %v4077_v3, %v3078_v42  ;;  %v3383_v20 = vadd.f32 %v4078_v58, %v3093_v34  ;;  %v4089_v31 = vld [vmem:[#allocation3 + $0x80] sm:$0xff]  ;;  %v4094_v58 = vld [vmem:[#allocation3 + $0xb8] sm:$0xff] }
 0x268   :  { %v3382_v24 = vadd.f32 %v4079_v47, %v3088_v63  ;;  %v2965_v22 = vmin.f32 %v2901_v41, 6.0  ;;  %v2374_v59 = vadd.f32 %v6467_v50, %v2176_v46  ;;  %3445 = vst.msk [vmem:[#allocation6 + $0x28] sm:$0xff] %vm116_vm0, %v3381_v39  ;;  %v3098_v17 = vadd.f32 %v6481_v49, %v6148_v27  ;;  %v4091_v46 = vld [vmem:[#allocation3 + $0x90] sm:$0xff] }
 0x269   :  { %v3385_v55 = vadd.f32 %v4080_v61, %v3103_v4  ;;  %v2838_v25 = vadd.f32 %v6332_v40, %v2767_v11  ;;  %3444 = vst.msk [vmem:[#allocation6 + $0x20] sm:$0xff] %vm116_vm0, %v3380_v29  ;;  %3447 = vst.msk [vmem:[#allocation6 + $0x38] sm:$0xff] %vm116_vm0, %v3383_v20  ;;  %v3113_v2 = vadd.f32 %v6226_v56, %v6481_v49  ;;  %v4093_v11 = vld [vmem:[#allocation3 + $0xa0] sm:$0xff]  ;;  %v4095_v47 = vld [vmem:[#allocation3 + $0xb0] sm:$0xff] }
 0x26a   :  { %3446 = vst.msk [vmem:[#allocation6 + $0x30] sm:$0xff] %vm116_vm0, %v3382_v24  ;;  %v3108_v50 = vadd.f32 %v6481_v49, %v6230_v19  ;;  %v3123_v60 = vadd.f32 %v6294_v10, %v6481_v49  ;;  %3972 = vmatmul.mubr.f32.gmra.mrb[54].mxu1 %v2965_v22  ;;  %v2571_v27 = vadd.f32 %v6487_v13, %v2374_v59  ;;  %v4083_v19 = vld [vmem:[#allocation3 + $0x50] sm:$0xff]  ;;  %v4085_v13 = vld [vmem:[#allocation3 + $0x60] sm:$0xff] }
 0x26b   :  { %3449 = vst.msk [vmem:[#allocation6 + $0x48] sm:$0xff] %vm116_vm0, %v3385_v55  ;;  %v3384_v35 = vadd.f32 %v4081_v21, %v3098_v17  ;;  %v3118_v44 = vadd.f32 %v6481_v49, %v6692_v52  ;;  %v3133_v6 = vadd.f32 %v6693_v26, %v6481_v49  ;;  %v2902_v56 = vmax.f32 %v2838_v25, 0.0  ;;  %v4096_v17 = vld [vmem:[#allocation3 + $0xc8] sm:$0xff]  ;;  %v4098_v52 = vld [vmem:[#allocation3 + $0xd8] sm:$0xff]  ;;  %v4099_v26 = vld [vmem:[#allocation3 + $0xd0] sm:$0xff] }
 0x26c   :  { %v3387_v5 = vadd.f32 %v4082_v62, %v3113_v2  ;;  %v3386_v28 = vadd.f32 %v4083_v19, %v3108_v50  ;;  %v3389_v10 = vadd.f32 %v4084_v38, %v3123_v60  ;;  %v2768_v36 = vadd.f32 %v6490_v43, %v2571_v27  ;;  %v6695_v43 = vld [vmem:[#allocation12_spill] sm:$0xff]  ;;  %v4097_v2 = vld [vmem:[#allocation3 + $0xc0] sm:$0xff] }
 0x26d   :  { %3448 = vst.msk [vmem:[#allocation6 + $0x40] sm:$0xff] %vm116_vm0, %v3384_v35  ;;  %v3388_v57 = vadd.f32 %v4085_v13, %v3118_v44  ;;  %v3391_v9 = vadd.f32 %v4086_v14, %v3133_v6  ;;  %v3128_v33 = vadd.f32 %v6481_v49, %v6694_v53  ;;  %v2966_v51 = vmin.f32 %v2902_v56, 6.0  ;;  %v4102_v53 = vld [vmem:[#allocation3 + $0xf8] sm:$0xff] }
 0x26e   :  { %3451 = vst.msk [vmem:[#allocation6 + $0x58] sm:$0xff] %vm116_vm0, %v3387_v5  ;;  %3450 = vst.msk [vmem:[#allocation6 + $0x50] sm:$0xff] %vm116_vm0, %v3386_v28  ;;  %v3143_v23 = vadd.f32 %v6421_v48, %v6481_v49  ;;  %v3138_v1 = vadd.f32 %v6481_v49, %v6695_v43  ;;  %v3153_v15 = vadd.f32 %v6459_v8, %v6481_v49  ;;  %v4090_v8 = vld [vmem:[#allocation3 + $0x98] sm:$0xff]  ;;  %v4100_v28 = vld [vmem:[#allocation3 + $0xe8] sm:$0xff] }
 0x26f   :  { %3453 = vst.msk [vmem:[#allocation6 + $0x68] sm:$0xff] %vm116_vm0, %v3389_v10  ;;  %v2839_v0 = vadd.f32 %v6332_v40, %v2768_v36  ;;  %3452 = vst.msk [vmem:[#allocation6 + $0x60] sm:$0xff] %vm116_vm0, %v3388_v57  ;;  %v3390_v32 = vadd.f32 %v4087_v16, %v3128_v33  ;;  %v3148_v45 = vadd.f32 %v6481_v49, %v6462_v37  ;;  %3974 = vmatprep.mubr.f32.mxu1 %v2966_v51  ;;  %v3916_v63 = vpop.f32.mrb[16].mxu1  ;;  %v4092_v37 = vld [vmem:[#allocation3 + $0xa8] sm:$0xff]  ;;  %v4101_v10 = vld [vmem:[#allocation3 + $0xe0] sm:$0xff] }
 0x270   :  { %3455 = vst.msk [vmem:[#allocation6 + $0x78] sm:$0xff] %vm116_vm0, %v3391_v9  ;;  %v3163_v48 = vadd.f32 %v6505_v7, %v6481_v49  ;;  %v3393_v30 = vadd.f32 %v4088_v12, %v3143_v23  ;;  %v3392_v42 = vadd.f32 %v4089_v31, %v3138_v1  ;;  %v3395_v34 = vadd.f32 %v4090_v8, %v3153_v15  ;;  %v3167_v4 = vpop.f32.mrb[17].mxu1  ;;  %v4103_v51 = vld [vmem:[#allocation3 + $0xf0] sm:$0xff]  ;;  %v4104_v16 = vld [vmem:[#allocation3 + $0x108] sm:$0xff]  ;;  %v4106_v8 = vld [vmem:[#allocation3 + $0x118] sm:$0xff] }
 0x271   :  { %v3158_v40 = vadd.f32 %v6481_v49, %v6515_v18  ;;  %v2903_v41 = vmax.f32 %v2839_v0, 0.0  ;;  %3454 = vst.msk [vmem:[#allocation6 + $0x70] sm:$0xff] %vm116_vm0, %v3390_v32  ;;  %v3394_v54 = vadd.f32 %v4091_v46, %v3148_v45  ;;  %v3173_v7 = vadd.f32 %v3916_v63, %v6481_v49  ;;  %v4105_v45 = vld [vmem:[#allocation3 + $0x100] sm:$0xff] }
 0x272   :  { %v3397_v39 = vadd.f32 %v4092_v37, %v3163_v48  ;;  %3457 = vst.msk [vmem:[#allocation6 + $0x88] sm:$0xff] %vm116_vm0, %v3393_v30  ;;  %3456 = vst.msk [vmem:[#allocation6 + $0x80] sm:$0xff] %vm116_vm0, %v3392_v42  ;;  %v3168_v18 = vadd.f32 %v6481_v49, %v3167_v4  ;;  %v4109_v4 = vld [vmem:[#allocation3 + $0x120] sm:$0xff] }
 0x273   :  { %3459 = vst.msk [vmem:[#allocation6 + $0x98] sm:$0xff] %vm116_vm0, %v3395_v34  ;;  %v3396_v3 = vadd.f32 %v4093_v11, %v3158_v40  ;;  %v2967_v29 = vmin.f32 %v2903_v41, 6.0  ;;  %3458 = vst.msk [vmem:[#allocation6 + $0x90] sm:$0xff] %vm116_vm0, %v3394_v54  ;;  %v3399_v20 = vadd.f32 %v4094_v58, %v3173_v7  ;;  %v4107_v40 = vld [vmem:[#allocation3 + $0x110] sm:$0xff] }
 0x274   :  { %3461 = vst.msk [vmem:[#allocation6 + $0xa8] sm:$0xff] %vm116_vm0, %v3397_v39  ;;  %v3398_v24 = vadd.f32 %v4095_v47, %v3168_v18  ;;  %v4108_v39 = vld [vmem:[#allocation3 + $0x128] sm:$0xff] }
 0x275   :  { %3460 = vst.msk [vmem:[#allocation6 + $0xa0] sm:$0xff] %vm116_vm0, %v3396_v3  ;;  %3975 = vmatmul.mubr.f32.gmra.mrb[56].mxu1 %v2967_v29  ;;  %3463 = vst.msk [vmem:[#allocation6 + $0xb8] sm:$0xff] %vm116_vm0, %v3399_v20  ;;  %v4110_v20 = vld [vmem:[#allocation3 + $0x138] sm:$0xff] }
 0x276   :  { %3462 = vst.msk [vmem:[#allocation6 + $0xb0] sm:$0xff] %vm116_vm0, %v3398_v24  ;;  %v4111_v24 = vld [vmem:[#allocation3 + $0x130] sm:$0xff] }
 0x27a   :  { %v3919_v22 = vpop.f32.mrb[18].mxu1 }
 0x27b   :  { %v3183_v59 = vadd.f32 %v3919_v22, %v6481_v49  ;;  %v3177_v61 = vpop.f32.mrb[19].mxu1 }
 0x27c   :  { %v3178_v55 = vadd.f32 %v6481_v49, %v3177_v61 }
 0x27d   :  { %v3401_v25 = vadd.f32 %v4096_v17, %v3183_v59 }
 0x27e   :  { %v3400_v50 = vadd.f32 %v4097_v2, %v3178_v55 }
 0x27f   :  { %3465 = vst.msk [vmem:[#allocation6 + $0xc8] sm:$0xff] %vm116_vm0, %v3401_v25  ;;  %v4112_v25 = vld [vmem:[#allocation3 + $0x148] sm:$0xff] }
 0x280   :  { %3464 = vst.msk [vmem:[#allocation6 + $0xc0] sm:$0xff] %vm116_vm0, %v3400_v50  ;;  %v4113_v50 = vld [vmem:[#allocation3 + $0x140] sm:$0xff] }
 0x286   :  { %v3922_v60 = vpop.f32.mrb[20].mxu1 }
 0x287   :  { %v3193_v27 = vadd.f32 %v3922_v60, %v6481_v49  ;;  %v3187_v21 = vpop.f32.mrb[21].mxu1 }
 0x288   :  { %v3188_v35 = vadd.f32 %v6481_v49, %v3187_v21 }
 0x289   :  { %v3403_v44 = vadd.f32 %v4098_v52, %v3193_v27 }
 0x28a   :  { %v3402_v6 = vadd.f32 %v4099_v26, %v3188_v35 }
 0x28b   :  { %3467 = vst.msk [vmem:[#allocation6 + $0xd8] sm:$0xff] %vm116_vm0, %v3403_v44  ;;  %v4114_v44 = vld [vmem:[#allocation3 + $0x158] sm:$0xff] }
 0x28c   :  { %3466 = vst.msk [vmem:[#allocation6 + $0xd0] sm:$0xff] %vm116_vm0, %v3402_v6  ;;  %v4115_v6 = vld [vmem:[#allocation3 + $0x150] sm:$0xff] }
 0x291   :  { %v3925_v56 = vpop.f32.mrb[22].mxu1 }
 0x292   :  { %v3203_v62 = vadd.f32 %v3925_v56, %v6481_v49  ;;  %v3197_v5 = vpop.f32.mrb[23].mxu1 }
 0x293   :  { %v3198_v19 = vadd.f32 %v6481_v49, %v3197_v5 }
 0x294   :  { %v3405_v38 = vadd.f32 %v4100_v28, %v3203_v62 }
 0x295   :  { %v3404_v36 = vadd.f32 %v4101_v10, %v3198_v19 }
 0x296   :  { %3469 = vst.msk [vmem:[#allocation6 + $0xe8] sm:$0xff] %vm116_vm0, %v3405_v38  ;;  %v4116_v38 = vld [vmem:[#allocation3 + $0x168] sm:$0xff] }
 0x297   :  { %3468 = vst.msk [vmem:[#allocation6 + $0xe0] sm:$0xff] %vm116_vm0, %v3404_v36  ;;  %v4117_v36 = vld [vmem:[#allocation3 + $0x160] sm:$0xff] }
 0x29d   :  { %v3928_v13 = vpop.f32.mrb[24].mxu1 }
 0x29e   :  { %v3213_v57 = vadd.f32 %v3928_v13, %v6481_v49  ;;  %v3207_v14 = vpop.f32.mrb[25].mxu1 }
 0x29f   :  { %v3208_v9 = vadd.f32 %v6481_v49, %v3207_v14 }
 0x2a0   :  { %v3407_v33 = vadd.f32 %v4102_v53, %v3213_v57 }
 0x2a1   :  { %v3406_v23 = vadd.f32 %v4103_v51, %v3208_v9 }
 0x2a2   :  { %3471 = vst.msk [vmem:[#allocation6 + $0xf8] sm:$0xff] %vm116_vm0, %v3407_v33  ;;  %v4118_v33 = vld [vmem:[#allocation3 + $0x178] sm:$0xff] }
 0x2a3   :  { %3470 = vst.msk [vmem:[#allocation6 + $0xf0] sm:$0xff] %vm116_vm0, %v3406_v23  ;;  %v4119_v23 = vld [vmem:[#allocation3 + $0x170] sm:$0xff] }
 0x2a8   :  { %v3931_v43 = vpop.f32.mrb[26].mxu1 }
 0x2a9   :  { %v3223_v1 = vadd.f32 %v3931_v43, %v6481_v49  ;;  %v3217_v15 = vpop.f32.mrb[27].mxu1 }
 0x2aa   :  { %v3218_v0 = vadd.f32 %v6481_v49, %v3217_v15 }
 0x2ab   :  { %v3409_v32 = vadd.f32 %v4104_v16, %v3223_v1 }
 0x2ac   :  { %v3408_v48 = vadd.f32 %v4105_v45, %v3218_v0 }
 0x2ad   :  { %3473 = vst.msk [vmem:[#allocation6 + $0x108] sm:$0xff] %vm116_vm0, %v3409_v32  ;;  %v4120_v32 = vld [vmem:[#allocation3 + $0x188] sm:$0xff] }
 0x2ae   :  { %3472 = vst.msk [vmem:[#allocation6 + $0x100] sm:$0xff] %vm116_vm0, %v3408_v48  ;;  %v4121_v48 = vld [vmem:[#allocation3 + $0x180] sm:$0xff] }
 0x2b3   :  { %v3934_v12 = vpop.f32.mrb[28].mxu1 }
 0x2b4   :  { %v3233_v30 = vadd.f32 %v3934_v12, %v6481_v49  ;;  %v3227_v31 = vpop.f32.mrb[29].mxu1 }
 0x2b5   :  { %v3228_v42 = vadd.f32 %v6481_v49, %v3227_v31 }
 0x2b6   :  { %v3411_v34 = vadd.f32 %v4106_v8, %v3233_v30 }
 0x2b7   :  { %v3410_v63 = vadd.f32 %v4107_v40, %v3228_v42 }
 0x2b8   :  { %3475 = vst.msk [vmem:[#allocation6 + $0x118] sm:$0xff] %vm116_vm0, %v3411_v34  ;;  %v4122_v34 = vld [vmem:[#allocation3 + $0x198] sm:$0xff] }
 0x2b9   :  { %3474 = vst.msk [vmem:[#allocation6 + $0x110] sm:$0xff] %vm116_vm0, %v3410_v63  ;;  %v4123_v63 = vld [vmem:[#allocation3 + $0x190] sm:$0xff] }
 0x2bf   :  { %v3937_v41 = vpop.f32.mrb[30].mxu1 }
 0x2c0   :  { %v3243_v46 = vadd.f32 %v3937_v41, %v6481_v49  ;;  %v3237_v54 = vpop.f32.mrb[31].mxu1 }
 0x2c1   :  { %v3238_v37 = vadd.f32 %v6481_v49, %v3237_v54 }
 0x2c2   :  { %v3413_v7 = vadd.f32 %v4108_v39, %v3243_v46 }
 0x2c3   :  { %v3412_v11 = vadd.f32 %v4109_v4, %v3238_v37 }
 0x2c4   :  { %3477 = vst.msk [vmem:[#allocation6 + $0x128] sm:$0xff] %vm116_vm0, %v3413_v7  ;;  %v4124_v7 = vld [vmem:[#allocation3 + $0x1a8] sm:$0xff] }
 0x2c5   :  { %3476 = vst.msk [vmem:[#allocation6 + $0x120] sm:$0xff] %vm116_vm0, %v3412_v11  ;;  %v4125_v11 = vld [vmem:[#allocation3 + $0x1a0] sm:$0xff] }
 0x2ca   :  { %v3940_v3 = vpop.f32.mrb[32].mxu1 }
 0x2cb   :  { %v3253_v18 = vadd.f32 %v3940_v3, %v6481_v49  ;;  %v3247_v29 = vpop.f32.mrb[33].mxu1 }
 0x2cc   :  { %v3248_v58 = vadd.f32 %v6481_v49, %v3247_v29 }
 0x2cd   :  { %v3415_v47 = vadd.f32 %v4110_v20, %v3253_v18 }
 0x2ce   :  { %v3414_v22 = vadd.f32 %v4111_v24, %v3248_v58 }
 0x2cf   :  { %3479 = vst.msk [vmem:[#allocation6 + $0x138] sm:$0xff] %vm116_vm0, %v3415_v47  ;;  %v4126_v47 = vld [vmem:[#allocation3 + $0x1b8] sm:$0xff] }
 0x2d0   :  { %3478 = vst.msk [vmem:[#allocation6 + $0x130] sm:$0xff] %vm116_vm0, %v3414_v22  ;;  %v4127_v22 = vld [vmem:[#allocation3 + $0x1b0] sm:$0xff] }
 0x2d6   :  { %v3943_v59 = vpop.f32.mrb[34].mxu1 }
 0x2d7   :  { %v3263_v61 = vadd.f32 %v3943_v59, %v6481_v49  ;;  %v3257_v55 = vpop.f32.mrb[35].mxu1 }
 0x2d8   :  { %v3258_v17 = vadd.f32 %v6481_v49, %v3257_v55 }
 0x2d9   :  { %v3417_v2 = vadd.f32 %v4112_v25, %v3263_v61 }
 0x2da   :  { %v3416_v60 = vadd.f32 %v4113_v50, %v3258_v17 }
 0x2db   :  { %3481 = vst.msk [vmem:[#allocation6 + $0x148] sm:$0xff] %vm116_vm0, %v3417_v2  ;;  %v4128_v2 = vld [vmem:[#allocation3 + $0x1c8] sm:$0xff] }
 0x2dc   :  { %3480 = vst.msk [vmem:[#allocation6 + $0x140] sm:$0xff] %vm116_vm0, %v3416_v60  ;;  %v4129_v60 = vld [vmem:[#allocation3 + $0x1c0] sm:$0xff] }
 0x2e1   :  { %v3946_v27 = vpop.f32.mrb[36].mxu1 }
 0x2e2   :  { %v3273_v21 = vadd.f32 %v3946_v27, %v6481_v49  ;;  %v3267_v35 = vpop.f32.mrb[37].mxu1 }
 0x2e3   :  { %v3268_v52 = vadd.f32 %v6481_v49, %v3267_v35 }
 0x2e4   :  { %v3419_v26 = vadd.f32 %v4114_v44, %v3273_v21 }
 0x2e5   :  { %v3418_v56 = vadd.f32 %v4115_v6, %v3268_v52 }
 0x2e6   :  { %3483 = vst.msk [vmem:[#allocation6 + $0x158] sm:$0xff] %vm116_vm0, %v3419_v26  ;;  %v4130_v26 = vld [vmem:[#allocation3 + $0x1d8] sm:$0xff] }
 0x2e7   :  { %3482 = vst.msk [vmem:[#allocation6 + $0x150] sm:$0xff] %vm116_vm0, %v3418_v56  ;;  %v4131_v56 = vld [vmem:[#allocation3 + $0x1d0] sm:$0xff] }
 0x2ed   :  { %v3949_v62 = vpop.f32.mrb[38].mxu1 }
 0x2ee   :  { %v3283_v5 = vadd.f32 %v3949_v62, %v6481_v49  ;;  %v3277_v19 = vpop.f32.mrb[39].mxu1 }
 0x2ef   :  { %v3278_v28 = vadd.f32 %v6481_v49, %v3277_v19 }
 0x2f0   :  { %v3421_v10 = vadd.f32 %v4116_v38, %v3283_v5 }
 0x2f1   :  { %v3420_v13 = vadd.f32 %v4117_v36, %v3278_v28 }
 0x2f2   :  { %3485 = vst.msk [vmem:[#allocation6 + $0x168] sm:$0xff] %vm116_vm0, %v3421_v10  ;;  %v4132_v10 = vld [vmem:[#allocation3 + $0x1e8] sm:$0xff] }
 0x2f3   :  { %3484 = vst.msk [vmem:[#allocation6 + $0x160] sm:$0xff] %vm116_vm0, %v3420_v13  ;;  %v4133_v13 = vld [vmem:[#allocation3 + $0x1e0] sm:$0xff] }
 0x2f7   :  { %v3952_v57 = vpop.f32.mrb[40].mxu1 }
 0x2f8   :  { %v3293_v14 = vadd.f32 %v3952_v57, %v6481_v49  ;;  %v3287_v9 = vpop.f32.mrb[41].mxu1 }
 0x2f9   :  { %v3288_v53 = vadd.f32 %v6481_v49, %v3287_v9 }
 0x2fa   :  { %v3423_v51 = vadd.f32 %v4118_v33, %v3293_v14 }
 0x2fb   :  { %v3422_v43 = vadd.f32 %v4119_v23, %v3288_v53 }
 0x2fc   :  { %3487 = vst.msk [vmem:[#allocation6 + $0x178] sm:$0xff] %vm116_vm0, %v3423_v51  ;;  %v4134_v51 = vld [vmem:[#allocation3 + $0x1f8] sm:$0xff] }
 0x2fd   :  { %3486 = vst.msk [vmem:[#allocation6 + $0x170] sm:$0xff] %vm116_vm0, %v3422_v43  ;;  %v4135_v43 = vld [vmem:[#allocation3 + $0x1f0] sm:$0xff] }
 0x300   :  { %v3955_v1 = vpop.f32.mrb[42].mxu1 }
 0x301   :  { %v3303_v15 = vadd.f32 %v3955_v1, %v6481_v49  ;;  %v3297_v0 = vpop.f32.mrb[43].mxu1 }
 0x302   :  { %v3298_v16 = vadd.f32 %v6481_v49, %v3297_v0 }
 0x303   :  { %v3425_v45 = vadd.f32 %v4120_v32, %v3303_v15 }
 0x304   :  { %v3424_v12 = vadd.f32 %v4121_v48, %v3298_v16 }
 0x305   :  { %3489 = vst.msk [vmem:[#allocation6 + $0x188] sm:$0xff] %vm116_vm0, %v3425_v45 }
 0x306   :  { %3488 = vst.msk [vmem:[#allocation6 + $0x180] sm:$0xff] %vm116_vm0, %v3424_v12 }
 0x30b   :  { %v3958_v30 = vpop.f32.mrb[44].mxu1 }
 0x30c   :  { %v3313_v31 = vadd.f32 %v3958_v30, %v6481_v49  ;;  %v3307_v42 = vpop.f32.mrb[45].mxu1 }
 0x30d   :  { %v3308_v8 = vadd.f32 %v6481_v49, %v3307_v42 }
 0x30e   :  { %v3427_v40 = vadd.f32 %v4122_v34, %v3313_v31 }
 0x30f   :  { %v3426_v41 = vadd.f32 %v4123_v63, %v3308_v8 }
 0x310   :  { %3491 = vst.msk [vmem:[#allocation6 + $0x198] sm:$0xff] %vm116_vm0, %v3427_v40 }
 0x311   :  { %3490 = vst.msk [vmem:[#allocation6 + $0x190] sm:$0xff] %vm116_vm0, %v3426_v41 }
 0x315   :  { %v3961_v46 = vpop.f32.mrb[46].mxu1 }
 0x316   :  { %v3323_v54 = vadd.f32 %v3961_v46, %v6481_v49  ;;  %v3317_v37 = vpop.f32.mrb[47].mxu1 }
 0x317   :  { %v3318_v39 = vadd.f32 %v6481_v49, %v3317_v37 }
 0x318   :  { %v3429_v4 = vadd.f32 %v4124_v7, %v3323_v54 }
 0x319   :  { %v3428_v3 = vadd.f32 %v4125_v11, %v3318_v39 }
 0x31a   :  { %3493 = vst.msk [vmem:[#allocation6 + $0x1a8] sm:$0xff] %vm116_vm0, %v3429_v4 }
 0x31b   :  { %3492 = vst.msk [vmem:[#allocation6 + $0x1a0] sm:$0xff] %vm116_vm0, %v3428_v3 }
 0x31e   :  { %v3964_v18 = vpop.f32.mrb[48].mxu1 }
 0x31f   :  { %v3333_v29 = vadd.f32 %v3964_v18, %v6481_v49  ;;  %v3327_v58 = vpop.f32.mrb[49].mxu1 }
 0x320   :  { %v3328_v20 = vadd.f32 %v6481_v49, %v3327_v58 }
 0x321   :  { %v3431_v24 = vadd.f32 %v4126_v47, %v3333_v29 }
 0x322   :  { %v3430_v59 = vadd.f32 %v4127_v22, %v3328_v20 }
 0x323   :  { %3495 = vst.msk [vmem:[#allocation6 + $0x1b8] sm:$0xff] %vm116_vm0, %v3431_v24 }
 0x324   :  { %3494 = vst.msk [vmem:[#allocation6 + $0x1b0] sm:$0xff] %vm116_vm0, %v3430_v59 }
 0x329   :  { %v3967_v61 = vpop.f32.mrb[50].mxu1 }
 0x32a   :  { %v3343_v55 = vadd.f32 %v3967_v61, %v6481_v49  ;;  %v3337_v17 = vpop.f32.mrb[51].mxu1 }
 0x32b   :  { %v3338_v25 = vadd.f32 %v6481_v49, %v3337_v17 }
 0x32c   :  { %v3433_v50 = vadd.f32 %v4128_v2, %v3343_v55 }
 0x32d   :  { %v3432_v27 = vadd.f32 %v4129_v60, %v3338_v25 }
 0x32e   :  { %3497 = vst.msk [vmem:[#allocation6 + $0x1c8] sm:$0xff] %vm116_vm0, %v3433_v50 }
 0x32f   :  { %3496 = vst.msk [vmem:[#allocation6 + $0x1c0] sm:$0xff] %vm116_vm0, %v3432_v27 }
 0x333   :  { %v3970_v21 = vpop.f32.mrb[52].mxu1 }
 0x334   :  { %v3353_v35 = vadd.f32 %v3970_v21, %v6481_v49  ;;  %v3347_v52 = vpop.f32.mrb[53].mxu1 }
 0x335   :  { %v3348_v44 = vadd.f32 %v6481_v49, %v3347_v52 }
 0x336   :  { %v3435_v6 = vadd.f32 %v4130_v26, %v3353_v35 }
 0x337   :  { %v3434_v62 = vadd.f32 %v4131_v56, %v3348_v44 }
 0x338   :  { %3499 = vst.msk [vmem:[#allocation6 + $0x1d8] sm:$0xff] %vm116_vm0, %v3435_v6 }
 0x339   :  { %3498 = vst.msk [vmem:[#allocation6 + $0x1d0] sm:$0xff] %vm116_vm0, %v3434_v62 }
 0x33d   :  { %v3973_v5 = vpop.f32.mrb[54].mxu1 }
 0x33e   :  { %v3363_v19 = vadd.f32 %v3973_v5, %v6481_v49  ;;  %v3357_v28 = vpop.f32.mrb[55].mxu1 }
 0x33f   :  { %v3358_v38 = vadd.f32 %v6481_v49, %v3357_v28 }
 0x340   :  { %v3437_v36 = vadd.f32 %v4132_v10, %v3363_v19 }
 0x341   :  { %v3436_v57 = vadd.f32 %v4133_v13, %v3358_v38 }
 0x342   :  { %3501 = vst.msk [vmem:[#allocation6 + $0x1e8] sm:$0xff] %vm116_vm0, %v3437_v36 }
 0x343   :  { %3500 = vst.msk [vmem:[#allocation6 + $0x1e0] sm:$0xff] %vm116_vm0, %v3436_v57 }
 0x348   :  { %v3976_v14 = vpop.f32.mrb[56].mxu1 }
 0x349   :  { %v3373_v9 = vadd.f32 %v3976_v14, %v6481_v49  ;;  %v3367_v53 = vpop.f32.mrb[57].mxu1 }
 0x34a   :  { %v3368_v33 = vadd.f32 %v6481_v49, %v3367_v53 }
 0x34b   :  { %v3439_v23 = vadd.f32 %v4134_v51, %v3373_v9 }
 0x34c   :  { %v3438_v1 = vadd.f32 %v4135_v43, %v3368_v33 }
 0x34d   :  { %3503 = vst.msk [vmem:[#allocation6 + $0x1f8] sm:$0xff] %vm116_vm0, %v3439_v23 }
 0x34e   :  { %3502 = vst.msk [vmem:[#allocation6 + $0x1f0] sm:$0xff] %vm116_vm0, %v3438_v1 }
 0x34f   :  { %4169 = shalt.err (!%p4166_p12)
}
 0x350   :  { %s4170_s1 = scalar_lea.hbm %s6675_s7, 8192 }
 0x351   :  { %p4171_p13 = scmp.ne.s32.totalorder %s6675_s7, %s4170_s1  ;;  %p4174_p0 = scmp.lt.u32.totalorder %s4170_s1, %s6675_s7 }
 0x353   :  { %p4176_p1 = pnand %p4174_p0, %p4171_p13 }
 0x355   :  { %4179 = shalt.err (!%p4176_p1)
}
 0x356   :  { %3515 = dma.vmem_to_hbm [thread:$0]  %s3510_s20, 8192, %s6675_s7, [#allocation5], %s4185_s11, %s4185_s11, %s4186_s12  }
 0x357   :  { %4182 = dma.done.wait [#allocation5], 8192  }
 0x358   :  { %4183 = vsyncadd [#allocation5], 4294959104 }
 0x359   :  { %3519 = vsyncpa [#allocation4], 1 }
 0x35a   :  { %3520 = vsyncpa [#allocation5], 1 }

</bundles_post_ra>
